<compile_context>
chip_gen: v5e
topology: v5e:2x2
jax: 0.10.0
libtpu: 0.0.40
codegen_flags: <defaults>
</compile_context>

<pallas_src>
import functools
import math

import jax
import jax.numpy as jnp
from jax import lax
from jax.experimental import pallas as pl
from jax.experimental.pallas import tpu as pltpu

MXU_DTYPE = jnp.bfloat16                 # matmul-input dtype (f32 accumulation)

_CompilerParams = getattr(pltpu, "CompilerParams", None) or getattr(
    pltpu, "TPUCompilerParams")


def _vmem_limit_bytes():
    """Per-chip VMEM budget: use the 128 MiB parts fully, stay safe on v7x."""
    try:
        kind = jax.devices()[0].device_kind.lower()
    except Exception:
        kind = ""
    if "v2" in kind or "v3" in kind:
        return 14 * 1024 * 1024
    if "v4" in kind or "v5" in kind or "v6" in kind:
        return 100 * 1024 * 1024         # 128 MiB physical VMEM
    return 48 * 1024 * 1024              # v7x (64 MiB physical) and unknown


_VMEM_LIMIT = _vmem_limit_bytes()


def _cparams(*semantics):
    return _CompilerParams(dimension_semantics=tuple(semantics),
                           vmem_limit_bytes=_VMEM_LIMIT)


def _pick_tile(n, preferred):
    """Largest divisor of n <= preferred, preferring 16/8-aligned tiles."""
    if n <= preferred:
        return n
    for align in (16, 8, 1):
        for t in range(min(preferred, n), align - 1, -1):
            if n % t == 0 and t % align == 0:
                return t
    return n


# ----------------------------------------------------------------------------
# Fused LayerNorm + FeedForward(SiLU) + scaled residual (+ optional norm_out)
# ----------------------------------------------------------------------------
def _ln_ffn_kernel(x_ref, g_ref, b_ref, w1_ref, b1_ref, w2_ref, b2_ref,
                   og_ref, ob_ref, o_ref, *, eps, res_scale, out_ln):
    x = x_ref[...].astype(jnp.float32)                    # residual tile (tm, D)
    mu = jnp.mean(x, axis=-1, keepdims=True)
    var = jnp.mean(jnp.square(x - mu), axis=-1, keepdims=True)
    xn = (x - mu) * lax.rsqrt(var + eps) * g_ref[...] + b_ref[...]
    h = jnp.dot(xn.astype(w1_ref.dtype), w1_ref[...],
                preferred_element_type=jnp.float32) + b1_ref[...]
    h = h * jax.nn.sigmoid(h)                             # SiLU in f32
    y = jnp.dot(h.astype(w2_ref.dtype), w2_ref[...],
                preferred_element_type=jnp.float32) + b2_ref[...]
    r = x + res_scale * y                                 # residual + fc * ff
    if out_ln:  # fused norm_out epilogue: saves a full B*T*D HBM round trip
        mu2 = jnp.mean(r, axis=-1, keepdims=True)
        var2 = jnp.mean(jnp.square(r - mu2), axis=-1, keepdims=True)
        r = (r - mu2) * lax.rsqrt(var2 + eps) * og_ref[...] + ob_ref[...]
    o_ref[...] = r.astype(o_ref.dtype)


def fused_ln_ffn(x, ln_g, ln_b, w1, b1, w2, b2, out_g, out_b, *,
                 res_scale, out_ln, block_m, eps=1e-5):
    M, D = x.shape
    d_ff = w1.shape[1]
    tm = _pick_tile(M, block_m)
    vec = lambda n: pl.BlockSpec((1, n), lambda i: (0, 0))
    return pl.pallas_call(
        functools.partial(_ln_ffn_kernel, eps=eps, res_scale=res_scale,
                          out_ln=out_ln),
        grid=(M // tm,),
        in_specs=[
            pl.BlockSpec((tm, D), lambda i: (i, 0)),
            vec(D), vec(D),
            pl.BlockSpec((D, d_ff), lambda i: (0, 0)), vec(d_ff),
            pl.BlockSpec((d_ff, D), lambda i: (0, 0)), vec(D),
            vec(D), vec(D),
        ],
        out_specs=pl.BlockSpec((tm, D), lambda i: (i, 0)),
        out_shape=jax.ShapeDtypeStruct((M, D), x.dtype),
        compiler_params=_cparams("parallel"),
    )(x, ln_g.reshape(1, D), ln_b.reshape(1, D),
      w1, b1.reshape(1, d_ff), w2, b2.reshape(1, D),
      out_g.reshape(1, D), out_b.reshape(1, D))


# ----------------------------------------------------------------------------
# Fused LayerNorm + vectorized rotary + fused [Q|K] projection + V projection
# ----------------------------------------------------------------------------
def _ln_rot_qkv_kernel(x_ref, g_ref, b_ref, cos_ref, sn_ref, sp_ref,
                       wqk_ref, bqk_ref, wv_ref, bv_ref,
                       q_ref, k_ref, v_ref, *, eps, half):
    x = x_ref[0].astype(jnp.float32)                      # (tt, D)
    mu = jnp.mean(x, axis=-1, keepdims=True)
    var = jnp.mean(jnp.square(x - mu), axis=-1, keepdims=True)
    xn = (x - mu) * lax.rsqrt(var + eps) * g_ref[...] + b_ref[...]
    d = xn.shape[-1]
    # Per-head rotate-half, vectorized over the full row: two lane rolls (XLU)
    # combined with precomputed masked sin tables -- no per-head slicing and no
    # concatenation.  roll(x, d-half)[j] == x[j+half], roll(x, half)[j] == x[j-half].
    rot = (xn * cos_ref[...]
           + pltpu.roll(xn, d - half, axis=1) * sn_ref[...]
           + pltpu.roll(xn, half, axis=1) * sp_ref[...])
    qk = jnp.dot(rot.astype(wqk_ref.dtype), wqk_ref[...],
                 preferred_element_type=jnp.float32) + bqk_ref[...]
    v = jnp.dot(xn.astype(wv_ref.dtype), wv_ref[...],
                preferred_element_type=jnp.float32) + bv_ref[...]
    q_ref[0] = qk[:, :d].astype(q_ref.dtype)              # 128-aligned lane split
    k_ref[0] = qk[:, d:].astype(k_ref.dtype)
    v_ref[0] = v.astype(v_ref.dtype)


def fused_ln_rot_qkv(x, ln_g, ln_b, rope_cos, rope_sn, rope_sp,
                     wqk, bqk, wv, bv, *, n_heads, block_t, eps=1e-5):
    B, T, D = x.shape
    dk = D // n_heads
    tt = _pick_tile(T, block_t)
    seq = pl.BlockSpec((1, tt, D), lambda b, t: (b, t, 0))
    vec = lambda n: pl.BlockSpec((1, n), lambda b, t: (0, 0))
    rope = pl.BlockSpec((tt, D), lambda b, t: (t, 0))
    out_sds = jax.ShapeDtypeStruct((B, T, D), MXU_DTYPE)  # bf16: halves HBM traffic
    return pl.pallas_call(
        functools.partial(_ln_rot_qkv_kernel, eps=eps, half=dk // 2),
        grid=(B, T // tt),
        in_specs=[seq, vec(D), vec(D), rope, rope, rope,
                  pl.BlockSpec((D, 2 * D), lambda b, t: (0, 0)), vec(2 * D),
                  pl.BlockSpec((D, D), lambda b, t: (0, 0)), vec(D)],
        out_specs=[seq, seq, seq],
        out_shape=[out_sds, out_sds, out_sds],
        compiler_params=_cparams("parallel", "parallel"),
    )(x, ln_g.reshape(1, D), ln_b.reshape(1, D), rope_cos, rope_sn, rope_sp,
      wqk, bqk.reshape(1, 2 * D), wv, bv.reshape(1, D))


# ----------------------------------------------------------------------------
# Flash attention (online softmax, in-kernel mask from lengths) with the
# out-projection + residual add fused into the finalize step.
# ----------------------------------------------------------------------------
def _flash_attn_kernel(len_ref, q_ref, k_ref, v_ref, res_ref, ow_ref, ob_ref,
                       o_ref, m_ref, l_ref, acc_ref, *, n_heads, dk):
    b = pl.program_id(0)
    qi = pl.program_id(1)
    ki = pl.program_id(2)
    tq = q_ref.shape[1]
    tk = k_ref.shape[1]

    @pl.when(ki == 0)
    def _():
        m_ref[...] = jnp.full_like(m_ref, -jnp.inf)
        l_ref[...] = jnp.zeros_like(l_ref)
        acc_ref[...] = jnp.zeros_like(acc_ref)

    valid = len_ref[b]
    q_start = qi * tq
    kv_start = ki * tk

    def process(apply_mask):
        q = q_ref[0]                                      # (tq, D) bf16, 1/sqrt(dk) folded
        k = k_ref[0]                                      # (tk, D) bf16
        v = v_ref[0]
        if apply_mask:
            q_pos = q_start + lax.broadcasted_iota(jnp.int32, (tq, tk), 0)
            k_pos = kv_start + lax.broadcasted_iota(jnp.int32, (tq, tk), 1)
            masked = jnp.logical_or(q_pos >= valid, k_pos >= valid)  # True == masked
        for h in range(n_heads):
            lo, hi = h * dk, (h + 1) * dk
            s = lax.dot_general(q[:, lo:hi], k[:, lo:hi],
                                (((1,), (1,)), ((), ())),
                                preferred_element_type=jnp.float32)
            if apply_mask:
                s = jnp.where(masked, -10000.0, s)        # masked_fill(-10000)
            m_prev = m_ref[:, h:h + 1]                    # (tq, 1)
            m_new = jnp.maximum(m_prev, jnp.max(s, axis=-1, keepdims=True))
            alpha = jnp.exp(m_prev - m_new)
            p = jnp.exp(s - m_new)
            l_ref[:, lo:hi] = alpha * l_ref[:, lo:hi] + jnp.sum(
                p, axis=-1, keepdims=True)
            if apply_mask:
                p = jnp.where(masked, 0.0, p)             # masked_fill(attn, 0)
            acc_ref[:, lo:hi] = alpha * acc_ref[:, lo:hi] + jnp.dot(
                p.astype(v.dtype), v[:, lo:hi], preferred_element_type=jnp.float32)
            m_ref[:, h:h + 1] = m_new

    fully_valid = jnp.logical_and(q_start + tq <= valid, kv_start + tk <= valid)
    kv_live = kv_start < valid    # fully padded KV tiles contribute exactly 0 -> skip

    @pl.when(jnp.logical_and(kv_live, fully_valid))
    def _():
        process(False)            # fast path: no (tq, tk) selects

    @pl.when(jnp.logical_and(kv_live, jnp.logical_not(fully_valid)))
    def _():
        process(True)             # edge tiles: exact torch masking semantics

    @pl.when(ki == pl.num_programs(2) - 1)
    def _():
        l = l_ref[...]
        l = jnp.where(l > 0.0, l, 1.0)          # fully-masked rows -> ctx == 0 (torch)
        ctx = acc_ref[...] / l                  # exact divide (softmax parity)
        out = (res_ref[0].astype(jnp.float32)
               + jnp.dot(ctx.astype(ow_ref.dtype), ow_ref[...],
                         preferred_element_type=jnp.float32) + ob_ref[...])
        o_ref[0] = out.astype(o_ref.dtype)


def flash_attention_outproj(q, k, v, res, lengths, o_w, o_b, *,
                            n_heads, block_q, block_k):
    B, T, D = q.shape
    dk = D // n_heads
    tq = _pick_tile(T, block_q)
    tk = _pick_tile(T, block_k)
    return pl.pallas_call(
        functools.partial(_flash_attn_kernel, n_heads=n_heads, dk=dk),
        grid_spec=pltpu.PrefetchScalarGridSpec(
            num_scalar_prefetch=1,
            grid=(B, T // tq, T // tk),
            in_specs=[
                pl.BlockSpec((1, tq, D), lambda b, qi, ki, lens: (b, qi, 0)),
                pl.BlockSpec((1, tk, D), lambda b, qi, ki, lens: (b, ki, 0)),
                pl.BlockSpec((1, tk, D), lambda b, qi, ki, lens: (b, ki, 0)),
                pl.BlockSpec((1, tq, D), lambda b, qi, ki, lens: (b, qi, 0)),
                pl.BlockSpec((D, D), lambda b, qi, ki, lens: (0, 0)),
                pl.BlockSpec((1, D), lambda b, qi, ki, lens: (0, 0)),
            ],
            out_specs=pl.BlockSpec((1, tq, D), lambda b, qi, ki, lens: (b, qi, 0)),
            scratch_shapes=[
                pltpu.VMEM((tq, n_heads), jnp.float32),   # running max per head
                pltpu.VMEM((tq, D), jnp.float32),         # lane-dense softmax denom
                pltpu.VMEM((tq, D), jnp.float32),         # lane-dense accumulator
            ]),
        out_shape=jax.ShapeDtypeStruct((B, T, D), res.dtype),
        compiler_params=_cparams("parallel", "parallel", "arbitrary"),
    )(lengths, q, k, v, res, o_w, o_b.reshape(1, D))


# ----------------------------------------------------------------------------
# Linear + residual add (pointwise_conv2)
# ----------------------------------------------------------------------------
def _linear_res_kernel(x_ref, res_ref, w_ref, b_ref, o_ref):
    y = jnp.dot(x_ref[...].astype(w_ref.dtype), w_ref[...],
                preferred_element_type=jnp.float32) + b_ref[...]
    o_ref[...] = (res_ref[...].astype(jnp.float32) + y).astype(o_ref.dtype)


def linear_residual(x, res, w, b, *, block_m):
    M, K = x.shape
    N = w.shape[1]
    tm = _pick_tile(M, block_m)
    return pl.pallas_call(
        _linear_res_kernel,
        grid=(M // tm,),
        in_specs=[pl.BlockSpec((tm, K), lambda i: (i, 0)),
                  pl.BlockSpec((tm, N), lambda i: (i, 0)),
                  pl.BlockSpec((K, N), lambda i: (0, 0)),
                  pl.BlockSpec((1, N), lambda i: (0, 0))],
        out_specs=pl.BlockSpec((tm, N), lambda i: (i, 0)),
        out_shape=jax.ShapeDtypeStruct((M, N), res.dtype),
        compiler_params=_cparams("parallel"),
    )(x, res, w, b.reshape(1, N))


# ----------------------------------------------------------------------------
# Fused LayerNorm + pointwise_conv1 (single (D,2D) matmul) + GLU + pad-mask
# ----------------------------------------------------------------------------
def _ln_glu_kernel(len_ref, x_ref, g_ref, b_ref, w_ref, bias_ref, o_ref, *, eps):
    bi = pl.program_id(0)
    ti = pl.program_id(1)
    x = x_ref[0].astype(jnp.float32)                      # (tt, D)
    mu = jnp.mean(x, axis=-1, keepdims=True)
    var = jnp.mean(jnp.square(x - mu), axis=-1, keepdims=True)
    xn = (x - mu) * lax.rsqrt(var + eps) * g_ref[...] + b_ref[...]
    ab = jnp.dot(xn.astype(w_ref.dtype), w_ref[...],
                 preferred_element_type=jnp.float32) + bias_ref[...]
    d = x.shape[-1]
    h = ab[:, :d] * jax.nn.sigmoid(ab[:, d:])             # GLU (channel split)
    tt = x.shape[0]
    t_pos = ti * tt + lax.broadcasted_iota(jnp.int32, (tt, 1), 0)
    keep = t_pos < len_ref[bi]                            # masked_fill(pad, 0)
    o_ref[0] = jnp.where(keep, h, 0.0).astype(o_ref.dtype)


def fused_ln_glu(x, lengths, ln_g, ln_b, w, b, *, block_t, eps=1e-5):
    B, T, D = x.shape
    tt = _pick_tile(T, block_t)
    seq = pl.BlockSpec((1, tt, D), lambda b_, t, lens: (b_, t, 0))
    vec = lambda n: pl.BlockSpec((1, n), lambda b_, t, lens: (0, 0))
    return pl.pallas_call(
        functools.partial(_ln_glu_kernel, eps=eps),
        grid_spec=pltpu.PrefetchScalarGridSpec(
            num_scalar_prefetch=1,
            grid=(B, T // tt),
            in_specs=[seq, vec(D), vec(D),
                      pl.BlockSpec((D, 2 * D), lambda b_, t, lens: (0, 0)),
                      vec(2 * D)],
            out_specs=seq),
        out_shape=jax.ShapeDtypeStruct((B, T, D), x.dtype),
        compiler_params=_cparams("parallel", "parallel"),
    )(lengths, x, ln_g.reshape(1, D), ln_b.reshape(1, D), w, b.reshape(1, 2 * D))


# ----------------------------------------------------------------------------
# Depthwise conv over time (sublane rolls + FMA) + folded BatchNorm + SiLU
# ----------------------------------------------------------------------------
def _dwconv_silu_kernel(x_ref, w_ref, b_ref, o_ref, *, ksize):
    t_out = o_ref.shape[1]
    xp = x_ref[0].astype(jnp.float32)                     # (Tp8, D), zero padded
    tp = xp.shape[0]
    w = w_ref[...].astype(jnp.float32)                    # (ksize, D), BN folded
    acc = xp * w[0:1, :]
    for j in range(1, ksize):
        # sublane (time) rotation on the XLU slot instead of k unaligned slices;
        # roll(xp, tp - j)[t] == xp[t + j] and t + j never wraps for kept rows.
        acc = acc + pltpu.roll(xp, tp - j, axis=0) * w[j:j + 1, :]
    y = acc[:t_out, :] + b_ref[...]
    o_ref[0] = (y * jax.nn.sigmoid(y)).astype(o_ref.dtype)   # SiLU


def dwconv_bn_silu(x, w_folded, b_folded, ksize):
    """x: (B, T, D); depthwise 'same' conv over T, BatchNorm(eval) folded, SiLU."""
    B, T, D = x.shape
    pad = (ksize - 1) // 2
    tp = T + 2 * pad
    tp8 = ((tp + 7) // 8) * 8
    # TODO(synk): tile the time axis with a (ksize-1) halo for very long T
    # (bounds VMEM on v7x / more parallel grid steps, removes this pad copy).
    xp = jnp.pad(x, ((0, 0), (pad, pad + tp8 - tp), (0, 0)))
    return pl.pallas_call(
        functools.partial(_dwconv_silu_kernel, ksize=ksize),
        grid=(B,),
        in_specs=[pl.BlockSpec((1, tp8, D), lambda b: (b, 0, 0)),
                  pl.BlockSpec((ksize, D), lambda b: (0, 0)),
                  pl.BlockSpec((1, D), lambda b: (0, 0))],
        out_specs=pl.BlockSpec((1, T, D), lambda b: (b, 0, 0)),
        out_shape=jax.ShapeDtypeStruct((B, T, D), x.dtype),
        compiler_params=_cparams("parallel"),
    )(xp, w_folded, b_folded.reshape(1, D))


# ----------------------------------------------------------------------------
# ConformerLayer forward (rotary self-attention path)
# ----------------------------------------------------------------------------
def conformer_layer_forward(params, x, lengths, *, n_heads, conv_kernel_size,
                            block_m=256, block_t=256, block_q=256, block_k=256):
    """x: (B, T, d_model) f32; lengths: (B,) int32; params from prepare_params."""
    p = params
    B, T, D = x.shape
    fc = 0.5

    # feed_forward1: residual = x + 0.5 * ff1(norm_ff1(x))   (single fused kernel)
    res = fused_ln_ffn(x.reshape(B * T, D), p["ln_ff1_g"], p["ln_ff1_b"],
                       p["ff1_w1"], p["ff1_b1"], p["ff1_w2"], p["ff1_b2"],
                       p["ln_out_g"], p["ln_out_b"],
                       res_scale=fc, out_ln=False, block_m=block_m).reshape(B, T, D)

    # self attention: LN + per-head rotary (on the normed input, before the
    # projections -- gigaam order) + fused QK/V projections; flash attention
    # with out-projection + residual fused into the finalize.
    q, k, v = fused_ln_rot_qkv(res, p["ln_att_g"], p["ln_att_b"],
                               p["rope_cos"], p["rope_sin_neg"], p["rope_sin_pos"],
                               p["qk_w"], p["qk_b"], p["v_w"], p["v_b"],
                               n_heads=n_heads, block_t=block_t)
    res = flash_attention_outproj(q, k, v, res, lengths, p["o_w"], p["o_b"],
                                  n_heads=n_heads, block_q=block_q, block_k=block_k)

    # convolution module: LN + pw_conv1 + GLU + pad-mask; dwconv + BN(folded)
    # + SiLU; pw_conv2 + residual.
    h = fused_ln_glu(res, lengths, p["ln_conv_g"], p["ln_conv_b"],
                     p["pw1_w"], p["pw1_b"], block_t=block_t)
    h = dwconv_bn_silu(h, p["dw_w"], p["dw_b"], conv_kernel_size)
    res = linear_residual(h.reshape(B * T, D), res.reshape(B * T, D),
                          p["pw2_w"], p["pw2_b"], block_m=block_m).reshape(B, T, D)

    # feed_forward2 with fused norm_out epilogue
    out = fused_ln_ffn(res.reshape(B * T, D), p["ln_ff2_g"], p["ln_ff2_b"],
                       p["ff2_w1"], p["ff2_b1"], p["ff2_w2"], p["ff2_b2"],
                       p["ln_out_g"], p["ln_out_b"],
                       res_scale=fc, out_ln=True, block_m=block_m)
    return out.reshape(B, T, D)


# ----------------------------------------------------------------------------
# Parameters: raw (torch-like, f32) and one-time prepared (bf16 / fused) forms
# ----------------------------------------------------------------------------
def init_params(key, d_model, d_ff, conv_kernel_size):
    D = d_model
    keys = iter(jax.random.split(key, 64))

    def rnd(shape, scale=0.1):
        return jax.random.normal(next(keys), shape, jnp.float32) * scale

    ones = lambda: jnp.ones((D,), jnp.float32)
    zeros = lambda: jnp.zeros((D,), jnp.float32)
    return {
        "ln_ff1_g": ones(), "ln_ff1_b": zeros(),
        "ff1_w1": rnd((D, d_ff)), "ff1_b1": rnd((d_ff,), 0.01),
        "ff1_w2": rnd((d_ff, D)), "ff1_b2": rnd((D,), 0.01),
        "ln_att_g": ones(), "ln_att_b": zeros(),
        "q_w": rnd((D, D)), "q_b": rnd((D,), 0.01),
        "k_w": rnd((D, D)), "k_b": rnd((D,), 0.01),
        "v_w": rnd((D, D)), "v_b": rnd((D,), 0.01),
        "o_w": rnd((D, D)), "o_b": rnd((D,), 0.01),
        "ln_conv_g": ones(), "ln_conv_b": zeros(),
        # pointwise_conv1 (kernel 1) as a right-multiplied (D, 2D) matrix:
        # columns [0:D] -> GLU value half, [D:2D] -> GLU gate half.
        "pw1_w": rnd((D, 2 * D)), "pw1_b": rnd((2 * D,), 0.01),
        "dw_w": rnd((conv_kernel_size, D)), "dw_b": rnd((D,), 0.01),
        "bn_g": ones(), "bn_b": zeros(),
        "bn_mean": zeros(), "bn_var": jnp.ones((D,), jnp.float32),
        "pw2_w": rnd((D, D)), "pw2_b": rnd((D,), 0.01),
        "ln_ff2_g": ones(), "ln_ff2_b": zeros(),
        "ff2_w1": rnd((D, d_ff)), "ff2_b1": rnd((d_ff,), 0.01),
        "ff2_w2": rnd((d_ff, D)), "ff2_b2": rnd((D,), 0.01),
        "ln_out_g": ones(), "ln_out_b": zeros(),
    }


def prepare_params(p, cos, sin, n_heads, bn_eps=1e-5):
    """One-time (outside jit) weight preparation: bf16 casts, [Q|K] concat with
    1/sqrt(dk) folded into Q, BatchNorm(eval) folded into the depthwise conv,
    and rotary tables pre-tiled to (T, D) with masked sin halves."""
    D = p["q_w"].shape[0]
    dk = D // n_heads
    half = dk // 2
    scale = 1.0 / math.sqrt(dk)
    bf = lambda w: w.astype(MXU_DTYPE)

    out = {k: p[k] for k in (
        "ln_ff1_g", "ln_ff1_b", "ln_att_g", "ln_att_b", "ln_conv_g", "ln_conv_b",
        "ln_ff2_g", "ln_ff2_b", "ln_out_g", "ln_out_b",
        "ff1_b1", "ff1_b2", "ff2_b1", "ff2_b2", "v_b", "o_b", "pw1_b", "pw2_b")}
    out["ff1_w1"] = bf(p["ff1_w1"]); out["ff1_w2"] = bf(p["ff1_w2"])
    out["ff2_w1"] = bf(p["ff2_w1"]); out["ff2_w2"] = bf(p["ff2_w2"])
    out["qk_w"] = bf(jnp.concatenate([p["q_w"] * scale, p["k_w"]], axis=1))
    out["qk_b"] = jnp.concatenate([p["q_b"] * scale, p["k_b"]])
    out["v_w"] = bf(p["v_w"]); out["o_w"] = bf(p["o_w"])
    out["pw1_w"] = bf(p["pw1_w"]); out["pw2_w"] = bf(p["pw2_w"])

    s = p["bn_g"] / jnp.sqrt(p["bn_var"] + bn_eps)        # BatchNorm eval fold
    out["dw_w"] = p["dw_w"] * s[None, :]
    out["dw_b"] = (p["dw_b"] - p["bn_mean"]) * s + p["bn_b"]

    cos_t = jnp.tile(cos, (1, n_heads))                   # (T, D)
    sin_t = jnp.tile(sin, (1, n_heads))
    first = ((jnp.arange(D) % dk) < half)[None, :]
    out["rope_cos"] = cos_t
    out["rope_sin_neg"] = jnp.where(first, -sin_t, 0.0)   # pairs with roll(+half lanes)
    out["rope_sin_pos"] = jnp.where(first, 0.0, sin_t)    # pairs with roll(-half lanes)
    return out


# ----------------------------------------------------------------------------
if __name__ == "__main__":
    # Small TPU-friendly shapes: B=2, T=32, d_model=128 (lane-dense), 4 heads.
    B, T, D = 2, 32, 128
    n_heads = 4
    d_ff = 2 * D
    ksize = 7
    dk = D // n_heads

    key = jax.random.PRNGKey(0)
    pkey, xkey = jax.random.split(key)
    raw_params = init_params(pkey, D, d_ff, ksize)
    x = jax.random.normal(xkey, (B, T, D), jnp.float32)
    lengths = jnp.array([T, T - 7], dtype=jnp.int32)      # 2nd sequence is padded

    # Rotary positional embedding (gigaam RotaryEmbedding, base 10000): (T, d_k).
    inv_freq = 1.0 / (10000.0 ** (jnp.arange(0, dk, 2, dtype=jnp.float32) / dk))
    t = jnp.arange(T, dtype=jnp.float32)
    freqs = jnp.einsum("i,j->ij", t, inv_freq)
    emb = jnp.concatenate([freqs, freqs], axis=-1)        # (T, dk)
    cos, sin = jnp.cos(emb), jnp.sin(emb)

    # One-time weight prep (bf16 cast / fusion / folds) outside jit.
    params = prepare_params(raw_params, cos, sin, n_heads)

    fwd = jax.jit(functools.partial(
        conformer_layer_forward, n_heads=n_heads, conv_kernel_size=ksize,
        # small tiles so the demo exercises real multi-step grids / pipelining
        block_m=16, block_t=16, block_q=16, block_k=16))
    out = fwd(params, x, lengths)
    jax.block_until_ready(out)

    assert out.shape == (B, T, D), out.shape
    assert bool(jnp.all(jnp.isfinite(out)))
    print("KERNEL_OK")
</pallas_src>

<mosaic_0001>
module attributes {stable_mosaic.version = 11 : i64} {
  func.func @_ln_ffn_kernel(%arg0: i32, %arg1: memref<16x128xf32, #tpu.memory_space<vmem>>, %arg2: memref<1x128xf32, #tpu.memory_space<vmem>>, %arg3: memref<1x128xf32, #tpu.memory_space<vmem>>, %arg4: memref<128x256xbf16, #tpu.memory_space<vmem>>, %arg5: memref<1x256xf32, #tpu.memory_space<vmem>>, %arg6: memref<256x128xbf16, #tpu.memory_space<vmem>>, %arg7: memref<1x128xf32, #tpu.memory_space<vmem>>, %arg8: memref<1x128xf32, #tpu.memory_space<vmem>>, %arg9: memref<1x128xf32, #tpu.memory_space<vmem>>, %arg10: memref<16x128xf32, #tpu.memory_space<vmem>>) attributes {dimension_semantics = [#tpu.dimension_semantics<parallel>], iteration_bounds = array<i64: 4>, scalar_prefetch = 0 : i64, scratch_operands = 0 : i64, tpu.core_type = #tpu.core_type<tc>, window_params = [{transform_indices = @transform_0, window_bounds = array<i64: 16, 128>}, {pipeline_mode = #tpu.pipeline_mode<synchronous>, transform_indices = @transform_1, window_bounds = array<i64: 1, 128>}, {pipeline_mode = #tpu.pipeline_mode<synchronous>, transform_indices = @transform_2, window_bounds = array<i64: 1, 128>}, {pipeline_mode = #tpu.pipeline_mode<synchronous>, transform_indices = @transform_3, window_bounds = array<i64: 128, 256>}, {pipeline_mode = #tpu.pipeline_mode<synchronous>, transform_indices = @transform_4, window_bounds = array<i64: 1, 256>}, {pipeline_mode = #tpu.pipeline_mode<synchronous>, transform_indices = @transform_5, window_bounds = array<i64: 256, 128>}, {pipeline_mode = #tpu.pipeline_mode<synchronous>, transform_indices = @transform_6, window_bounds = array<i64: 1, 128>}, {pipeline_mode = #tpu.pipeline_mode<synchronous>, transform_indices = @transform_7, window_bounds = array<i64: 1, 128>}, {pipeline_mode = #tpu.pipeline_mode<synchronous>, transform_indices = @transform_8, window_bounds = array<i64: 1, 128>}, {transform_indices = @transform_9, window_bounds = array<i64: 16, 128>}]} {
    %c0 = arith.constant 0 : index
    %c0_0 = arith.constant 0 : index
    %0 = vector.load %arg1[%c0, %c0_0] : memref<16x128xf32, #tpu.memory_space<vmem>>, vector<16x128xf32>
    %cst = arith.constant dense<0.000000e+00> : vector<16xf32>
    %1 = vector.multi_reduction <add>, %0, %cst [1] : vector<16x128xf32> to vector<16xf32>
    %2 = vector.shape_cast %1 : vector<16xf32> to vector<16x1xf32>
    %cst_1 = arith.constant 1.280000e+02 : f32
    %3 = vector.broadcast %cst_1 : f32 to vector<16x1xf32>
    %4 = arith.divf %2, %3 : vector<16x1xf32>
    %5 = vector.broadcast %4 : vector<16x1xf32> to vector<16x128xf32>
    %6 = arith.subf %0, %5 : vector<16x128xf32>
    %7 = arith.mulf %6, %6 : vector<16x128xf32>
    %cst_2 = arith.constant dense<0.000000e+00> : vector<16xf32>
    %8 = vector.multi_reduction <add>, %7, %cst_2 [1] : vector<16x128xf32> to vector<16xf32>
    %9 = vector.shape_cast %8 : vector<16xf32> to vector<16x1xf32>
    %cst_3 = arith.constant 1.280000e+02 : f32
    %10 = vector.broadcast %cst_3 : f32 to vector<16x1xf32>
    %11 = arith.divf %9, %10 : vector<16x1xf32>
    %12 = vector.broadcast %4 : vector<16x1xf32> to vector<16x128xf32>
    %13 = arith.subf %0, %12 : vector<16x128xf32>
    %cst_4 = arith.constant 9.99999974E-6 : f32
    %14 = vector.broadcast %cst_4 : f32 to vector<16x1xf32>
    %15 = arith.addf %11, %14 : vector<16x1xf32>
    %16 = math.rsqrt %15 : vector<16x1xf32>
    %17 = vector.broadcast %16 : vector<16x1xf32> to vector<16x128xf32>
    %18 = arith.mulf %13, %17 : vector<16x128xf32>
    %c0_5 = arith.constant 0 : index
    %c0_6 = arith.constant 0 : index
    %19 = vector.load %arg2[%c0_5, %c0_6] : memref<1x128xf32, #tpu.memory_space<vmem>>, vector<1x128xf32>
    %20 = vector.broadcast %19 : vector<1x128xf32> to vector<16x128xf32>
    %21 = arith.mulf %18, %20 : vector<16x128xf32>
    %c0_7 = arith.constant 0 : index
    %c0_8 = arith.constant 0 : index
    %22 = vector.load %arg3[%c0_7, %c0_8] : memref<1x128xf32, #tpu.memory_space<vmem>>, vector<1x128xf32>
    %23 = vector.broadcast %22 : vector<1x128xf32> to vector<16x128xf32>
    %24 = arith.addf %21, %23 : vector<16x128xf32>
    %25 = arith.truncf %24 : vector<16x128xf32> to vector<16x128xbf16>
    %c0_9 = arith.constant 0 : index
    %c0_10 = arith.constant 0 : index
    %26 = vector.load %arg4[%c0_9, %c0_10] : memref<128x256xbf16, #tpu.memory_space<vmem>>, vector<128x256xbf16>
    %cst_11 = arith.constant dense<0.000000e+00> : vector<16x256xf32>
    %27 = tpu.matmul %25, %26, %cst_11 {dimension_numbers = #tpu.dot_dimension_numbers<[1], [0], [0], [1], [0, 0, 1, 1], [], []>} : vector<16x128xbf16>, vector<128x256xbf16>, vector<16x256xf32> -> vector<16x256xf32>
    %c0_12 = arith.constant 0 : index
    %c0_13 = arith.constant 0 : index
    %28 = vector.load %arg5[%c0_12, %c0_13] : memref<1x256xf32, #tpu.memory_space<vmem>>, vector<1x256xf32>
    %29 = vector.broadcast %28 : vector<1x256xf32> to vector<16x256xf32>
    %30 = arith.addf %27, %29 : vector<16x256xf32>
    %31 = arith.negf %30 : vector<16x256xf32>
    %32 = math.exp %31 : vector<16x256xf32>
    %cst_14 = arith.constant 1.000000e+00 : f32
    %33 = vector.broadcast %cst_14 : f32 to vector<16x256xf32>
    %34 = arith.addf %33, %32 : vector<16x256xf32>
    %35 = arith.divf %33, %34 : vector<16x256xf32>
    %36 = arith.mulf %30, %35 : vector<16x256xf32>
    %37 = arith.truncf %36 : vector<16x256xf32> to vector<16x256xbf16>
    %c0_15 = arith.constant 0 : index
    %c0_16 = arith.constant 0 : index
    %38 = vector.load %arg6[%c0_15, %c0_16] : memref<256x128xbf16, #tpu.memory_space<vmem>>, vector<256x128xbf16>
    %cst_17 = arith.constant dense<0.000000e+00> : vector<16x128xf32>
    %39 = tpu.matmul %37, %38, %cst_17 {dimension_numbers = #tpu.dot_dimension_numbers<[1], [0], [0], [1], [0, 0, 1, 1], [], []>} : vector<16x256xbf16>, vector<256x128xbf16>, vector<16x128xf32> -> vector<16x128xf32>
    %c0_18 = arith.constant 0 : index
    %c0_19 = arith.constant 0 : index
    %40 = vector.load %arg7[%c0_18, %c0_19] : memref<1x128xf32, #tpu.memory_space<vmem>>, vector<1x128xf32>
    %41 = vector.broadcast %40 : vector<1x128xf32> to vector<16x128xf32>
    %42 = arith.addf %39, %41 : vector<16x128xf32>
    %cst_20 = arith.constant 5.000000e-01 : f32
    %43 = vector.broadcast %cst_20 : f32 to vector<16x128xf32>
    %44 = arith.mulf %43, %42 : vector<16x128xf32>
    %45 = arith.addf %0, %44 : vector<16x128xf32>
    %c0_21 = arith.constant 0 : index
    %c0_22 = arith.constant 0 : index
    %46 = vector.load %arg10[%c0_21, %c0_22] : memref<16x128xf32, #tpu.memory_space<vmem>>, vector<16x128xf32>
    tpu.vector_store %arg10[%c0_21, %c0_22], %45 {strides = array<i32>} : memref<16x128xf32, #tpu.memory_space<vmem>>, vector<16x128xf32>,
    return
  }
  func.func @transform_0(%arg0: i32) -> (i32, i32) {
    %c0_i32 = arith.constant 0 : i32
    %c0_i32_0 = arith.constant 0 : i32
    return %arg0, %c0_i32 : i32, i32
  }
  func.func @transform_1(%arg0: i32) -> (i32, i32) {
    %c0_i32 = arith.constant 0 : i32
    %c0_i32_0 = arith.constant 0 : i32
    %c0_i32_1 = arith.constant 0 : i32
    return %c0_i32, %c0_i32_0 : i32, i32
  }
  func.func @transform_2(%arg0: i32) -> (i32, i32) {
    %c0_i32 = arith.constant 0 : i32
    %c0_i32_0 = arith.constant 0 : i32
    %c0_i32_1 = arith.constant 0 : i32
    return %c0_i32, %c0_i32_0 : i32, i32
  }
  func.func @transform_3(%arg0: i32) -> (i32, i32) {
    %c0_i32 = arith.constant 0 : i32
    %c0_i32_0 = arith.constant 0 : i32
    %c0_i32_1 = arith.constant 0 : i32
    return %c0_i32, %c0_i32_0 : i32, i32
  }
  func.func @transform_4(%arg0: i32) -> (i32, i32) {
    %c0_i32 = arith.constant 0 : i32
    %c0_i32_0 = arith.constant 0 : i32
    %c0_i32_1 = arith.constant 0 : i32
    return %c0_i32, %c0_i32_0 : i32, i32
  }
  func.func @transform_5(%arg0: i32) -> (i32, i32) {
    %c0_i32 = arith.constant 0 : i32
    %c0_i32_0 = arith.constant 0 : i32
    %c0_i32_1 = arith.constant 0 : i32
    return %c0_i32, %c0_i32_0 : i32, i32
  }
  func.func @transform_6(%arg0: i32) -> (i32, i32) {
    %c0_i32 = arith.constant 0 : i32
    %c0_i32_0 = arith.constant 0 : i32
    %c0_i32_1 = arith.constant 0 : i32
    return %c0_i32, %c0_i32_0 : i32, i32
  }
  func.func @transform_7(%arg0: i32) -> (i32, i32) {
    %c0_i32 = arith.constant 0 : i32
    %c0_i32_0 = arith.constant 0 : i32
    %c0_i32_1 = arith.constant 0 : i32
    return %c0_i32, %c0_i32_0 : i32, i32
  }
  func.func @transform_8(%arg0: i32) -> (i32, i32) {
    %c0_i32 = arith.constant 0 : i32
    %c0_i32_0 = arith.constant 0 : i32
    %c0_i32_1 = arith.constant 0 : i32
    return %c0_i32, %c0_i32_0 : i32, i32
  }
  func.func @transform_9(%arg0: i32) -> (i32, i32) {
    %c0_i32 = arith.constant 0 : i32
    %c0_i32_0 = arith.constant 0 : i32
    return %arg0, %c0_i32 : i32, i32
  }
}

module attributes {stable_mosaic.version = 11 : i64} {
  func.func @_ln_glu_kernel(%arg0: i32, %arg1: i32, %arg2: memref<2xi32, #tpu.memory_space<smem>>, %arg3: memref<1x16x128xf32, #tpu.memory_space<vmem>>, %arg4: memref<1x128xf32, #tpu.memory_space<vmem>>, %arg5: memref<1x128xf32, #tpu.memory_space<vmem>>, %arg6: memref<128x256xbf16, #tpu.memory_space<vmem>>, %arg7: memref<1x256xf32, #tpu.memory_space<vmem>>, %arg8: memref<1x16x128xf32, #tpu.memory_space<vmem>>) attributes {dimension_semantics = [#tpu.dimension_semantics<parallel>, #tpu.dimension_semantics<parallel>], iteration_bounds = array<i64: 2, 2>, scalar_prefetch = 1 : i64, scratch_operands = 0 : i64, tpu.core_type = #tpu.core_type<tc>, window_params = [{transform_indices = @transform_0, window_bounds = array<i64: 1, 16, 128>}, {pipeline_mode = #tpu.pipeline_mode<synchronous>, transform_indices = @transform_1, window_bounds = array<i64: 1, 128>}, {pipeline_mode = #tpu.pipeline_mode<synchronous>, transform_indices = @transform_2, window_bounds = array<i64: 1, 128>}, {pipeline_mode = #tpu.pipeline_mode<synchronous>, transform_indices = @transform_3, window_bounds = array<i64: 128, 256>}, {pipeline_mode = #tpu.pipeline_mode<synchronous>, transform_indices = @transform_4, window_bounds = array<i64: 1, 256>}, {transform_indices = @transform_5, window_bounds = array<i64: 1, 16, 128>}]} {
    %c0 = arith.constant 0 : index
    %c0_0 = arith.constant 0 : index
    %c0_1 = arith.constant 0 : index
    %0 = vector.load %arg3[%c0, %c0_0, %c0_1] : memref<1x16x128xf32, #tpu.memory_space<vmem>>, vector<1x16x128xf32>
    %1 = vector.shape_cast %0 : vector<1x16x128xf32> to vector<16x128xf32>
    %cst = arith.constant dense<0.000000e+00> : vector<16xf32>
    %2 = vector.multi_reduction <add>, %1, %cst [1] : vector<16x128xf32> to vector<16xf32>
    %3 = vector.shape_cast %2 : vector<16xf32> to vector<16x1xf32>
    %cst_2 = arith.constant 1.280000e+02 : f32
    %4 = vector.broadcast %cst_2 : f32 to vector<16x1xf32>
    %5 = arith.divf %3, %4 : vector<16x1xf32>
    %6 = vector.broadcast %5 : vector<16x1xf32> to vector<16x128xf32>
    %7 = arith.subf %1, %6 : vector<16x128xf32>
    %8 = arith.mulf %7, %7 : vector<16x128xf32>
    %cst_3 = arith.constant dense<0.000000e+00> : vector<16xf32>
    %9 = vector.multi_reduction <add>, %8, %cst_3 [1] : vector<16x128xf32> to vector<16xf32>
    %10 = vector.shape_cast %9 : vector<16xf32> to vector<16x1xf32>
    %cst_4 = arith.constant 1.280000e+02 : f32
    %11 = vector.broadcast %cst_4 : f32 to vector<16x1xf32>
    %12 = arith.divf %10, %11 : vector<16x1xf32>
    %13 = vector.broadcast %5 : vector<16x1xf32> to vector<16x128xf32>
    %14 = arith.subf %1, %13 : vector<16x128xf32>
    %cst_5 = arith.constant 9.99999974E-6 : f32
    %15 = vector.broadcast %cst_5 : f32 to vector<16x1xf32>
    %16 = arith.addf %12, %15 : vector<16x1xf32>
    %17 = math.rsqrt %16 : vector<16x1xf32>
    %18 = vector.broadcast %17 : vector<16x1xf32> to vector<16x128xf32>
    %19 = arith.mulf %14, %18 : vector<16x128xf32>
    %c0_6 = arith.constant 0 : index
    %c0_7 = arith.constant 0 : index
    %20 = vector.load %arg4[%c0_6, %c0_7] : memref<1x128xf32, #tpu.memory_space<vmem>>, vector<1x128xf32>
    %21 = vector.broadcast %20 : vector<1x128xf32> to vector<16x128xf32>
    %22 = arith.mulf %19, %21 : vector<16x128xf32>
    %c0_8 = arith.constant 0 : index
    %c0_9 = arith.constant 0 : index
    %23 = vector.load %arg5[%c0_8, %c0_9] : memref<1x128xf32, #tpu.memory_space<vmem>>, vector<1x128xf32>
    %24 = vector.broadcast %23 : vector<1x128xf32> to vector<16x128xf32>
    %25 = arith.addf %22, %24 : vector<16x128xf32>
    %26 = arith.truncf %25 : vector<16x128xf32> to vector<16x128xbf16>
    %c0_10 = arith.constant 0 : index
    %c0_11 = arith.constant 0 : index
    %27 = vector.load %arg6[%c0_10, %c0_11] : memref<128x256xbf16, #tpu.memory_space<vmem>>, vector<128x256xbf16>
    %cst_12 = arith.constant dense<0.000000e+00> : vector<16x256xf32>
    %28 = tpu.matmul %26, %27, %cst_12 {dimension_numbers = #tpu.dot_dimension_numbers<[1], [0], [0], [1], [0, 0, 1, 1], [], []>} : vector<16x128xbf16>, vector<128x256xbf16>, vector<16x256xf32> -> vector<16x256xf32>
    %c0_13 = arith.constant 0 : index
    %c0_14 = arith.constant 0 : index
    %29 = vector.load %arg7[%c0_13, %c0_14] : memref<1x256xf32, #tpu.memory_space<vmem>>, vector<1x256xf32>
    %30 = vector.broadcast %29 : vector<1x256xf32> to vector<16x256xf32>
    %31 = arith.addf %28, %30 : vector<16x256xf32>
    %32 = vector.extract_strided_slice %31 {offsets = [0, 0], sizes = [16, 128], strides = [1, 1]} : vector<16x256xf32> to vector<16x128xf32>
    %33 = vector.extract_strided_slice %31 {offsets = [0, 128], sizes = [16, 128], strides = [1, 1]} : vector<16x256xf32> to vector<16x128xf32>
    %34 = arith.negf %33 : vector<16x128xf32>
    %35 = math.exp %34 : vector<16x128xf32>
    %cst_15 = arith.constant 1.000000e+00 : f32
    %36 = vector.broadcast %cst_15 : f32 to vector<16x128xf32>
    %37 = arith.addf %36, %35 : vector<16x128xf32>
    %38 = arith.divf %36, %37 : vector<16x128xf32>
    %39 = arith.mulf %32, %38 : vector<16x128xf32>
    %c16_i32 = arith.constant 16 : i32
    %40 = arith.muli %arg1, %c16_i32 : i32
    %41 = tpu.iota {dimensions = array<i32: 0>} : vector<16x1xi32>
    %42 = vector.broadcast %40 : i32 to vector<16x1xi32>
    %43 = arith.addi %42, %41 : vector<16x1xi32>
    %44 = arith.index_cast %arg0 : i32 to index
    %45 = memref.load %arg2[%44] : memref<2xi32, #tpu.memory_space<smem>>
    %46 = vector.broadcast %45 : i32 to vector<16x1xi32>
    %47 = arith.cmpi slt, %43, %46 : vector<16x1xi32>
    %cst_16 = arith.constant 0.000000e+00 : f32
    %48 = vector.shape_cast %47 : vector<16x1xi1> to vector<16x1xi1>
    %49 = vector.broadcast %48 : vector<16x1xi1> to vector<16x128xi1>
    %50 = vector.broadcast %cst_16 : f32 to vector<16x128xf32>
    %51 = arith.select %49, %39, %50 : vector<16x128xi1>, vector<16x128xf32>
    %c0_17 = arith.constant 0 : index
    %c0_18 = arith.constant 0 : index
    %c0_19 = arith.constant 0 : index
    %52 = vector.load %arg8[%c0_17, %c0_18, %c0_19] : memref<1x16x128xf32, #tpu.memory_space<vmem>>, vector<1x16x128xf32>
    %53 = vector.shape_cast %52 : vector<1x16x128xf32> to vector<16x128xf32>
    %54 = vector.shape_cast %51 : vector<16x128xf32> to vector<1x16x128xf32>
    tpu.vector_store %arg8[%c0_17, %c0_18, %c0_19], %54 {strides = array<i32>} : memref<1x16x128xf32, #tpu.memory_space<vmem>>, vector<1x16x128xf32>,
    return
  }
  func.func @transform_0(%arg0: i32, %arg1: i32, %arg2: memref<2xi32, #tpu.memory_space<smem>>) -> (i32, i32, i32) {
    %c0_i32 = arith.constant 0 : i32
    %c0_i32_0 = arith.constant 0 : i32
    return %arg0, %arg1, %c0_i32 : i32, i32, i32
  }
  func.func @transform_1(%arg0: i32, %arg1: i32, %arg2: memref<2xi32, #tpu.memory_space<smem>>) -> (i32, i32) {
    %c0_i32 = arith.constant 0 : i32
    %c0_i32_0 = arith.constant 0 : i32
    %c0_i32_1 = arith.constant 0 : i32
    return %c0_i32, %c0_i32_0 : i32, i32
  }
  func.func @transform_2(%arg0: i32, %arg1: i32, %arg2: memref<2xi32, #tpu.memory_space<smem>>) -> (i32, i32) {
    %c0_i32 = arith.constant 0 : i32
    %c0_i32_0 = arith.constant 0 : i32
    %c0_i32_1 = arith.constant 0 : i32
    return %c0_i32, %c0_i32_0 : i32, i32
  }
  func.func @transform_3(%arg0: i32, %arg1: i32, %arg2: memref<2xi32, #tpu.memory_space<smem>>) -> (i32, i32) {
    %c0_i32 = arith.constant 0 : i32
    %c0_i32_0 = arith.constant 0 : i32
    %c0_i32_1 = arith.constant 0 : i32
    return %c0_i32, %c0_i32_0 : i32, i32
  }
  func.func @transform_4(%arg0: i32, %arg1: i32, %arg2: memref<2xi32, #tpu.memory_space<smem>>) -> (i32, i32) {
    %c0_i32 = arith.constant 0 : i32
    %c0_i32_0 = arith.constant 0 : i32
    %c0_i32_1 = arith.constant 0 : i32
    return %c0_i32, %c0_i32_0 : i32, i32
  }
  func.func @transform_5(%arg0: i32, %arg1: i32, %arg2: memref<2xi32, #tpu.memory_space<smem>>) -> (i32, i32, i32) {
    %c0_i32 = arith.constant 0 : i32
    %c0_i32_0 = arith.constant 0 : i32
    return %arg0, %arg1, %c0_i32 : i32, i32, i32
  }
}

module attributes {stable_mosaic.version = 11 : i64} {
  func.func @_ln_rot_qkv_kernel(%arg0: i32, %arg1: i32, %arg2: memref<1x16x128xf32, #tpu.memory_space<vmem>>, %arg3: memref<1x128xf32, #tpu.memory_space<vmem>>, %arg4: memref<1x128xf32, #tpu.memory_space<vmem>>, %arg5: memref<16x128xf32, #tpu.memory_space<vmem>>, %arg6: memref<16x128xf32, #tpu.memory_space<vmem>>, %arg7: memref<16x128xf32, #tpu.memory_space<vmem>>, %arg8: memref<128x256xbf16, #tpu.memory_space<vmem>>, %arg9: memref<1x256xf32, #tpu.memory_space<vmem>>, %arg10: memref<128x128xbf16, #tpu.memory_space<vmem>>, %arg11: memref<1x128xf32, #tpu.memory_space<vmem>>, %arg12: memref<1x16x128xbf16, #tpu.memory_space<vmem>>, %arg13: memref<1x16x128xbf16, #tpu.memory_space<vmem>>, %arg14: memref<1x16x128xbf16, #tpu.memory_space<vmem>>) attributes {dimension_semantics = [#tpu.dimension_semantics<parallel>, #tpu.dimension_semantics<parallel>], iteration_bounds = array<i64: 2, 2>, scalar_prefetch = 0 : i64, scratch_operands = 0 : i64, tpu.core_type = #tpu.core_type<tc>, window_params = [{transform_indices = @transform_0, window_bounds = array<i64: 1, 16, 128>}, {pipeline_mode = #tpu.pipeline_mode<synchronous>, transform_indices = @transform_1, window_bounds = array<i64: 1, 128>}, {pipeline_mode = #tpu.pipeline_mode<synchronous>, transform_indices = @transform_2, window_bounds = array<i64: 1, 128>}, {transform_indices = @transform_3, window_bounds = array<i64: 16, 128>}, {transform_indices = @transform_4, window_bounds = array<i64: 16, 128>}, {transform_indices = @transform_5, window_bounds = array<i64: 16, 128>}, {pipeline_mode = #tpu.pipeline_mode<synchronous>, transform_indices = @transform_6, window_bounds = array<i64: 128, 256>}, {pipeline_mode = #tpu.pipeline_mode<synchronous>, transform_indices = @transform_7, window_bounds = array<i64: 1, 256>}, {pipeline_mode = #tpu.pipeline_mode<synchronous>, transform_indices = @transform_8, window_bounds = array<i64: 128, 128>}, {pipeline_mode = #tpu.pipeline_mode<synchronous>, transform_indices = @transform_9, window_bounds = array<i64: 1, 128>}, {transform_indices = @transform_10, window_bounds = array<i64: 1, 16, 128>}, {transform_indices = @transform_11, window_bounds = array<i64: 1, 16, 128>}, {transform_indices = @transform_12, window_bounds = array<i64: 1, 16, 128>}]} {
    %c0 = arith.constant 0 : index
    %c0_0 = arith.constant 0 : index
    %c0_1 = arith.constant 0 : index
    %0 = vector.load %arg2[%c0, %c0_0, %c0_1] : memref<1x16x128xf32, #tpu.memory_space<vmem>>, vector<1x16x128xf32>
    %1 = vector.shape_cast %0 : vector<1x16x128xf32> to vector<16x128xf32>
    %cst = arith.constant dense<0.000000e+00> : vector<16xf32>
    %2 = vector.multi_reduction <add>, %1, %cst [1] : vector<16x128xf32> to vector<16xf32>
    %3 = vector.shape_cast %2 : vector<16xf32> to vector<16x1xf32>
    %cst_2 = arith.constant 1.280000e+02 : f32
    %4 = vector.broadcast %cst_2 : f32 to vector<16x1xf32>
    %5 = arith.divf %3, %4 : vector<16x1xf32>
    %6 = vector.broadcast %5 : vector<16x1xf32> to vector<16x128xf32>
    %7 = arith.subf %1, %6 : vector<16x128xf32>
    %8 = arith.mulf %7, %7 : vector<16x128xf32>
    %cst_3 = arith.constant dense<0.000000e+00> : vector<16xf32>
    %9 = vector.multi_reduction <add>, %8, %cst_3 [1] : vector<16x128xf32> to vector<16xf32>
    %10 = vector.shape_cast %9 : vector<16xf32> to vector<16x1xf32>
    %cst_4 = arith.constant 1.280000e+02 : f32
    %11 = vector.broadcast %cst_4 : f32 to vector<16x1xf32>
    %12 = arith.divf %10, %11 : vector<16x1xf32>
    %13 = vector.broadcast %5 : vector<16x1xf32> to vector<16x128xf32>
    %14 = arith.subf %1, %13 : vector<16x128xf32>
    %cst_5 = arith.constant 9.99999974E-6 : f32
    %15 = vector.broadcast %cst_5 : f32 to vector<16x1xf32>
    %16 = arith.addf %12, %15 : vector<16x1xf32>
    %17 = math.rsqrt %16 : vector<16x1xf32>
    %18 = vector.broadcast %17 : vector<16x1xf32> to vector<16x128xf32>
    %19 = arith.mulf %14, %18 : vector<16x128xf32>
    %c0_6 = arith.constant 0 : index
    %c0_7 = arith.constant 0 : index
    %20 = vector.load %arg3[%c0_6, %c0_7] : memref<1x128xf32, #tpu.memory_space<vmem>>, vector<1x128xf32>
    %21 = vector.broadcast %20 : vector<1x128xf32> to vector<16x128xf32>
    %22 = arith.mulf %19, %21 : vector<16x128xf32>
    %c0_8 = arith.constant 0 : index
    %c0_9 = arith.constant 0 : index
    %23 = vector.load %arg4[%c0_8, %c0_9] : memref<1x128xf32, #tpu.memory_space<vmem>>, vector<1x128xf32>
    %24 = vector.broadcast %23 : vector<1x128xf32> to vector<16x128xf32>
    %25 = arith.addf %22, %24 : vector<16x128xf32>
    %c0_10 = arith.constant 0 : index
    %c0_11 = arith.constant 0 : index
    %26 = vector.load %arg5[%c0_10, %c0_11] : memref<16x128xf32, #tpu.memory_space<vmem>>, vector<16x128xf32>
    %27 = arith.mulf %25, %26 : vector<16x128xf32>
    %c112_i32 = arith.constant 112 : i32
    %28 = tpu.dynamic_rotate %25 by %c112_i32 dim 1 : vector<16x128xf32>, i32 -> vector<16x128xf32>
    %c0_12 = arith.constant 0 : index
    %c0_13 = arith.constant 0 : index
    %29 = vector.load %arg6[%c0_12, %c0_13] : memref<16x128xf32, #tpu.memory_space<vmem>>, vector<16x128xf32>
    %30 = arith.mulf %28, %29 : vector<16x128xf32>
    %31 = arith.addf %27, %30 : vector<16x128xf32>
    %c16_i32 = arith.constant 16 : i32
    %32 = tpu.dynamic_rotate %25 by %c16_i32 dim 1 : vector<16x128xf32>, i32 -> vector<16x128xf32>
    %c0_14 = arith.constant 0 : index
    %c0_15 = arith.constant 0 : index
    %33 = vector.load %arg7[%c0_14, %c0_15] : memref<16x128xf32, #tpu.memory_space<vmem>>, vector<16x128xf32>
    %34 = arith.mulf %32, %33 : vector<16x128xf32>
    %35 = arith.addf %31, %34 : vector<16x128xf32>
    %36 = arith.truncf %35 : vector<16x128xf32> to vector<16x128xbf16>
    %c0_16 = arith.constant 0 : index
    %c0_17 = arith.constant 0 : index
    %37 = vector.load %arg8[%c0_16, %c0_17] : memref<128x256xbf16, #tpu.memory_space<vmem>>, vector<128x256xbf16>
    %cst_18 = arith.constant dense<0.000000e+00> : vector<16x256xf32>
    %38 = tpu.matmul %36, %37, %cst_18 {dimension_numbers = #tpu.dot_dimension_numbers<[1], [0], [0], [1], [0, 0, 1, 1], [], []>} : vector<16x128xbf16>, vector<128x256xbf16>, vector<16x256xf32> -> vector<16x256xf32>
    %c0_19 = arith.constant 0 : index
    %c0_20 = arith.constant 0 : index
    %39 = vector.load %arg9[%c0_19, %c0_20] : memref<1x256xf32, #tpu.memory_space<vmem>>, vector<1x256xf32>
    %40 = vector.broadcast %39 : vector<1x256xf32> to vector<16x256xf32>
    %41 = arith.addf %38, %40 : vector<16x256xf32>
    %42 = arith.truncf %25 : vector<16x128xf32> to vector<16x128xbf16>
    %c0_21 = arith.constant 0 : index
    %c0_22 = arith.constant 0 : index
    %43 = vector.load %arg10[%c0_21, %c0_22] : memref<128x128xbf16, #tpu.memory_space<vmem>>, vector<128x128xbf16>
    %cst_23 = arith.constant dense<0.000000e+00> : vector<16x128xf32>
    %44 = tpu.matmul %42, %43, %cst_23 {dimension_numbers = #tpu.dot_dimension_numbers<[1], [0], [0], [1], [0, 0, 1, 1], [], []>} : vector<16x128xbf16>, vector<128x128xbf16>, vector<16x128xf32> -> vector<16x128xf32>
    %c0_24 = arith.constant 0 : index
    %c0_25 = arith.constant 0 : index
    %45 = vector.load %arg11[%c0_24, %c0_25] : memref<1x128xf32, #tpu.memory_space<vmem>>, vector<1x128xf32>
    %46 = vector.broadcast %45 : vector<1x128xf32> to vector<16x128xf32>
    %47 = arith.addf %44, %46 : vector<16x128xf32>
    %48 = vector.extract_strided_slice %41 {offsets = [0, 0], sizes = [16, 128], strides = [1, 1]} : vector<16x256xf32> to vector<16x128xf32>
    %49 = arith.truncf %48 : vector<16x128xf32> to vector<16x128xbf16>
    %c0_26 = arith.constant 0 : index
    %c0_27 = arith.constant 0 : index
    %c0_28 = arith.constant 0 : index
    %50 = vector.load %arg12[%c0_26, %c0_27, %c0_28] : memref<1x16x128xbf16, #tpu.memory_space<vmem>>, vector<1x16x128xbf16>
    %51 = vector.shape_cast %50 : vector<1x16x128xbf16> to vector<16x128xbf16>
    %52 = vector.shape_cast %49 : vector<16x128xbf16> to vector<1x16x128xbf16>
    tpu.vector_store %arg12[%c0_26, %c0_27, %c0_28], %52 {strides = array<i32>} : memref<1x16x128xbf16, #tpu.memory_space<vmem>>, vector<1x16x128xbf16>,
    %53 = vector.extract_strided_slice %41 {offsets = [0, 128], sizes = [16, 128], strides = [1, 1]} : vector<16x256xf32> to vector<16x128xf32>
    %54 = arith.truncf %53 : vector<16x128xf32> to vector<16x128xbf16>
    %c0_29 = arith.constant 0 : index
    %c0_30 = arith.constant 0 : index
    %c0_31 = arith.constant 0 : index
    %55 = vector.load %arg13[%c0_29, %c0_30, %c0_31] : memref<1x16x128xbf16, #tpu.memory_space<vmem>>, vector<1x16x128xbf16>
    %56 = vector.shape_cast %55 : vector<1x16x128xbf16> to vector<16x128xbf16>
    %57 = vector.shape_cast %54 : vector<16x128xbf16> to vector<1x16x128xbf16>
    tpu.vector_store %arg13[%c0_29, %c0_30, %c0_31], %57 {strides = array<i32>} : memref<1x16x128xbf16, #tpu.memory_space<vmem>>, vector<1x16x128xbf16>,
    %58 = arith.truncf %47 : vector<16x128xf32> to vector<16x128xbf16>
    %c0_32 = arith.constant 0 : index
    %c0_33 = arith.constant 0 : index
    %c0_34 = arith.constant 0 : index
    %59 = vector.load %arg14[%c0_32, %c0_33, %c0_34] : memref<1x16x128xbf16, #tpu.memory_space<vmem>>, vector<1x16x128xbf16>
    %60 = vector.shape_cast %59 : vector<1x16x128xbf16> to vector<16x128xbf16>
    %61 = vector.shape_cast %58 : vector<16x128xbf16> to vector<1x16x128xbf16>
    tpu.vector_store %arg14[%c0_32, %c0_33, %c0_34], %61 {strides = array<i32>} : memref<1x16x128xbf16, #tpu.memory_space<vmem>>, vector<1x16x128xbf16>,
    return
  }
  func.func @transform_0(%arg0: i32, %arg1: i32) -> (i32, i32, i32) {
    %c0_i32 = arith.constant 0 : i32
    %c0_i32_0 = arith.constant 0 : i32
    return %arg0, %arg1, %c0_i32 : i32, i32, i32
  }
  func.func @transform_1(%arg0: i32, %arg1: i32) -> (i32, i32) {
    %c0_i32 = arith.constant 0 : i32
    %c0_i32_0 = arith.constant 0 : i32
    %c0_i32_1 = arith.constant 0 : i32
    return %c0_i32, %c0_i32_0 : i32, i32
  }
  func.func @transform_2(%arg0: i32, %arg1: i32) -> (i32, i32) {
    %c0_i32 = arith.constant 0 : i32
    %c0_i32_0 = arith.constant 0 : i32
    %c0_i32_1 = arith.constant 0 : i32
    return %c0_i32, %c0_i32_0 : i32, i32
  }
  func.func @transform_3(%arg0: i32, %arg1: i32) -> (i32, i32) {
    %c0_i32 = arith.constant 0 : i32
    %c0_i32_0 = arith.constant 0 : i32
    return %arg1, %c0_i32 : i32, i32
  }
  func.func @transform_4(%arg0: i32, %arg1: i32) -> (i32, i32) {
    %c0_i32 = arith.constant 0 : i32
    %c0_i32_0 = arith.constant 0 : i32
    return %arg1, %c0_i32 : i32, i32
  }
  func.func @transform_5(%arg0: i32, %arg1: i32) -> (i32, i32) {
    %c0_i32 = arith.constant 0 : i32
    %c0_i32_0 = arith.constant 0 : i32
    return %arg1, %c0_i32 : i32, i32
  }
  func.func @transform_6(%arg0: i32, %arg1: i32) -> (i32, i32) {
    %c0_i32 = arith.constant 0 : i32
    %c0_i32_0 = arith.constant 0 : i32
    %c0_i32_1 = arith.constant 0 : i32
    return %c0_i32, %c0_i32_0 : i32, i32
  }
  func.func @transform_7(%arg0: i32, %arg1: i32) -> (i32, i32) {
    %c0_i32 = arith.constant 0 : i32
    %c0_i32_0 = arith.constant 0 : i32
    %c0_i32_1 = arith.constant 0 : i32
    return %c0_i32, %c0_i32_0 : i32, i32
  }
  func.func @transform_8(%arg0: i32, %arg1: i32) -> (i32, i32) {
    %c0_i32 = arith.constant 0 : i32
    %c0_i32_0 = arith.constant 0 : i32
    %c0_i32_1 = arith.constant 0 : i32
    return %c0_i32, %c0_i32_0 : i32, i32
  }
  func.func @transform_9(%arg0: i32, %arg1: i32) -> (i32, i32) {
    %c0_i32 = arith.constant 0 : i32
    %c0_i32_0 = arith.constant 0 : i32
    %c0_i32_1 = arith.constant 0 : i32
    return %c0_i32, %c0_i32_0 : i32, i32
  }
  func.func @transform_10(%arg0: i32, %arg1: i32) -> (i32, i32, i32) {
    %c0_i32 = arith.constant 0 : i32
    %c0_i32_0 = arith.constant 0 : i32
    return %arg0, %arg1, %c0_i32 : i32, i32, i32
  }
  func.func @transform_11(%arg0: i32, %arg1: i32) -> (i32, i32, i32) {
    %c0_i32 = arith.constant 0 : i32
    %c0_i32_0 = arith.constant 0 : i32
    return %arg0, %arg1, %c0_i32 : i32, i32, i32
  }
  func.func @transform_12(%arg0: i32, %arg1: i32) -> (i32, i32, i32) {
    %c0_i32 = arith.constant 0 : i32
    %c0_i32_0 = arith.constant 0 : i32
    return %arg0, %arg1, %c0_i32 : i32, i32, i32
  }
}

module attributes {stable_mosaic.version = 11 : i64} {
  func.func @_flash_attn_kernel(%arg0: i32, %arg1: i32, %arg2: i32, %arg3: memref<2xi32, #tpu.memory_space<smem>>, %arg4: memref<1x16x128xbf16, #tpu.memory_space<vmem>>, %arg5: memref<1x16x128xbf16, #tpu.memory_space<vmem>>, %arg6: memref<1x16x128xbf16, #tpu.memory_space<vmem>>, %arg7: memref<1x16x128xf32, #tpu.memory_space<vmem>>, %arg8: memref<128x128xbf16, #tpu.memory_space<vmem>>, %arg9: memref<1x128xf32, #tpu.memory_space<vmem>>, %arg10: memref<1x16x128xf32, #tpu.memory_space<vmem>>, %arg11: memref<16x4xf32, #tpu.memory_space<vmem>>, %arg12: memref<16x128xf32, #tpu.memory_space<vmem>>, %arg13: memref<16x128xf32, #tpu.memory_space<vmem>>) attributes {dimension_semantics = [#tpu.dimension_semantics<parallel>, #tpu.dimension_semantics<parallel>, #tpu.dimension_semantics<arbitrary>], iteration_bounds = array<i64: 2, 2, 2>, scalar_prefetch = 1 : i64, scratch_operands = 3 : i64, tpu.core_type = #tpu.core_type<tc>, window_params = [{transform_indices = @transform_0, window_bounds = array<i64: 1, 16, 128>}, {transform_indices = @transform_1, window_bounds = array<i64: 1, 16, 128>}, {transform_indices = @transform_2, window_bounds = array<i64: 1, 16, 128>}, {transform_indices = @transform_3, window_bounds = array<i64: 1, 16, 128>}, {pipeline_mode = #tpu.pipeline_mode<synchronous>, transform_indices = @transform_4, window_bounds = array<i64: 128, 128>}, {pipeline_mode = #tpu.pipeline_mode<synchronous>, transform_indices = @transform_5, window_bounds = array<i64: 1, 128>}, {transform_indices = @transform_6, window_bounds = array<i64: 1, 16, 128>}]} {
    %c0_i32 = arith.constant 0 : i32
    %0 = arith.cmpi eq, %arg2, %c0_i32 : i32
    %1 = arith.extui %0 : i1 to i32
    %c0_i32_0 = arith.constant 0 : i32
    %2 = arith.cmpi ne, %1, %c0_i32_0 : i32
    scf.if %2 {
      %cst = arith.constant 0xFF800000 : f32
      %23 = vector.broadcast %cst : f32 to vector<16x4xf32>
      %c0 = arith.constant 0 : index
      %c0_7 = arith.constant 0 : index
      %24 = vector.load %arg11[%c0, %c0_7] : memref<16x4xf32, #tpu.memory_space<vmem>>, vector<16x4xf32>
      tpu.vector_store %arg11[%c0, %c0_7], %23 {strides = array<i32>} : memref<16x4xf32, #tpu.memory_space<vmem>>, vector<16x4xf32>,
      %cst_8 = arith.constant 0.000000e+00 : f32
      %25 = vector.broadcast %cst_8 : f32 to vector<16x128xf32>
      %c0_9 = arith.constant 0 : index
      %c0_10 = arith.constant 0 : index
      %26 = vector.load %arg12[%c0_9, %c0_10] : memref<16x128xf32, #tpu.memory_space<vmem>>, vector<16x128xf32>
      tpu.vector_store %arg12[%c0_9, %c0_10], %25 {strides = array<i32>} : memref<16x128xf32, #tpu.memory_space<vmem>>, vector<16x128xf32>,
      %cst_11 = arith.constant 0.000000e+00 : f32
      %27 = vector.broadcast %cst_11 : f32 to vector<16x128xf32>
      %c0_12 = arith.constant 0 : index
      %c0_13 = arith.constant 0 : index
      %28 = vector.load %arg13[%c0_12, %c0_13] : memref<16x128xf32, #tpu.memory_space<vmem>>, vector<16x128xf32>
      tpu.vector_store %arg13[%c0_12, %c0_13], %27 {strides = array<i32>} : memref<16x128xf32, #tpu.memory_space<vmem>>, vector<16x128xf32>,
    } else {
    }
    %3 = arith.index_cast %arg0 : i32 to index
    %4 = memref.load %arg3[%3] : memref<2xi32, #tpu.memory_space<smem>>
    %c16_i32 = arith.constant 16 : i32
    %5 = arith.muli %arg1, %c16_i32 : i32
    %c16_i32_1 = arith.constant 16 : i32
    %6 = arith.muli %arg2, %c16_i32_1 : i32
    %c16_i32_2 = arith.constant 16 : i32
    %7 = arith.addi %5, %c16_i32_2 : i32
    %8 = arith.cmpi sle, %7, %4 : i32
    %c16_i32_3 = arith.constant 16 : i32
    %9 = arith.addi %6, %c16_i32_3 : i32
    %10 = arith.cmpi sle, %9, %4 : i32
    %11 = arith.andi %8, %10 : i1
    %12 = arith.cmpi slt, %6, %4 : i32
    %13 = arith.andi %12, %11 : i1
    %14 = arith.extui %13 : i1 to i32
    %c0_i32_4 = arith.constant 0 : i32
    %15 = arith.cmpi ne, %14, %c0_i32_4 : i32
    scf.if %15 {
      %c0 = arith.constant 0 : index
      %c0_7 = arith.constant 0 : index
      %c0_8 = arith.constant 0 : index
      %23 = vector.load %arg4[%c0, %c0_7, %c0_8] : memref<1x16x128xbf16, #tpu.memory_space<vmem>>, vector<1x16x128xbf16>
      %24 = vector.shape_cast %23 : vector<1x16x128xbf16> to vector<16x128xbf16>
      %c0_9 = arith.constant 0 : index
      %c0_10 = arith.constant 0 : index
      %c0_11 = arith.constant 0 : index
      %25 = vector.load %arg5[%c0_9, %c0_10, %c0_11] : memref<1x16x128xbf16, #tpu.memory_space<vmem>>, vector<1x16x128xbf16>
      %26 = vector.shape_cast %25 : vector<1x16x128xbf16> to vector<16x128xbf16>
      %c0_12 = arith.constant 0 : index
      %c0_13 = arith.constant 0 : index
      %c0_14 = arith.constant 0 : index
      %27 = vector.load %arg6[%c0_12, %c0_13, %c0_14] : memref<1x16x128xbf16, #tpu.memory_space<vmem>>, vector<1x16x128xbf16>
      %28 = vector.shape_cast %27 : vector<1x16x128xbf16> to vector<16x128xbf16>
      %29 = vector.extract_strided_slice %24 {offsets = [0, 0], sizes = [16, 32], strides = [1, 1]} : vector<16x128xbf16> to vector<16x32xbf16>
      %30 = vector.extract_strided_slice %26 {offsets = [0, 0], sizes = [16, 32], strides = [1, 1]} : vector<16x128xbf16> to vector<16x32xbf16>
      %cst = arith.constant dense<0.000000e+00> : vector<16x16xf32>
      %31 = tpu.matmul %29, %30, %cst {dimension_numbers = #tpu.dot_dimension_numbers<[1], [1], [0], [0], [0, 0, 1, 0], [], []>} : vector<16x32xbf16>, vector<16x32xbf16>, vector<16x16xf32> -> vector<16x16xf32>
      %c0_15 = arith.constant 0 : index
      %c0_16 = arith.constant 0 : index
      %32 = vector.load %arg11[%c0_15, %c0_16] : memref<16x4xf32, #tpu.memory_space<vmem>>, vector<16x1xf32>
      %cst_17 = arith.constant dense<0xFF800000> : vector<16xf32>
      %33 = vector.multi_reduction <maximumf>, %31, %cst_17 [1] : vector<16x16xf32> to vector<16xf32>
      %34 = vector.shape_cast %33 : vector<16xf32> to vector<16x1xf32>
      %35 = arith.maximumf %32, %34 : vector<16x1xf32>
      %36 = arith.subf %32, %35 : vector<16x1xf32>
      %37 = math.exp %36 : vector<16x1xf32>
      %38 = vector.broadcast %35 : vector<16x1xf32> to vector<16x16xf32>
      %39 = arith.subf %31, %38 : vector<16x16xf32>
      %40 = math.exp %39 : vector<16x16xf32>
      %c0_18 = arith.constant 0 : index
      %c0_19 = arith.constant 0 : index
      %41 = vector.load %arg12[%c0_18, %c0_19] : memref<16x128xf32, #tpu.memory_space<vmem>>, vector<16x32xf32>
      %42 = vector.broadcast %37 : vector<16x1xf32> to vector<16x32xf32>
      %43 = arith.mulf %42, %41 : vector<16x32xf32>
      %cst_20 = arith.constant dense<0.000000e+00> : vector<16xf32>
      %44 = vector.multi_reduction <add>, %40, %cst_20 [1] : vector<16x16xf32> to vector<16xf32>
      %45 = vector.shape_cast %44 : vector<16xf32> to vector<16x1xf32>
      %46 = vector.broadcast %45 : vector<16x1xf32> to vector<16x32xf32>
      %47 = arith.addf %43, %46 : vector<16x32xf32>
      %c0_21 = arith.constant 0 : index
      %c0_22 = arith.constant 0 : index
      %48 = vector.load %arg12[%c0_21, %c0_22] : memref<16x128xf32, #tpu.memory_space<vmem>>, vector<16x32xf32>
      tpu.vector_store %arg12[%c0_21, %c0_22], %47 {strides = array<i32>} : memref<16x128xf32, #tpu.memory_space<vmem>>, vector<16x32xf32>,
      %c0_23 = arith.constant 0 : index
      %c0_24 = arith.constant 0 : index
      %49 = vector.load %arg13[%c0_23, %c0_24] : memref<16x128xf32, #tpu.memory_space<vmem>>, vector<16x32xf32>
      %50 = vector.broadcast %37 : vector<16x1xf32> to vector<16x32xf32>
      %51 = arith.mulf %50, %49 : vector<16x32xf32>
      %52 = arith.truncf %40 : vector<16x16xf32> to vector<16x16xbf16>
      %53 = vector.extract_strided_slice %28 {offsets = [0, 0], sizes = [16, 32], strides = [1, 1]} : vector<16x128xbf16> to vector<16x32xbf16>
      %cst_25 = arith.constant dense<0.000000e+00> : vector<16x32xf32>
      %54 = tpu.matmul %52, %53, %cst_25 {dimension_numbers = #tpu.dot_dimension_numbers<[1], [0], [0], [1], [0, 0, 1, 1], [], []>} : vector<16x16xbf16>, vector<16x32xbf16>, vector<16x32xf32> -> vector<16x32xf32>
      %55 = arith.addf %51, %54 : vector<16x32xf32>
      %c0_26 = arith.constant 0 : index
      %c0_27 = arith.constant 0 : index
      %56 = vector.load %arg13[%c0_26, %c0_27] : memref<16x128xf32, #tpu.memory_space<vmem>>, vector<16x32xf32>
      tpu.vector_store %arg13[%c0_26, %c0_27], %55 {strides = array<i32>} : memref<16x128xf32, #tpu.memory_space<vmem>>, vector<16x32xf32>,
      %c0_28 = arith.constant 0 : index
      %c0_29 = arith.constant 0 : index
      %57 = vector.load %arg11[%c0_28, %c0_29] : memref<16x4xf32, #tpu.memory_space<vmem>>, vector<16x1xf32>
      tpu.vector_store %arg11[%c0_28, %c0_29], %35 {strides = array<i32>} : memref<16x4xf32, #tpu.memory_space<vmem>>, vector<16x1xf32>,
      %58 = vector.extract_strided_slice %24 {offsets = [0, 32], sizes = [16, 32], strides = [1, 1]} : vector<16x128xbf16> to vector<16x32xbf16>
      %59 = vector.extract_strided_slice %26 {offsets = [0, 32], sizes = [16, 32], strides = [1, 1]} : vector<16x128xbf16> to vector<16x32xbf16>
      %cst_30 = arith.constant dense<0.000000e+00> : vector<16x16xf32>
      %60 = tpu.matmul %58, %59, %cst_30 {dimension_numbers = #tpu.dot_dimension_numbers<[1], [1], [0], [0], [0, 0, 1, 0], [], []>} : vector<16x32xbf16>, vector<16x32xbf16>, vector<16x16xf32> -> vector<16x16xf32>
      %c0_31 = arith.constant 0 : index
      %c1 = arith.constant 1 : index
      %61 = vector.load %arg11[%c0_31, %c1] : memref<16x4xf32, #tpu.memory_space<vmem>>, vector<16x1xf32>
      %cst_32 = arith.constant dense<0xFF800000> : vector<16xf32>
      %62 = vector.multi_reduction <maximumf>, %60, %cst_32 [1] : vector<16x16xf32> to vector<16xf32>
      %63 = vector.shape_cast %62 : vector<16xf32> to vector<16x1xf32>
      %64 = arith.maximumf %61, %63 : vector<16x1xf32>
      %65 = arith.subf %61, %64 : vector<16x1xf32>
      %66 = math.exp %65 : vector<16x1xf32>
      %67 = vector.broadcast %64 : vector<16x1xf32> to vector<16x16xf32>
      %68 = arith.subf %60, %67 : vector<16x16xf32>
      %69 = math.exp %68 : vector<16x16xf32>
      %c0_33 = arith.constant 0 : index
      %c32 = arith.constant 32 : index
      %70 = vector.load %arg12[%c0_33, %c32] : memref<16x128xf32, #tpu.memory_space<vmem>>, vector<16x32xf32>
      %71 = vector.broadcast %66 : vector<16x1xf32> to vector<16x32xf32>
      %72 = arith.mulf %71, %70 : vector<16x32xf32>
      %cst_34 = arith.constant dense<0.000000e+00> : vector<16xf32>
      %73 = vector.multi_reduction <add>, %69, %cst_34 [1] : vector<16x16xf32> to vector<16xf32>
      %74 = vector.shape_cast %73 : vector<16xf32> to vector<16x1xf32>
      %75 = vector.broadcast %74 : vector<16x1xf32> to vector<16x32xf32>
      %76 = arith.addf %72, %75 : vector<16x32xf32>
      %c0_35 = arith.constant 0 : index
      %c32_36 = arith.constant 32 : index
      %77 = vector.load %arg12[%c0_35, %c32_36] : memref<16x128xf32, #tpu.memory_space<vmem>>, vector<16x32xf32>
      tpu.vector_store %arg12[%c0_35, %c32_36], %76 {strides = array<i32>} : memref<16x128xf32, #tpu.memory_space<vmem>>, vector<16x32xf32>,
      %c0_37 = arith.constant 0 : index
      %c32_38 = arith.constant 32 : index
      %78 = vector.load %arg13[%c0_37, %c32_38] : memref<16x128xf32, #tpu.memory_space<vmem>>, vector<16x32xf32>
      %79 = vector.broadcast %66 : vector<16x1xf32> to vector<16x32xf32>
      %80 = arith.mulf %79, %78 : vector<16x32xf32>
      %81 = arith.truncf %69 : vector<16x16xf32> to vector<16x16xbf16>
      %82 = vector.extract_strided_slice %28 {offsets = [0, 32], sizes = [16, 32], strides = [1, 1]} : vector<16x128xbf16> to vector<16x32xbf16>
      %cst_39 = arith.constant dense<0.000000e+00> : vector<16x32xf32>
      %83 = tpu.matmul %81, %82, %cst_39 {dimension_numbers = #tpu.dot_dimension_numbers<[1], [0], [0], [1], [0, 0, 1, 1], [], []>} : vector<16x16xbf16>, vector<16x32xbf16>, vector<16x32xf32> -> vector<16x32xf32>
      %84 = arith.addf %80, %83 : vector<16x32xf32>
      %c0_40 = arith.constant 0 : index
      %c32_41 = arith.constant 32 : index
      %85 = vector.load %arg13[%c0_40, %c32_41] : memref<16x128xf32, #tpu.memory_space<vmem>>, vector<16x32xf32>
      tpu.vector_store %arg13[%c0_40, %c32_41], %84 {strides = array<i32>} : memref<16x128xf32, #tpu.memory_space<vmem>>, vector<16x32xf32>,
      %c0_42 = arith.constant 0 : index
      %c1_43 = arith.constant 1 : index
      %86 = vector.load %arg11[%c0_42, %c1_43] : memref<16x4xf32, #tpu.memory_space<vmem>>, vector<16x1xf32>
      tpu.vector_store %arg11[%c0_42, %c1_43], %64 {strides = array<i32>} : memref<16x4xf32, #tpu.memory_space<vmem>>, vector<16x1xf32>,
      %87 = vector.extract_strided_slice %24 {offsets = [0, 64], sizes = [16, 32], strides = [1, 1]} : vector<16x128xbf16> to vector<16x32xbf16>
      %88 = vector.extract_strided_slice %26 {offsets = [0, 64], sizes = [16, 32], strides = [1, 1]} : vector<16x128xbf16> to vector<16x32xbf16>
      %cst_44 = arith.constant dense<0.000000e+00> : vector<16x16xf32>
      %89 = tpu.matmul %87, %88, %cst_44 {dimension_numbers = #tpu.dot_dimension_numbers<[1], [1], [0], [0], [0, 0, 1, 0], [], []>} : vector<16x32xbf16>, vector<16x32xbf16>, vector<16x16xf32> -> vector<16x16xf32>
      %c0_45 = arith.constant 0 : index
      %c2 = arith.constant 2 : index
      %90 = vector.load %arg11[%c0_45, %c2] : memref<16x4xf32, #tpu.memory_space<vmem>>, vector<16x1xf32>
      %cst_46 = arith.constant dense<0xFF800000> : vector<16xf32>
      %91 = vector.multi_reduction <maximumf>, %89, %cst_46 [1] : vector<16x16xf32> to vector<16xf32>
      %92 = vector.shape_cast %91 : vector<16xf32> to vector<16x1xf32>
      %93 = arith.maximumf %90, %92 : vector<16x1xf32>
      %94 = arith.subf %90, %93 : vector<16x1xf32>
      %95 = math.exp %94 : vector<16x1xf32>
      %96 = vector.broadcast %93 : vector<16x1xf32> to vector<16x16xf32>
      %97 = arith.subf %89, %96 : vector<16x16xf32>
      %98 = math.exp %97 : vector<16x16xf32>
      %c0_47 = arith.constant 0 : index
      %c64 = arith.constant 64 : index
      %99 = vector.load %arg12[%c0_47, %c64] : memref<16x128xf32, #tpu.memory_space<vmem>>, vector<16x32xf32>
      %100 = vector.broadcast %95 : vector<16x1xf32> to vector<16x32xf32>
      %101 = arith.mulf %100, %99 : vector<16x32xf32>
      %cst_48 = arith.constant dense<0.000000e+00> : vector<16xf32>
      %102 = vector.multi_reduction <add>, %98, %cst_48 [1] : vector<16x16xf32> to vector<16xf32>
      %103 = vector.shape_cast %102 : vector<16xf32> to vector<16x1xf32>
      %104 = vector.broadcast %103 : vector<16x1xf32> to vector<16x32xf32>
      %105 = arith.addf %101, %104 : vector<16x32xf32>
      %c0_49 = arith.constant 0 : index
      %c64_50 = arith.constant 64 : index
      %106 = vector.load %arg12[%c0_49, %c64_50] : memref<16x128xf32, #tpu.memory_space<vmem>>, vector<16x32xf32>
      tpu.vector_store %arg12[%c0_49, %c64_50], %105 {strides = array<i32>} : memref<16x128xf32, #tpu.memory_space<vmem>>, vector<16x32xf32>,
      %c0_51 = arith.constant 0 : index
      %c64_52 = arith.constant 64 : index
      %107 = vector.load %arg13[%c0_51, %c64_52] : memref<16x128xf32, #tpu.memory_space<vmem>>, vector<16x32xf32>
      %108 = vector.broadcast %95 : vector<16x1xf32> to vector<16x32xf32>
      %109 = arith.mulf %108, %107 : vector<16x32xf32>
      %110 = arith.truncf %98 : vector<16x16xf32> to vector<16x16xbf16>
      %111 = vector.extract_strided_slice %28 {offsets = [0, 64], sizes = [16, 32], strides = [1, 1]} : vector<16x128xbf16> to vector<16x32xbf16>
      %cst_53 = arith.constant dense<0.000000e+00> : vector<16x32xf32>
      %112 = tpu.matmul %110, %111, %cst_53 {dimension_numbers = #tpu.dot_dimension_numbers<[1], [0], [0], [1], [0, 0, 1, 1], [], []>} : vector<16x16xbf16>, vector<16x32xbf16>, vector<16x32xf32> -> vector<16x32xf32>
      %113 = arith.addf %109, %112 : vector<16x32xf32>
      %c0_54 = arith.constant 0 : index
      %c64_55 = arith.constant 64 : index
      %114 = vector.load %arg13[%c0_54, %c64_55] : memref<16x128xf32, #tpu.memory_space<vmem>>, vector<16x32xf32>
      tpu.vector_store %arg13[%c0_54, %c64_55], %113 {strides = array<i32>} : memref<16x128xf32, #tpu.memory_space<vmem>>, vector<16x32xf32>,
      %c0_56 = arith.constant 0 : index
      %c2_57 = arith.constant 2 : index
      %115 = vector.load %arg11[%c0_56, %c2_57] : memref<16x4xf32, #tpu.memory_space<vmem>>, vector<16x1xf32>
      tpu.vector_store %arg11[%c0_56, %c2_57], %93 {strides = array<i32>} : memref<16x4xf32, #tpu.memory_space<vmem>>, vector<16x1xf32>,
      %116 = vector.extract_strided_slice %24 {offsets = [0, 96], sizes = [16, 32], strides = [1, 1]} : vector<16x128xbf16> to vector<16x32xbf16>
      %117 = vector.extract_strided_slice %26 {offsets = [0, 96], sizes = [16, 32], strides = [1, 1]} : vector<16x128xbf16> to vector<16x32xbf16>
      %cst_58 = arith.constant dense<0.000000e+00> : vector<16x16xf32>
      %118 = tpu.matmul %116, %117, %cst_58 {dimension_numbers = #tpu.dot_dimension_numbers<[1], [1], [0], [0], [0, 0, 1, 0], [], []>} : vector<16x32xbf16>, vector<16x32xbf16>, vector<16x16xf32> -> vector<16x16xf32>
      %c0_59 = arith.constant 0 : index
      %c3 = arith.constant 3 : index
      %119 = vector.load %arg11[%c0_59, %c3] : memref<16x4xf32, #tpu.memory_space<vmem>>, vector<16x1xf32>
      %cst_60 = arith.constant dense<0xFF800000> : vector<16xf32>
      %120 = vector.multi_reduction <maximumf>, %118, %cst_60 [1] : vector<16x16xf32> to vector<16xf32>
      %121 = vector.shape_cast %120 : vector<16xf32> to vector<16x1xf32>
      %122 = arith.maximumf %119, %121 : vector<16x1xf32>
      %123 = arith.subf %119, %122 : vector<16x1xf32>
      %124 = math.exp %123 : vector<16x1xf32>
      %125 = vector.broadcast %122 : vector<16x1xf32> to vector<16x16xf32>
      %126 = arith.subf %118, %125 : vector<16x16xf32>
      %127 = math.exp %126 : vector<16x16xf32>
      %c0_61 = arith.constant 0 : index
      %c96 = arith.constant 96 : index
      %128 = vector.load %arg12[%c0_61, %c96] : memref<16x128xf32, #tpu.memory_space<vmem>>, vector<16x32xf32>
      %129 = vector.broadcast %124 : vector<16x1xf32> to vector<16x32xf32>
      %130 = arith.mulf %129, %128 : vector<16x32xf32>
      %cst_62 = arith.constant dense<0.000000e+00> : vector<16xf32>
      %131 = vector.multi_reduction <add>, %127, %cst_62 [1] : vector<16x16xf32> to vector<16xf32>
      %132 = vector.shape_cast %131 : vector<16xf32> to vector<16x1xf32>
      %133 = vector.broadcast %132 : vector<16x1xf32> to vector<16x32xf32>
      %134 = arith.addf %130, %133 : vector<16x32xf32>
      %c0_63 = arith.constant 0 : index
      %c96_64 = arith.constant 96 : index
      %135 = vector.load %arg12[%c0_63, %c96_64] : memref<16x128xf32, #tpu.memory_space<vmem>>, vector<16x32xf32>
      tpu.vector_store %arg12[%c0_63, %c96_64], %134 {strides = array<i32>} : memref<16x128xf32, #tpu.memory_space<vmem>>, vector<16x32xf32>,
      %c0_65 = arith.constant 0 : index
      %c96_66 = arith.constant 96 : index
      %136 = vector.load %arg13[%c0_65, %c96_66] : memref<16x128xf32, #tpu.memory_space<vmem>>, vector<16x32xf32>
      %137 = vector.broadcast %124 : vector<16x1xf32> to vector<16x32xf32>
      %138 = arith.mulf %137, %136 : vector<16x32xf32>
      %139 = arith.truncf %127 : vector<16x16xf32> to vector<16x16xbf16>
      %140 = vector.extract_strided_slice %28 {offsets = [0, 96], sizes = [16, 32], strides = [1, 1]} : vector<16x128xbf16> to vector<16x32xbf16>
      %cst_67 = arith.constant dense<0.000000e+00> : vector<16x32xf32>
      %141 = tpu.matmul %139, %140, %cst_67 {dimension_numbers = #tpu.dot_dimension_numbers<[1], [0], [0], [1], [0, 0, 1, 1], [], []>} : vector<16x16xbf16>, vector<16x32xbf16>, vector<16x32xf32> -> vector<16x32xf32>
      %142 = arith.addf %138, %141 : vector<16x32xf32>
      %c0_68 = arith.constant 0 : index
      %c96_69 = arith.constant 96 : index
      %143 = vector.load %arg13[%c0_68, %c96_69] : memref<16x128xf32, #tpu.memory_space<vmem>>, vector<16x32xf32>
      tpu.vector_store %arg13[%c0_68, %c96_69], %142 {strides = array<i32>} : memref<16x128xf32, #tpu.memory_space<vmem>>, vector<16x32xf32>,
      %c0_70 = arith.constant 0 : index
      %c3_71 = arith.constant 3 : index
      %144 = vector.load %arg11[%c0_70, %c3_71] : memref<16x4xf32, #tpu.memory_space<vmem>>, vector<16x1xf32>
      tpu.vector_store %arg11[%c0_70, %c3_71], %122 {strides = array<i32>} : memref<16x4xf32, #tpu.memory_space<vmem>>, vector<16x1xf32>,
    } else {
    }
    %true = arith.constant true
    %16 = arith.xori %11, %true : i1
    %17 = arith.andi %12, %16 : i1
    %18 = arith.extui %17 : i1 to i32
    %c0_i32_5 = arith.constant 0 : i32
    %19 = arith.cmpi ne, %18, %c0_i32_5 : i32
    scf.if %19 {
      %c0 = arith.constant 0 : index
      %c0_7 = arith.constant 0 : index
      %c0_8 = arith.constant 0 : index
      %23 = vector.load %arg4[%c0, %c0_7, %c0_8] : memref<1x16x128xbf16, #tpu.memory_space<vmem>>, vector<1x16x128xbf16>
      %24 = vector.shape_cast %23 : vector<1x16x128xbf16> to vector<16x128xbf16>
      %c0_9 = arith.constant 0 : index
      %c0_10 = arith.constant 0 : index
      %c0_11 = arith.constant 0 : index
      %25 = vector.load %arg5[%c0_9, %c0_10, %c0_11] : memref<1x16x128xbf16, #tpu.memory_space<vmem>>, vector<1x16x128xbf16>
      %26 = vector.shape_cast %25 : vector<1x16x128xbf16> to vector<16x128xbf16>
      %c0_12 = arith.constant 0 : index
      %c0_13 = arith.constant 0 : index
      %c0_14 = arith.constant 0 : index
      %27 = vector.load %arg6[%c0_12, %c0_13, %c0_14] : memref<1x16x128xbf16, #tpu.memory_space<vmem>>, vector<1x16x128xbf16>
      %28 = vector.shape_cast %27 : vector<1x16x128xbf16> to vector<16x128xbf16>
      %29 = tpu.iota {dimensions = array<i32: 0>} : vector<16x16xi32>
      %30 = vector.broadcast %5 : i32 to vector<16x16xi32>
      %31 = arith.addi %30, %29 : vector<16x16xi32>
      %32 = tpu.iota {dimensions = array<i32: 1>} : vector<16x16xi32>
      %33 = vector.broadcast %6 : i32 to vector<16x16xi32>
      %34 = arith.addi %33, %32 : vector<16x16xi32>
      %35 = vector.broadcast %4 : i32 to vector<16x16xi32>
      %36 = arith.cmpi sge, %31, %35 : vector<16x16xi32>
      %37 = vector.broadcast %4 : i32 to vector<16x16xi32>
      %38 = arith.cmpi sge, %34, %37 : vector<16x16xi32>
      %39 = arith.ori %36, %38 : vector<16x16xi1>
      %40 = vector.extract_strided_slice %24 {offsets = [0, 0], sizes = [16, 32], strides = [1, 1]} : vector<16x128xbf16> to vector<16x32xbf16>
      %41 = vector.extract_strided_slice %26 {offsets = [0, 0], sizes = [16, 32], strides = [1, 1]} : vector<16x128xbf16> to vector<16x32xbf16>
      %cst = arith.constant dense<0.000000e+00> : vector<16x16xf32>
      %42 = tpu.matmul %40, %41, %cst {dimension_numbers = #tpu.dot_dimension_numbers<[1], [1], [0], [0], [0, 0, 1, 0], [], []>} : vector<16x32xbf16>, vector<16x32xbf16>, vector<16x16xf32> -> vector<16x16xf32>
      %cst_15 = arith.constant -1.000000e+04 : f32
      %43 = vector.broadcast %cst_15 : f32 to vector<16x16xf32>
      %44 = arith.select %39, %43, %42 : vector<16x16xi1>, vector<16x16xf32>
      %c0_16 = arith.constant 0 : index
      %c0_17 = arith.constant 0 : index
      %45 = vector.load %arg11[%c0_16, %c0_17] : memref<16x4xf32, #tpu.memory_space<vmem>>, vector<16x1xf32>
      %cst_18 = arith.constant dense<0xFF800000> : vector<16xf32>
      %46 = vector.multi_reduction <maximumf>, %44, %cst_18 [1] : vector<16x16xf32> to vector<16xf32>
      %47 = vector.shape_cast %46 : vector<16xf32> to vector<16x1xf32>
      %48 = arith.maximumf %45, %47 : vector<16x1xf32>
      %49 = arith.subf %45, %48 : vector<16x1xf32>
      %50 = math.exp %49 : vector<16x1xf32>
      %51 = vector.broadcast %48 : vector<16x1xf32> to vector<16x16xf32>
      %52 = arith.subf %44, %51 : vector<16x16xf32>
      %53 = math.exp %52 : vector<16x16xf32>
      %c0_19 = arith.constant 0 : index
      %c0_20 = arith.constant 0 : index
      %54 = vector.load %arg12[%c0_19, %c0_20] : memref<16x128xf32, #tpu.memory_space<vmem>>, vector<16x32xf32>
      %55 = vector.broadcast %50 : vector<16x1xf32> to vector<16x32xf32>
      %56 = arith.mulf %55, %54 : vector<16x32xf32>
      %cst_21 = arith.constant dense<0.000000e+00> : vector<16xf32>
      %57 = vector.multi_reduction <add>, %53, %cst_21 [1] : vector<16x16xf32> to vector<16xf32>
      %58 = vector.shape_cast %57 : vector<16xf32> to vector<16x1xf32>
      %59 = vector.broadcast %58 : vector<16x1xf32> to vector<16x32xf32>
      %60 = arith.addf %56, %59 : vector<16x32xf32>
      %c0_22 = arith.constant 0 : index
      %c0_23 = arith.constant 0 : index
      %61 = vector.load %arg12[%c0_22, %c0_23] : memref<16x128xf32, #tpu.memory_space<vmem>>, vector<16x32xf32>
      tpu.vector_store %arg12[%c0_22, %c0_23], %60 {strides = array<i32>} : memref<16x128xf32, #tpu.memory_space<vmem>>, vector<16x32xf32>,
      %cst_24 = arith.constant 0.000000e+00 : f32
      %62 = vector.broadcast %cst_24 : f32 to vector<16x16xf32>
      %63 = arith.select %39, %62, %53 : vector<16x16xi1>, vector<16x16xf32>
      %c0_25 = arith.constant 0 : index
      %c0_26 = arith.constant 0 : index
      %64 = vector.load %arg13[%c0_25, %c0_26] : memref<16x128xf32, #tpu.memory_space<vmem>>, vector<16x32xf32>
      %65 = vector.broadcast %50 : vector<16x1xf32> to vector<16x32xf32>
      %66 = arith.mulf %65, %64 : vector<16x32xf32>
      %67 = arith.truncf %63 : vector<16x16xf32> to vector<16x16xbf16>
      %68 = vector.extract_strided_slice %28 {offsets = [0, 0], sizes = [16, 32], strides = [1, 1]} : vector<16x128xbf16> to vector<16x32xbf16>
      %cst_27 = arith.constant dense<0.000000e+00> : vector<16x32xf32>
      %69 = tpu.matmul %67, %68, %cst_27 {dimension_numbers = #tpu.dot_dimension_numbers<[1], [0], [0], [1], [0, 0, 1, 1], [], []>} : vector<16x16xbf16>, vector<16x32xbf16>, vector<16x32xf32> -> vector<16x32xf32>
      %70 = arith.addf %66, %69 : vector<16x32xf32>
      %c0_28 = arith.constant 0 : index
      %c0_29 = arith.constant 0 : index
      %71 = vector.load %arg13[%c0_28, %c0_29] : memref<16x128xf32, #tpu.memory_space<vmem>>, vector<16x32xf32>
      tpu.vector_store %arg13[%c0_28, %c0_29], %70 {strides = array<i32>} : memref<16x128xf32, #tpu.memory_space<vmem>>, vector<16x32xf32>,
      %c0_30 = arith.constant 0 : index
      %c0_31 = arith.constant 0 : index
      %72 = vector.load %arg11[%c0_30, %c0_31] : memref<16x4xf32, #tpu.memory_space<vmem>>, vector<16x1xf32>
      tpu.vector_store %arg11[%c0_30, %c0_31], %48 {strides = array<i32>} : memref<16x4xf32, #tpu.memory_space<vmem>>, vector<16x1xf32>,
      %73 = vector.extract_strided_slice %24 {offsets = [0, 32], sizes = [16, 32], strides = [1, 1]} : vector<16x128xbf16> to vector<16x32xbf16>
      %74 = vector.extract_strided_slice %26 {offsets = [0, 32], sizes = [16, 32], strides = [1, 1]} : vector<16x128xbf16> to vector<16x32xbf16>
      %cst_32 = arith.constant dense<0.000000e+00> : vector<16x16xf32>
      %75 = tpu.matmul %73, %74, %cst_32 {dimension_numbers = #tpu.dot_dimension_numbers<[1], [1], [0], [0], [0, 0, 1, 0], [], []>} : vector<16x32xbf16>, vector<16x32xbf16>, vector<16x16xf32> -> vector<16x16xf32>
      %cst_33 = arith.constant -1.000000e+04 : f32
      %76 = vector.broadcast %cst_33 : f32 to vector<16x16xf32>
      %77 = arith.select %39, %76, %75 : vector<16x16xi1>, vector<16x16xf32>
      %c0_34 = arith.constant 0 : index
      %c1 = arith.constant 1 : index
      %78 = vector.load %arg11[%c0_34, %c1] : memref<16x4xf32, #tpu.memory_space<vmem>>, vector<16x1xf32>
      %cst_35 = arith.constant dense<0xFF800000> : vector<16xf32>
      %79 = vector.multi_reduction <maximumf>, %77, %cst_35 [1] : vector<16x16xf32> to vector<16xf32>
      %80 = vector.shape_cast %79 : vector<16xf32> to vector<16x1xf32>
      %81 = arith.maximumf %78, %80 : vector<16x1xf32>
      %82 = arith.subf %78, %81 : vector<16x1xf32>
      %83 = math.exp %82 : vector<16x1xf32>
      %84 = vector.broadcast %81 : vector<16x1xf32> to vector<16x16xf32>
      %85 = arith.subf %77, %84 : vector<16x16xf32>
      %86 = math.exp %85 : vector<16x16xf32>
      %c0_36 = arith.constant 0 : index
      %c32 = arith.constant 32 : index
      %87 = vector.load %arg12[%c0_36, %c32] : memref<16x128xf32, #tpu.memory_space<vmem>>, vector<16x32xf32>
      %88 = vector.broadcast %83 : vector<16x1xf32> to vector<16x32xf32>
      %89 = arith.mulf %88, %87 : vector<16x32xf32>
      %cst_37 = arith.constant dense<0.000000e+00> : vector<16xf32>
      %90 = vector.multi_reduction <add>, %86, %cst_37 [1] : vector<16x16xf32> to vector<16xf32>
      %91 = vector.shape_cast %90 : vector<16xf32> to vector<16x1xf32>
      %92 = vector.broadcast %91 : vector<16x1xf32> to vector<16x32xf32>
      %93 = arith.addf %89, %92 : vector<16x32xf32>
      %c0_38 = arith.constant 0 : index
      %c32_39 = arith.constant 32 : index
      %94 = vector.load %arg12[%c0_38, %c32_39] : memref<16x128xf32, #tpu.memory_space<vmem>>, vector<16x32xf32>
      tpu.vector_store %arg12[%c0_38, %c32_39], %93 {strides = array<i32>} : memref<16x128xf32, #tpu.memory_space<vmem>>, vector<16x32xf32>,
      %cst_40 = arith.constant 0.000000e+00 : f32
      %95 = vector.broadcast %cst_40 : f32 to vector<16x16xf32>
      %96 = arith.select %39, %95, %86 : vector<16x16xi1>, vector<16x16xf32>
      %c0_41 = arith.constant 0 : index
      %c32_42 = arith.constant 32 : index
      %97 = vector.load %arg13[%c0_41, %c32_42] : memref<16x128xf32, #tpu.memory_space<vmem>>, vector<16x32xf32>
      %98 = vector.broadcast %83 : vector<16x1xf32> to vector<16x32xf32>
      %99 = arith.mulf %98, %97 : vector<16x32xf32>
      %100 = arith.truncf %96 : vector<16x16xf32> to vector<16x16xbf16>
      %101 = vector.extract_strided_slice %28 {offsets = [0, 32], sizes = [16, 32], strides = [1, 1]} : vector<16x128xbf16> to vector<16x32xbf16>
      %cst_43 = arith.constant dense<0.000000e+00> : vector<16x32xf32>
      %102 = tpu.matmul %100, %101, %cst_43 {dimension_numbers = #tpu.dot_dimension_numbers<[1], [0], [0], [1], [0, 0, 1, 1], [], []>} : vector<16x16xbf16>, vector<16x32xbf16>, vector<16x32xf32> -> vector<16x32xf32>
      %103 = arith.addf %99, %102 : vector<16x32xf32>
      %c0_44 = arith.constant 0 : index
      %c32_45 = arith.constant 32 : index
      %104 = vector.load %arg13[%c0_44, %c32_45] : memref<16x128xf32, #tpu.memory_space<vmem>>, vector<16x32xf32>
      tpu.vector_store %arg13[%c0_44, %c32_45], %103 {strides = array<i32>} : memref<16x128xf32, #tpu.memory_space<vmem>>, vector<16x32xf32>,
      %c0_46 = arith.constant 0 : index
      %c1_47 = arith.constant 1 : index
      %105 = vector.load %arg11[%c0_46, %c1_47] : memref<16x4xf32, #tpu.memory_space<vmem>>, vector<16x1xf32>
      tpu.vector_store %arg11[%c0_46, %c1_47], %81 {strides = array<i32>} : memref<16x4xf32, #tpu.memory_space<vmem>>, vector<16x1xf32>,
      %106 = vector.extract_strided_slice %24 {offsets = [0, 64], sizes = [16, 32], strides = [1, 1]} : vector<16x128xbf16> to vector<16x32xbf16>
      %107 = vector.extract_strided_slice %26 {offsets = [0, 64], sizes = [16, 32], strides = [1, 1]} : vector<16x128xbf16> to vector<16x32xbf16>
      %cst_48 = arith.constant dense<0.000000e+00> : vector<16x16xf32>
      %108 = tpu.matmul %106, %107, %cst_48 {dimension_numbers = #tpu.dot_dimension_numbers<[1], [1], [0], [0], [0, 0, 1, 0], [], []>} : vector<16x32xbf16>, vector<16x32xbf16>, vector<16x16xf32> -> vector<16x16xf32>
      %cst_49 = arith.constant -1.000000e+04 : f32
      %109 = vector.broadcast %cst_49 : f32 to vector<16x16xf32>
      %110 = arith.select %39, %109, %108 : vector<16x16xi1>, vector<16x16xf32>
      %c0_50 = arith.constant 0 : index
      %c2 = arith.constant 2 : index
      %111 = vector.load %arg11[%c0_50, %c2] : memref<16x4xf32, #tpu.memory_space<vmem>>, vector<16x1xf32>
      %cst_51 = arith.constant dense<0xFF800000> : vector<16xf32>
      %112 = vector.multi_reduction <maximumf>, %110, %cst_51 [1] : vector<16x16xf32> to vector<16xf32>
      %113 = vector.shape_cast %112 : vector<16xf32> to vector<16x1xf32>
      %114 = arith.maximumf %111, %113 : vector<16x1xf32>
      %115 = arith.subf %111, %114 : vector<16x1xf32>
      %116 = math.exp %115 : vector<16x1xf32>
      %117 = vector.broadcast %114 : vector<16x1xf32> to vector<16x16xf32>
      %118 = arith.subf %110, %117 : vector<16x16xf32>
      %119 = math.exp %118 : vector<16x16xf32>
      %c0_52 = arith.constant 0 : index
      %c64 = arith.constant 64 : index
      %120 = vector.load %arg12[%c0_52, %c64] : memref<16x128xf32, #tpu.memory_space<vmem>>, vector<16x32xf32>
      %121 = vector.broadcast %116 : vector<16x1xf32> to vector<16x32xf32>
      %122 = arith.mulf %121, %120 : vector<16x32xf32>
      %cst_53 = arith.constant dense<0.000000e+00> : vector<16xf32>
      %123 = vector.multi_reduction <add>, %119, %cst_53 [1] : vector<16x16xf32> to vector<16xf32>
      %124 = vector.shape_cast %123 : vector<16xf32> to vector<16x1xf32>
      %125 = vector.broadcast %124 : vector<16x1xf32> to vector<16x32xf32>
      %126 = arith.addf %122, %125 : vector<16x32xf32>
      %c0_54 = arith.constant 0 : index
      %c64_55 = arith.constant 64 : index
      %127 = vector.load %arg12[%c0_54, %c64_55] : memref<16x128xf32, #tpu.memory_space<vmem>>, vector<16x32xf32>
      tpu.vector_store %arg12[%c0_54, %c64_55], %126 {strides = array<i32>} : memref<16x128xf32, #tpu.memory_space<vmem>>, vector<16x32xf32>,
      %cst_56 = arith.constant 0.000000e+00 : f32
      %128 = vector.broadcast %cst_56 : f32 to vector<16x16xf32>
      %129 = arith.select %39, %128, %119 : vector<16x16xi1>, vector<16x16xf32>
      %c0_57 = arith.constant 0 : index
      %c64_58 = arith.constant 64 : index
      %130 = vector.load %arg13[%c0_57, %c64_58] : memref<16x128xf32, #tpu.memory_space<vmem>>, vector<16x32xf32>
      %131 = vector.broadcast %116 : vector<16x1xf32> to vector<16x32xf32>
      %132 = arith.mulf %131, %130 : vector<16x32xf32>
      %133 = arith.truncf %129 : vector<16x16xf32> to vector<16x16xbf16>
      %134 = vector.extract_strided_slice %28 {offsets = [0, 64], sizes = [16, 32], strides = [1, 1]} : vector<16x128xbf16> to vector<16x32xbf16>
      %cst_59 = arith.constant dense<0.000000e+00> : vector<16x32xf32>
      %135 = tpu.matmul %133, %134, %cst_59 {dimension_numbers = #tpu.dot_dimension_numbers<[1], [0], [0], [1], [0, 0, 1, 1], [], []>} : vector<16x16xbf16>, vector<16x32xbf16>, vector<16x32xf32> -> vector<16x32xf32>
      %136 = arith.addf %132, %135 : vector<16x32xf32>
      %c0_60 = arith.constant 0 : index
      %c64_61 = arith.constant 64 : index
      %137 = vector.load %arg13[%c0_60, %c64_61] : memref<16x128xf32, #tpu.memory_space<vmem>>, vector<16x32xf32>
      tpu.vector_store %arg13[%c0_60, %c64_61], %136 {strides = array<i32>} : memref<16x128xf32, #tpu.memory_space<vmem>>, vector<16x32xf32>,
      %c0_62 = arith.constant 0 : index
      %c2_63 = arith.constant 2 : index
      %138 = vector.load %arg11[%c0_62, %c2_63] : memref<16x4xf32, #tpu.memory_space<vmem>>, vector<16x1xf32>
      tpu.vector_store %arg11[%c0_62, %c2_63], %114 {strides = array<i32>} : memref<16x4xf32, #tpu.memory_space<vmem>>, vector<16x1xf32>,
      %139 = vector.extract_strided_slice %24 {offsets = [0, 96], sizes = [16, 32], strides = [1, 1]} : vector<16x128xbf16> to vector<16x32xbf16>
      %140 = vector.extract_strided_slice %26 {offsets = [0, 96], sizes = [16, 32], strides = [1, 1]} : vector<16x128xbf16> to vector<16x32xbf16>
      %cst_64 = arith.constant dense<0.000000e+00> : vector<16x16xf32>
      %141 = tpu.matmul %139, %140, %cst_64 {dimension_numbers = #tpu.dot_dimension_numbers<[1], [1], [0], [0], [0, 0, 1, 0], [], []>} : vector<16x32xbf16>, vector<16x32xbf16>, vector<16x16xf32> -> vector<16x16xf32>
      %cst_65 = arith.constant -1.000000e+04 : f32
      %142 = vector.broadcast %cst_65 : f32 to vector<16x16xf32>
      %143 = arith.select %39, %142, %141 : vector<16x16xi1>, vector<16x16xf32>
      %c0_66 = arith.constant 0 : index
      %c3 = arith.constant 3 : index
      %144 = vector.load %arg11[%c0_66, %c3] : memref<16x4xf32, #tpu.memory_space<vmem>>, vector<16x1xf32>
      %cst_67 = arith.constant dense<0xFF800000> : vector<16xf32>
      %145 = vector.multi_reduction <maximumf>, %143, %cst_67 [1] : vector<16x16xf32> to vector<16xf32>
      %146 = vector.shape_cast %145 : vector<16xf32> to vector<16x1xf32>
      %147 = arith.maximumf %144, %146 : vector<16x1xf32>
      %148 = arith.subf %144, %147 : vector<16x1xf32>
      %149 = math.exp %148 : vector<16x1xf32>
      %150 = vector.broadcast %147 : vector<16x1xf32> to vector<16x16xf32>
      %151 = arith.subf %143, %150 : vector<16x16xf32>
      %152 = math.exp %151 : vector<16x16xf32>
      %c0_68 = arith.constant 0 : index
      %c96 = arith.constant 96 : index
      %153 = vector.load %arg12[%c0_68, %c96] : memref<16x128xf32, #tpu.memory_space<vmem>>, vector<16x32xf32>
      %154 = vector.broadcast %149 : vector<16x1xf32> to vector<16x32xf32>
      %155 = arith.mulf %154, %153 : vector<16x32xf32>
      %cst_69 = arith.constant dense<0.000000e+00> : vector<16xf32>
      %156 = vector.multi_reduction <add>, %152, %cst_69 [1] : vector<16x16xf32> to vector<16xf32>
      %157 = vector.shape_cast %156 : vector<16xf32> to vector<16x1xf32>
      %158 = vector.broadcast %157 : vector<16x1xf32> to vector<16x32xf32>
      %159 = arith.addf %155, %158 : vector<16x32xf32>
      %c0_70 = arith.constant 0 : index
      %c96_71 = arith.constant 96 : index
      %160 = vector.load %arg12[%c0_70, %c96_71] : memref<16x128xf32, #tpu.memory_space<vmem>>, vector<16x32xf32>
      tpu.vector_store %arg12[%c0_70, %c96_71], %159 {strides = array<i32>} : memref<16x128xf32, #tpu.memory_space<vmem>>, vector<16x32xf32>,
      %cst_72 = arith.constant 0.000000e+00 : f32
      %161 = vector.broadcast %cst_72 : f32 to vector<16x16xf32>
      %162 = arith.select %39, %161, %152 : vector<16x16xi1>, vector<16x16xf32>
      %c0_73 = arith.constant 0 : index
      %c96_74 = arith.constant 96 : index
      %163 = vector.load %arg13[%c0_73, %c96_74] : memref<16x128xf32, #tpu.memory_space<vmem>>, vector<16x32xf32>
      %164 = vector.broadcast %149 : vector<16x1xf32> to vector<16x32xf32>
      %165 = arith.mulf %164, %163 : vector<16x32xf32>
      %166 = arith.truncf %162 : vector<16x16xf32> to vector<16x16xbf16>
      %167 = vector.extract_strided_slice %28 {offsets = [0, 96], sizes = [16, 32], strides = [1, 1]} : vector<16x128xbf16> to vector<16x32xbf16>
      %cst_75 = arith.constant dense<0.000000e+00> : vector<16x32xf32>
      %168 = tpu.matmul %166, %167, %cst_75 {dimension_numbers = #tpu.dot_dimension_numbers<[1], [0], [0], [1], [0, 0, 1, 1], [], []>} : vector<16x16xbf16>, vector<16x32xbf16>, vector<16x32xf32> -> vector<16x32xf32>
      %169 = arith.addf %165, %168 : vector<16x32xf32>
      %c0_76 = arith.constant 0 : index
      %c96_77 = arith.constant 96 : index
      %170 = vector.load %arg13[%c0_76, %c96_77] : memref<16x128xf32, #tpu.memory_space<vmem>>, vector<16x32xf32>
      tpu.vector_store %arg13[%c0_76, %c96_77], %169 {strides = array<i32>} : memref<16x128xf32, #tpu.memory_space<vmem>>, vector<16x32xf32>,
      %c0_78 = arith.constant 0 : index
      %c3_79 = arith.constant 3 : index
      %171 = vector.load %arg11[%c0_78, %c3_79] : memref<16x4xf32, #tpu.memory_space<vmem>>, vector<16x1xf32>
      tpu.vector_store %arg11[%c0_78, %c3_79], %147 {strides = array<i32>} : memref<16x4xf32, #tpu.memory_space<vmem>>, vector<16x1xf32>,
    } else {
    }
    %c1_i32 = arith.constant 1 : i32
    %20 = arith.cmpi eq, %arg2, %c1_i32 : i32
    %21 = arith.extui %20 : i1 to i32
    %c0_i32_6 = arith.constant 0 : i32
    %22 = arith.cmpi ne, %21, %c0_i32_6 : i32
    scf.if %22 {
      %c0 = arith.constant 0 : index
      %c0_7 = arith.constant 0 : index
      %23 = vector.load %arg12[%c0, %c0_7] : memref<16x128xf32, #tpu.memory_space<vmem>>, vector<16x128xf32>
      %cst = arith.constant 0.000000e+00 : f32
      %24 = vector.broadcast %cst : f32 to vector<16x128xf32>
      %25 = arith.cmpf ogt, %23, %24 : vector<16x128xf32>
      %cst_8 = arith.constant 1.000000e+00 : f32
      %26 = vector.broadcast %cst_8 : f32 to vector<16x128xf32>
      %27 = arith.select %25, %23, %26 : vector<16x128xi1>, vector<16x128xf32>
      %c0_9 = arith.constant 0 : index
      %c0_10 = arith.constant 0 : index
      %28 = vector.load %arg13[%c0_9, %c0_10] : memref<16x128xf32, #tpu.memory_space<vmem>>, vector<16x128xf32>
      %29 = arith.divf %28, %27 : vector<16x128xf32>
      %c0_11 = arith.constant 0 : index
      %c0_12 = arith.constant 0 : index
      %c0_13 = arith.constant 0 : index
      %30 = vector.load %arg7[%c0_11, %c0_12, %c0_13] : memref<1x16x128xf32, #tpu.memory_space<vmem>>, vector<1x16x128xf32>
      %31 = vector.shape_cast %30 : vector<1x16x128xf32> to vector<16x128xf32>
      %32 = arith.truncf %29 : vector<16x128xf32> to vector<16x128xbf16>
      %c0_14 = arith.constant 0 : index
      %c0_15 = arith.constant 0 : index
      %33 = vector.load %arg8[%c0_14, %c0_15] : memref<128x128xbf16, #tpu.memory_space<vmem>>, vector<128x128xbf16>
      %cst_16 = arith.constant dense<0.000000e+00> : vector<16x128xf32>
      %34 = tpu.matmul %32, %33, %cst_16 {dimension_numbers = #tpu.dot_dimension_numbers<[1], [0], [0], [1], [0, 0, 1, 1], [], []>} : vector<16x128xbf16>, vector<128x128xbf16>, vector<16x128xf32> -> vector<16x128xf32>
      %35 = arith.addf %31, %34 : vector<16x128xf32>
      %c0_17 = arith.constant 0 : index
      %c0_18 = arith.constant 0 : index
      %36 = vector.load %arg9[%c0_17, %c0_18] : memref<1x128xf32, #tpu.memory_space<vmem>>, vector<1x128xf32>
      %37 = vector.broadcast %36 : vector<1x128xf32> to vector<16x128xf32>
      %38 = arith.addf %35, %37 : vector<16x128xf32>
      %c0_19 = arith.constant 0 : index
      %c0_20 = arith.constant 0 : index
      %c0_21 = arith.constant 0 : index
      %39 = vector.load %arg10[%c0_19, %c0_20, %c0_21] : memref<1x16x128xf32, #tpu.memory_space<vmem>>, vector<1x16x128xf32>
      %40 = vector.shape_cast %39 : vector<1x16x128xf32> to vector<16x128xf32>
      %41 = vector.shape_cast %38 : vector<16x128xf32> to vector<1x16x128xf32>
      tpu.vector_store %arg10[%c0_19, %c0_20, %c0_21], %41 {strides = array<i32>} : memref<1x16x128xf32, #tpu.memory_space<vmem>>, vector<1x16x128xf32>,
    } else {
    }
    return
  }
  func.func @transform_0(%arg0: i32, %arg1: i32, %arg2: i32, %arg3: memref<2xi32, #tpu.memory_space<smem>>) -> (i32, i32, i32) {
    %c0_i32 = arith.constant 0 : i32
    %c0_i32_0 = arith.constant 0 : i32
    return %arg0, %arg1, %c0_i32 : i32, i32, i32
  }
  func.func @transform_1(%arg0: i32, %arg1: i32, %arg2: i32, %arg3: memref<2xi32, #tpu.memory_space<smem>>) -> (i32, i32, i32) {
    %c0_i32 = arith.constant 0 : i32
    %c0_i32_0 = arith.constant 0 : i32
    return %arg0, %arg2, %c0_i32 : i32, i32, i32
  }
  func.func @transform_2(%arg0: i32, %arg1: i32, %arg2: i32, %arg3: memref<2xi32, #tpu.memory_space<smem>>) -> (i32, i32, i32) {
    %c0_i32 = arith.constant 0 : i32
    %c0_i32_0 = arith.constant 0 : i32
    return %arg0, %arg2, %c0_i32 : i32, i32, i32
  }
  func.func @transform_3(%arg0: i32, %arg1: i32, %arg2: i32, %arg3: memref<2xi32, #tpu.memory_space<smem>>) -> (i32, i32, i32) {
    %c0_i32 = arith.constant 0 : i32
    %c0_i32_0 = arith.constant 0 : i32
    return %arg0, %arg1, %c0_i32 : i32, i32, i32
  }
  func.func @transform_4(%arg0: i32, %arg1: i32, %arg2: i32, %arg3: memref<2xi32, #tpu.memory_space<smem>>) -> (i32, i32) {
    %c0_i32 = arith.constant 0 : i32
    %c0_i32_0 = arith.constant 0 : i32
    %c0_i32_1 = arith.constant 0 : i32
    return %c0_i32, %c0_i32_0 : i32, i32
  }
  func.func @transform_5(%arg0: i32, %arg1: i32, %arg2: i32, %arg3: memref<2xi32, #tpu.memory_space<smem>>) -> (i32, i32) {
    %c0_i32 = arith.constant 0 : i32
    %c0_i32_0 = arith.constant 0 : i32
    %c0_i32_1 = arith.constant 0 : i32
    return %c0_i32, %c0_i32_0 : i32, i32
  }
  func.func @transform_6(%arg0: i32, %arg1: i32, %arg2: i32, %arg3: memref<2xi32, #tpu.memory_space<smem>>) -> (i32, i32, i32) {
    %c0_i32 = arith.constant 0 : i32
    %c0_i32_0 = arith.constant 0 : i32
    return %arg0, %arg1, %c0_i32 : i32, i32, i32
  }
}

module attributes {stable_mosaic.version = 11 : i64} {
  func.func @_linear_res_kernel(%arg0: i32, %arg1: memref<16x128xf32, #tpu.memory_space<vmem>>, %arg2: memref<16x128xf32, #tpu.memory_space<vmem>>, %arg3: memref<128x128xbf16, #tpu.memory_space<vmem>>, %arg4: memref<1x128xf32, #tpu.memory_space<vmem>>, %arg5: memref<16x128xf32, #tpu.memory_space<vmem>>) attributes {dimension_semantics = [#tpu.dimension_semantics<parallel>], iteration_bounds = array<i64: 4>, scalar_prefetch = 0 : i64, scratch_operands = 0 : i64, tpu.core_type = #tpu.core_type<tc>, window_params = [{transform_indices = @transform_0, window_bounds = array<i64: 16, 128>}, {transform_indices = @transform_1, window_bounds = array<i64: 16, 128>}, {pipeline_mode = #tpu.pipeline_mode<synchronous>, transform_indices = @transform_2, window_bounds = array<i64: 128, 128>}, {pipeline_mode = #tpu.pipeline_mode<synchronous>, transform_indices = @transform_3, window_bounds = array<i64: 1, 128>}, {transform_indices = @transform_4, window_bounds = array<i64: 16, 128>}]} {
    %c0 = arith.constant 0 : index
    %c0_0 = arith.constant 0 : index
    %0 = vector.load %arg1[%c0, %c0_0] : memref<16x128xf32, #tpu.memory_space<vmem>>, vector<16x128xf32>
    %1 = arith.truncf %0 : vector<16x128xf32> to vector<16x128xbf16>
    %c0_1 = arith.constant 0 : index
    %c0_2 = arith.constant 0 : index
    %2 = vector.load %arg3[%c0_1, %c0_2] : memref<128x128xbf16, #tpu.memory_space<vmem>>, vector<128x128xbf16>
    %cst = arith.constant dense<0.000000e+00> : vector<16x128xf32>
    %3 = tpu.matmul %1, %2, %cst {dimension_numbers = #tpu.dot_dimension_numbers<[1], [0], [0], [1], [0, 0, 1, 1], [], []>} : vector<16x128xbf16>, vector<128x128xbf16>, vector<16x128xf32> -> vector<16x128xf32>
    %c0_3 = arith.constant 0 : index
    %c0_4 = arith.constant 0 : index
    %4 = vector.load %arg4[%c0_3, %c0_4] : memref<1x128xf32, #tpu.memory_space<vmem>>, vector<1x128xf32>
    %5 = vector.broadcast %4 : vector<1x128xf32> to vector<16x128xf32>
    %6 = arith.addf %3, %5 : vector<16x128xf32>
    %c0_5 = arith.constant 0 : index
    %c0_6 = arith.constant 0 : index
    %7 = vector.load %arg2[%c0_5, %c0_6] : memref<16x128xf32, #tpu.memory_space<vmem>>, vector<16x128xf32>
    %8 = arith.addf %7, %6 : vector<16x128xf32>
    %c0_7 = arith.constant 0 : index
    %c0_8 = arith.constant 0 : index
    %9 = vector.load %arg5[%c0_7, %c0_8] : memref<16x128xf32, #tpu.memory_space<vmem>>, vector<16x128xf32>
    tpu.vector_store %arg5[%c0_7, %c0_8], %8 {strides = array<i32>} : memref<16x128xf32, #tpu.memory_space<vmem>>, vector<16x128xf32>,
    return
  }
  func.func @transform_0(%arg0: i32) -> (i32, i32) {
    %c0_i32 = arith.constant 0 : i32
    %c0_i32_0 = arith.constant 0 : i32
    return %arg0, %c0_i32 : i32, i32
  }
  func.func @transform_1(%arg0: i32) -> (i32, i32) {
    %c0_i32 = arith.constant 0 : i32
    %c0_i32_0 = arith.constant 0 : i32
    return %arg0, %c0_i32 : i32, i32
  }
  func.func @transform_2(%arg0: i32) -> (i32, i32) {
    %c0_i32 = arith.constant 0 : i32
    %c0_i32_0 = arith.constant 0 : i32
    %c0_i32_1 = arith.constant 0 : i32
    return %c0_i32, %c0_i32_0 : i32, i32
  }
  func.func @transform_3(%arg0: i32) -> (i32, i32) {
    %c0_i32 = arith.constant 0 : i32
    %c0_i32_0 = arith.constant 0 : i32
    %c0_i32_1 = arith.constant 0 : i32
    return %c0_i32, %c0_i32_0 : i32, i32
  }
  func.func @transform_4(%arg0: i32) -> (i32, i32) {
    %c0_i32 = arith.constant 0 : i32
    %c0_i32_0 = arith.constant 0 : i32
    return %arg0, %c0_i32 : i32, i32
  }
}

module attributes {stable_mosaic.version = 11 : i64} {
  func.func @_dwconv_silu_kernel(%arg0: i32, %arg1: memref<1x40x128xf32, #tpu.memory_space<vmem>>, %arg2: memref<7x128xf32, #tpu.memory_space<vmem>>, %arg3: memref<1x128xf32, #tpu.memory_space<vmem>>, %arg4: memref<1x32x128xf32, #tpu.memory_space<vmem>>) attributes {dimension_semantics = [#tpu.dimension_semantics<parallel>], iteration_bounds = array<i64: 2>, scalar_prefetch = 0 : i64, scratch_operands = 0 : i64, tpu.core_type = #tpu.core_type<tc>, window_params = [{transform_indices = @transform_0, window_bounds = array<i64: 1, 40, 128>}, {pipeline_mode = #tpu.pipeline_mode<synchronous>, transform_indices = @transform_1, window_bounds = array<i64: 7, 128>}, {pipeline_mode = #tpu.pipeline_mode<synchronous>, transform_indices = @transform_2, window_bounds = array<i64: 1, 128>}, {transform_indices = @transform_3, window_bounds = array<i64: 1, 32, 128>}]} {
    %c0 = arith.constant 0 : index
    %c0_0 = arith.constant 0 : index
    %c0_1 = arith.constant 0 : index
    %0 = vector.load %arg1[%c0, %c0_0, %c0_1] : memref<1x40x128xf32, #tpu.memory_space<vmem>>, vector<1x40x128xf32>
    %1 = vector.shape_cast %0 : vector<1x40x128xf32> to vector<40x128xf32>
    %c0_2 = arith.constant 0 : index
    %c0_3 = arith.constant 0 : index
    %2 = vector.load %arg2[%c0_2, %c0_3] : memref<7x128xf32, #tpu.memory_space<vmem>>, vector<7x128xf32>
    %3 = vector.extract_strided_slice %2 {offsets = [0, 0], sizes = [1, 128], strides = [1, 1]} : vector<7x128xf32> to vector<1x128xf32>
    %4 = vector.broadcast %3 : vector<1x128xf32> to vector<40x128xf32>
    %5 = arith.mulf %1, %4 : vector<40x128xf32>
    %c39_i32 = arith.constant 39 : i32
    %6 = tpu.dynamic_rotate %1 by %c39_i32 dim 0 : vector<40x128xf32>, i32 -> vector<40x128xf32>
    %7 = vector.extract_strided_slice %2 {offsets = [1, 0], sizes = [1, 128], strides = [1, 1]} : vector<7x128xf32> to vector<1x128xf32>
    %8 = vector.broadcast %7 : vector<1x128xf32> to vector<40x128xf32>
    %9 = arith.mulf %6, %8 : vector<40x128xf32>
    %10 = arith.addf %5, %9 : vector<40x128xf32>
    %c38_i32 = arith.constant 38 : i32
    %11 = tpu.dynamic_rotate %1 by %c38_i32 dim 0 : vector<40x128xf32>, i32 -> vector<40x128xf32>
    %12 = vector.extract_strided_slice %2 {offsets = [2, 0], sizes = [1, 128], strides = [1, 1]} : vector<7x128xf32> to vector<1x128xf32>
    %13 = vector.broadcast %12 : vector<1x128xf32> to vector<40x128xf32>
    %14 = arith.mulf %11, %13 : vector<40x128xf32>
    %15 = arith.addf %10, %14 : vector<40x128xf32>
    %c37_i32 = arith.constant 37 : i32
    %16 = tpu.dynamic_rotate %1 by %c37_i32 dim 0 : vector<40x128xf32>, i32 -> vector<40x128xf32>
    %17 = vector.extract_strided_slice %2 {offsets = [3, 0], sizes = [1, 128], strides = [1, 1]} : vector<7x128xf32> to vector<1x128xf32>
    %18 = vector.broadcast %17 : vector<1x128xf32> to vector<40x128xf32>
    %19 = arith.mulf %16, %18 : vector<40x128xf32>
    %20 = arith.addf %15, %19 : vector<40x128xf32>
    %c36_i32 = arith.constant 36 : i32
    %21 = tpu.dynamic_rotate %1 by %c36_i32 dim 0 : vector<40x128xf32>, i32 -> vector<40x128xf32>
    %22 = vector.extract_strided_slice %2 {offsets = [4, 0], sizes = [1, 128], strides = [1, 1]} : vector<7x128xf32> to vector<1x128xf32>
    %23 = vector.broadcast %22 : vector<1x128xf32> to vector<40x128xf32>
    %24 = arith.mulf %21, %23 : vector<40x128xf32>
    %25 = arith.addf %20, %24 : vector<40x128xf32>
    %c35_i32 = arith.constant 35 : i32
    %26 = tpu.dynamic_rotate %1 by %c35_i32 dim 0 : vector<40x128xf32>, i32 -> vector<40x128xf32>
    %27 = vector.extract_strided_slice %2 {offsets = [5, 0], sizes = [1, 128], strides = [1, 1]} : vector<7x128xf32> to vector<1x128xf32>
    %28 = vector.broadcast %27 : vector<1x128xf32> to vector<40x128xf32>
    %29 = arith.mulf %26, %28 : vector<40x128xf32>
    %30 = arith.addf %25, %29 : vector<40x128xf32>
    %c34_i32 = arith.constant 34 : i32
    %31 = tpu.dynamic_rotate %1 by %c34_i32 dim 0 : vector<40x128xf32>, i32 -> vector<40x128xf32>
    %32 = vector.extract_strided_slice %2 {offsets = [6, 0], sizes = [1, 128], strides = [1, 1]} : vector<7x128xf32> to vector<1x128xf32>
    %33 = vector.broadcast %32 : vector<1x128xf32> to vector<40x128xf32>
    %34 = arith.mulf %31, %33 : vector<40x128xf32>
    %35 = arith.addf %30, %34 : vector<40x128xf32>
    %36 = vector.extract_strided_slice %35 {offsets = [0, 0], sizes = [32, 128], strides = [1, 1]} : vector<40x128xf32> to vector<32x128xf32>
    %c0_4 = arith.constant 0 : index
    %c0_5 = arith.constant 0 : index
    %37 = vector.load %arg3[%c0_4, %c0_5] : memref<1x128xf32, #tpu.memory_space<vmem>>, vector<1x128xf32>
    %38 = vector.broadcast %37 : vector<1x128xf32> to vector<32x128xf32>
    %39 = arith.addf %36, %38 : vector<32x128xf32>
    %40 = arith.negf %39 : vector<32x128xf32>
    %41 = math.exp %40 : vector<32x128xf32>
    %cst = arith.constant 1.000000e+00 : f32
    %42 = vector.broadcast %cst : f32 to vector<32x128xf32>
    %43 = arith.addf %42, %41 : vector<32x128xf32>
    %44 = arith.divf %42, %43 : vector<32x128xf32>
    %45 = arith.mulf %39, %44 : vector<32x128xf32>
    %c0_6 = arith.constant 0 : index
    %c0_7 = arith.constant 0 : index
    %c0_8 = arith.constant 0 : index
    %46 = vector.load %arg4[%c0_6, %c0_7, %c0_8] : memref<1x32x128xf32, #tpu.memory_space<vmem>>, vector<1x32x128xf32>
    %47 = vector.shape_cast %46 : vector<1x32x128xf32> to vector<32x128xf32>
    %48 = vector.shape_cast %45 : vector<32x128xf32> to vector<1x32x128xf32>
    tpu.vector_store %arg4[%c0_6, %c0_7, %c0_8], %48 {strides = array<i32>} : memref<1x32x128xf32, #tpu.memory_space<vmem>>, vector<1x32x128xf32>,
    return
  }
  func.func @transform_0(%arg0: i32) -> (i32, i32, i32) {
    %c0_i32 = arith.constant 0 : i32
    %c0_i32_0 = arith.constant 0 : i32
    %c0_i32_1 = arith.constant 0 : i32
    return %arg0, %c0_i32, %c0_i32_0 : i32, i32, i32
  }
  func.func @transform_1(%arg0: i32) -> (i32, i32) {
    %c0_i32 = arith.constant 0 : i32
    %c0_i32_0 = arith.constant 0 : i32
    %c0_i32_1 = arith.constant 0 : i32
    return %c0_i32, %c0_i32_0 : i32, i32
  }
  func.func @transform_2(%arg0: i32) -> (i32, i32) {
    %c0_i32 = arith.constant 0 : i32
    %c0_i32_0 = arith.constant 0 : i32
    %c0_i32_1 = arith.constant 0 : i32
    return %c0_i32, %c0_i32_0 : i32, i32
  }
  func.func @transform_3(%arg0: i32) -> (i32, i32, i32) {
    %c0_i32 = arith.constant 0 : i32
    %c0_i32_0 = arith.constant 0 : i32
    %c0_i32_1 = arith.constant 0 : i32
    return %arg0, %c0_i32, %c0_i32_0 : i32, i32, i32
  }
}

module attributes {stable_mosaic.version = 11 : i64} {
  func.func @_ln_ffn_kernel(%arg0: i32, %arg1: memref<16x128xf32, #tpu.memory_space<vmem>>, %arg2: memref<1x128xf32, #tpu.memory_space<vmem>>, %arg3: memref<1x128xf32, #tpu.memory_space<vmem>>, %arg4: memref<128x256xbf16, #tpu.memory_space<vmem>>, %arg5: memref<1x256xf32, #tpu.memory_space<vmem>>, %arg6: memref<256x128xbf16, #tpu.memory_space<vmem>>, %arg7: memref<1x128xf32, #tpu.memory_space<vmem>>, %arg8: memref<1x128xf32, #tpu.memory_space<vmem>>, %arg9: memref<1x128xf32, #tpu.memory_space<vmem>>, %arg10: memref<16x128xf32, #tpu.memory_space<vmem>>) attributes {dimension_semantics = [#tpu.dimension_semantics<parallel>], iteration_bounds = array<i64: 4>, scalar_prefetch = 0 : i64, scratch_operands = 0 : i64, tpu.core_type = #tpu.core_type<tc>, window_params = [{transform_indices = @transform_0, window_bounds = array<i64: 16, 128>}, {pipeline_mode = #tpu.pipeline_mode<synchronous>, transform_indices = @transform_1, window_bounds = array<i64: 1, 128>}, {pipeline_mode = #tpu.pipeline_mode<synchronous>, transform_indices = @transform_2, window_bounds = array<i64: 1, 128>}, {pipeline_mode = #tpu.pipeline_mode<synchronous>, transform_indices = @transform_3, window_bounds = array<i64: 128, 256>}, {pipeline_mode = #tpu.pipeline_mode<synchronous>, transform_indices = @transform_4, window_bounds = array<i64: 1, 256>}, {pipeline_mode = #tpu.pipeline_mode<synchronous>, transform_indices = @transform_5, window_bounds = array<i64: 256, 128>}, {pipeline_mode = #tpu.pipeline_mode<synchronous>, transform_indices = @transform_6, window_bounds = array<i64: 1, 128>}, {pipeline_mode = #tpu.pipeline_mode<synchronous>, transform_indices = @transform_7, window_bounds = array<i64: 1, 128>}, {pipeline_mode = #tpu.pipeline_mode<synchronous>, transform_indices = @transform_8, window_bounds = array<i64: 1, 128>}, {transform_indices = @transform_9, window_bounds = array<i64: 16, 128>}]} {
    %c0 = arith.constant 0 : index
    %c0_0 = arith.constant 0 : index
    %0 = vector.load %arg1[%c0, %c0_0] : memref<16x128xf32, #tpu.memory_space<vmem>>, vector<16x128xf32>
    %cst = arith.constant dense<0.000000e+00> : vector<16xf32>
    %1 = vector.multi_reduction <add>, %0, %cst [1] : vector<16x128xf32> to vector<16xf32>
    %2 = vector.shape_cast %1 : vector<16xf32> to vector<16x1xf32>
    %cst_1 = arith.constant 1.280000e+02 : f32
    %3 = vector.broadcast %cst_1 : f32 to vector<16x1xf32>
    %4 = arith.divf %2, %3 : vector<16x1xf32>
    %5 = vector.broadcast %4 : vector<16x1xf32> to vector<16x128xf32>
    %6 = arith.subf %0, %5 : vector<16x128xf32>
    %7 = arith.mulf %6, %6 : vector<16x128xf32>
    %cst_2 = arith.constant dense<0.000000e+00> : vector<16xf32>
    %8 = vector.multi_reduction <add>, %7, %cst_2 [1] : vector<16x128xf32> to vector<16xf32>
    %9 = vector.shape_cast %8 : vector<16xf32> to vector<16x1xf32>
    %cst_3 = arith.constant 1.280000e+02 : f32
    %10 = vector.broadcast %cst_3 : f32 to vector<16x1xf32>
    %11 = arith.divf %9, %10 : vector<16x1xf32>
    %12 = vector.broadcast %4 : vector<16x1xf32> to vector<16x128xf32>
    %13 = arith.subf %0, %12 : vector<16x128xf32>
    %cst_4 = arith.constant 9.99999974E-6 : f32
    %14 = vector.broadcast %cst_4 : f32 to vector<16x1xf32>
    %15 = arith.addf %11, %14 : vector<16x1xf32>
    %16 = math.rsqrt %15 : vector<16x1xf32>
    %17 = vector.broadcast %16 : vector<16x1xf32> to vector<16x128xf32>
    %18 = arith.mulf %13, %17 : vector<16x128xf32>
    %c0_5 = arith.constant 0 : index
    %c0_6 = arith.constant 0 : index
    %19 = vector.load %arg2[%c0_5, %c0_6] : memref<1x128xf32, #tpu.memory_space<vmem>>, vector<1x128xf32>
    %20 = vector.broadcast %19 : vector<1x128xf32> to vector<16x128xf32>
    %21 = arith.mulf %18, %20 : vector<16x128xf32>
    %c0_7 = arith.constant 0 : index
    %c0_8 = arith.constant 0 : index
    %22 = vector.load %arg3[%c0_7, %c0_8] : memref<1x128xf32, #tpu.memory_space<vmem>>, vector<1x128xf32>
    %23 = vector.broadcast %22 : vector<1x128xf32> to vector<16x128xf32>
    %24 = arith.addf %21, %23 : vector<16x128xf32>
    %25 = arith.truncf %24 : vector<16x128xf32> to vector<16x128xbf16>
    %c0_9 = arith.constant 0 : index
    %c0_10 = arith.constant 0 : index
    %26 = vector.load %arg4[%c0_9, %c0_10] : memref<128x256xbf16, #tpu.memory_space<vmem>>, vector<128x256xbf16>
    %cst_11 = arith.constant dense<0.000000e+00> : vector<16x256xf32>
    %27 = tpu.matmul %25, %26, %cst_11 {dimension_numbers = #tpu.dot_dimension_numbers<[1], [0], [0], [1], [0, 0, 1, 1], [], []>} : vector<16x128xbf16>, vector<128x256xbf16>, vector<16x256xf32> -> vector<16x256xf32>
    %c0_12 = arith.constant 0 : index
    %c0_13 = arith.constant 0 : index
    %28 = vector.load %arg5[%c0_12, %c0_13] : memref<1x256xf32, #tpu.memory_space<vmem>>, vector<1x256xf32>
    %29 = vector.broadcast %28 : vector<1x256xf32> to vector<16x256xf32>
    %30 = arith.addf %27, %29 : vector<16x256xf32>
    %31 = arith.negf %30 : vector<16x256xf32>
    %32 = math.exp %31 : vector<16x256xf32>
    %cst_14 = arith.constant 1.000000e+00 : f32
    %33 = vector.broadcast %cst_14 : f32 to vector<16x256xf32>
    %34 = arith.addf %33, %32 : vector<16x256xf32>
    %35 = arith.divf %33, %34 : vector<16x256xf32>
    %36 = arith.mulf %30, %35 : vector<16x256xf32>
    %37 = arith.truncf %36 : vector<16x256xf32> to vector<16x256xbf16>
    %c0_15 = arith.constant 0 : index
    %c0_16 = arith.constant 0 : index
    %38 = vector.load %arg6[%c0_15, %c0_16] : memref<256x128xbf16, #tpu.memory_space<vmem>>, vector<256x128xbf16>
    %cst_17 = arith.constant dense<0.000000e+00> : vector<16x128xf32>
    %39 = tpu.matmul %37, %38, %cst_17 {dimension_numbers = #tpu.dot_dimension_numbers<[1], [0], [0], [1], [0, 0, 1, 1], [], []>} : vector<16x256xbf16>, vector<256x128xbf16>, vector<16x128xf32> -> vector<16x128xf32>
    %c0_18 = arith.constant 0 : index
    %c0_19 = arith.constant 0 : index
    %40 = vector.load %arg7[%c0_18, %c0_19] : memref<1x128xf32, #tpu.memory_space<vmem>>, vector<1x128xf32>
    %41 = vector.broadcast %40 : vector<1x128xf32> to vector<16x128xf32>
    %42 = arith.addf %39, %41 : vector<16x128xf32>
    %cst_20 = arith.constant 5.000000e-01 : f32
    %43 = vector.broadcast %cst_20 : f32 to vector<16x128xf32>
    %44 = arith.mulf %43, %42 : vector<16x128xf32>
    %45 = arith.addf %0, %44 : vector<16x128xf32>
    %cst_21 = arith.constant dense<0.000000e+00> : vector<16xf32>
    %46 = vector.multi_reduction <add>, %45, %cst_21 [1] : vector<16x128xf32> to vector<16xf32>
    %47 = vector.shape_cast %46 : vector<16xf32> to vector<16x1xf32>
    %cst_22 = arith.constant 1.280000e+02 : f32
    %48 = vector.broadcast %cst_22 : f32 to vector<16x1xf32>
    %49 = arith.divf %47, %48 : vector<16x1xf32>
    %50 = vector.broadcast %49 : vector<16x1xf32> to vector<16x128xf32>
    %51 = arith.subf %45, %50 : vector<16x128xf32>
    %52 = arith.mulf %51, %51 : vector<16x128xf32>
    %cst_23 = arith.constant dense<0.000000e+00> : vector<16xf32>
    %53 = vector.multi_reduction <add>, %52, %cst_23 [1] : vector<16x128xf32> to vector<16xf32>
    %54 = vector.shape_cast %53 : vector<16xf32> to vector<16x1xf32>
    %cst_24 = arith.constant 1.280000e+02 : f32
    %55 = vector.broadcast %cst_24 : f32 to vector<16x1xf32>
    %56 = arith.divf %54, %55 : vector<16x1xf32>
    %57 = vector.broadcast %49 : vector<16x1xf32> to vector<16x128xf32>
    %58 = arith.subf %45, %57 : vector<16x128xf32>
    %cst_25 = arith.constant 9.99999974E-6 : f32
    %59 = vector.broadcast %cst_25 : f32 to vector<16x1xf32>
    %60 = arith.addf %56, %59 : vector<16x1xf32>
    %61 = math.rsqrt %60 : vector<16x1xf32>
    %62 = vector.broadcast %61 : vector<16x1xf32> to vector<16x128xf32>
    %63 = arith.mulf %58, %62 : vector<16x128xf32>
    %c0_26 = arith.constant 0 : index
    %c0_27 = arith.constant 0 : index
    %64 = vector.load %arg8[%c0_26, %c0_27] : memref<1x128xf32, #tpu.memory_space<vmem>>, vector<1x128xf32>
    %65 = vector.broadcast %64 : vector<1x128xf32> to vector<16x128xf32>
    %66 = arith.mulf %63, %65 : vector<16x128xf32>
    %c0_28 = arith.constant 0 : index
    %c0_29 = arith.constant 0 : index
    %67 = vector.load %arg9[%c0_28, %c0_29] : memref<1x128xf32, #tpu.memory_space<vmem>>, vector<1x128xf32>
    %68 = vector.broadcast %67 : vector<1x128xf32> to vector<16x128xf32>
    %69 = arith.addf %66, %68 : vector<16x128xf32>
    %c0_30 = arith.constant 0 : index
    %c0_31 = arith.constant 0 : index
    %70 = vector.load %arg10[%c0_30, %c0_31] : memref<16x128xf32, #tpu.memory_space<vmem>>, vector<16x128xf32>
    tpu.vector_store %arg10[%c0_30, %c0_31], %69 {strides = array<i32>} : memref<16x128xf32, #tpu.memory_space<vmem>>, vector<16x128xf32>,
    return
  }
  func.func @transform_0(%arg0: i32) -> (i32, i32) {
    %c0_i32 = arith.constant 0 : i32
    %c0_i32_0 = arith.constant 0 : i32
    return %arg0, %c0_i32 : i32, i32
  }
  func.func @transform_1(%arg0: i32) -> (i32, i32) {
    %c0_i32 = arith.constant 0 : i32
    %c0_i32_0 = arith.constant 0 : i32
    %c0_i32_1 = arith.constant 0 : i32
    return %c0_i32, %c0_i32_0 : i32, i32
  }
  func.func @transform_2(%arg0: i32) -> (i32, i32) {
    %c0_i32 = arith.constant 0 : i32
    %c0_i32_0 = arith.constant 0 : i32
    %c0_i32_1 = arith.constant 0 : i32
    return %c0_i32, %c0_i32_0 : i32, i32
  }
  func.func @transform_3(%arg0: i32) -> (i32, i32) {
    %c0_i32 = arith.constant 0 : i32
    %c0_i32_0 = arith.constant 0 : i32
    %c0_i32_1 = arith.constant 0 : i32
    return %c0_i32, %c0_i32_0 : i32, i32
  }
  func.func @transform_4(%arg0: i32) -> (i32, i32) {
    %c0_i32 = arith.constant 0 : i32
    %c0_i32_0 = arith.constant 0 : i32
    %c0_i32_1 = arith.constant 0 : i32
    return %c0_i32, %c0_i32_0 : i32, i32
  }
  func.func @transform_5(%arg0: i32) -> (i32, i32) {
    %c0_i32 = arith.constant 0 : i32
    %c0_i32_0 = arith.constant 0 : i32
    %c0_i32_1 = arith.constant 0 : i32
    return %c0_i32, %c0_i32_0 : i32, i32
  }
  func.func @transform_6(%arg0: i32) -> (i32, i32) {
    %c0_i32 = arith.constant 0 : i32
    %c0_i32_0 = arith.constant 0 : i32
    %c0_i32_1 = arith.constant 0 : i32
    return %c0_i32, %c0_i32_0 : i32, i32
  }
  func.func @transform_7(%arg0: i32) -> (i32, i32) {
    %c0_i32 = arith.constant 0 : i32
    %c0_i32_0 = arith.constant 0 : i32
    %c0_i32_1 = arith.constant 0 : i32
    return %c0_i32, %c0_i32_0 : i32, i32
  }
  func.func @transform_8(%arg0: i32) -> (i32, i32) {
    %c0_i32 = arith.constant 0 : i32
    %c0_i32_0 = arith.constant 0 : i32
    %c0_i32_1 = arith.constant 0 : i32
    return %c0_i32, %c0_i32_0 : i32, i32
  }
  func.func @transform_9(%arg0: i32) -> (i32, i32) {
    %c0_i32 = arith.constant 0 : i32
    %c0_i32_0 = arith.constant 0 : i32
    return %arg0, %c0_i32 : i32, i32
  }
}

</mosaic_0001>

<bundles_post_ra>
// kernel: conformer_layer_forward.8
= control target key start
LH: loop header
LB: loop body
LE: loop exit
PB: predicated region body
PF: predicated region fallthrough
CT: control target
= control target key end

     0   :  { %s2231_s0 = inlined_call_operand.vmem [shape: f32[2,32,128], index: 0, kind: input, shape index: {}]   ;;  %s2232_s1 = inlined_call_operand.hbm [shape: f32[1,128], index: 1, kind: input, shape index: {}]   ;;  %s2233_s2 = inlined_call_operand.hbm [shape: f32[1,128], index: 2, kind: input, shape index: {}]   ;;  %s2234_s3 = inlined_call_operand.hbm [shape: f32[32,128], index: 3, kind: input, shape index: {}]   ;;  %s2235_s4 = inlined_call_operand.hbm [shape: f32[32,128], index: 4, kind: input, shape index: {}]   ;;  %s2236_s5 = inlined_call_operand.hbm [shape: f32[32,128], index: 5, kind: input, shape index: {}]   ;;  %s2237_s6 = inlined_call_operand.hbm [shape: bf16[128,256], index: 6, kind: input, shape index: {}]   ;;  %s2238_s7 = inlined_call_operand.vmem [shape: f32[1,256], index: 7, kind: input, shape index: {}]   ;;  %s2239_s8 = inlined_call_operand.hbm [shape: bf16[128,128], index: 8, kind: input, shape index: {}]   ;;  %s2240_s9 = inlined_call_operand.vmem [shape: f32[1,128], index: 9, kind: input, shape index: {}]   ;;  %s2241_s10 = inlined_call_operand.vmem [shape: bf16[2,32,128], index: 10, kind: output, shape index: {0}]   ;;  %s2242_s11 = inlined_call_operand.vmem [shape: bf16[2,32,128], index: 11, kind: output, shape index: {1}]   ;;  %s2243_s12 = inlined_call_operand.vmem [shape: bf16[2,32,128], index: 12, kind: output, shape index: {2}]  }
   0x1   :  { %2249 = sst [smem:[#allocation23_spill]] %s2232_s1 }
   0x2   :  { %2250 = sst [smem:[#allocation24_spill]] %s2233_s2 }
   0x3   :  { %2251 = sst [smem:[#allocation25_spill]] %s2234_s3 }
   0x4   :  { %2252 = sst [smem:[#allocation26_spill]] %s2235_s4 }
   0x5   :  { %2253 = sst [smem:[#allocation27_spill]] %s2237_s6 }
   0x6   :  { %2254 = sst [smem:[#allocation28_spill]] %s2238_s7 }
   0x7   :  { %2255 = sst [smem:[#allocation29_spill]] %s2241_s10 }
   0x8   :  { %2256 = sst [smem:[#allocation30_spill]] %s2242_s11 }
   0x9   :  { %2257 = sst [smem:[#allocation31_spill]] %s2243_s12 }
   0xa   :  { %18 = vsyncpa [#allocation3], 0 }
   0xb   :  { %19 = vsyncpa [#allocation5], 0 }
   0xc   :  { %20 = vsyncpa [#allocation11], 0  ;;  %s1970_s21 = smov 0   ;;  %s1972_s22 = smov 0  }
   0xd   :  { %s1974_s23 = smov 0   ;;  %s1976_s24 = smov 0  }
   0xe   :  { %s1978_s25 = smov 0   ;;  %s1980_s26 = smov 0  }
   0xf   :  { %s1982_s27 = smov 0   ;;  %s1984_s28 = smov 0  }
  0x10 LB: > { %2258 = sst [smem:[#allocation17_spill]] %s1872_s23  ;;  %s2244_s29 = sadd.s32 4294967295, %s1892_s28   ;;  %s1892_s28 = sphi %s1984_s28, %s26_s28   ;;  %s1888_s27 = sphi %s1982_s27, %s2285_s27   ;;  %s1884_s26 = sphi %s1980_s26, %s2284_s26   ;;  %s1880_s25 = sphi %s1978_s25, %s2283_s25   ;;  %s1876_s24 = sphi %s1976_s24, %s2282_s24   ;;  %s1872_s23 = sphi %s1974_s23, %s2281_s23   ;;  %s1868_s22 = sphi %s1972_s22, %s2287_s22   ;;  %s1864_s21 = sphi %s1970_s21, %s2286_s21  }
  0x11   : > { %2259 = sst [smem:[#allocation18_spill]] %s1884_s26  ;;  %p128_p0 = scmp.ne.s32.totalorder %s1868_s22, %s1864_s21 }
  0x12   : > { %2260 = sst [smem:[#allocation19_spill]] %s1888_s27  ;;  %p2012_p1 = scmp.eq.s32.totalorder %s2244_s29, 0 }
  0x13   : > { %p1287_p2 = scmp.ge.s32.totalorder %s1892_s28, 1  ;;  %p359_p3 = scmp.lt.s32.totalorder %s1892_s28, 5 }
  0x14   : > { %p2020_p4 = por %p2012_p1, %p128_p0  ;;  %s2263_s1 = sld [smem:[#allocation23_spill]] }
  0x15   : > { %p2027_p5 = pnand %p1287_p2, %p359_p3  ;;  %s1894_s18 = smov [#allocation2]  }
  0x16   : > { %s373_s19 = sshll.u32 %s1894_s18, 4  ;;  %s35_s21 = sadd.s32 1, %s1884_s26  ;;  %s374_s19 = int_to_ptr.vmem [resolvable:$true] %s373_s19 }
  0x17   : > { %p1484_p6 = pneg %p2027_p5  ;;  %p36_p8 = scmp.ge.s32.totalorder %s35_s21, 2 }
  0x18   : > { %s38_s14 = sadd.s32 1, %s1888_s27  ;;  %s115_s15 = sadd.s32 1, %s1872_s23 }
  0x19   : > { %p2035_p7 = pnand %p1484_p6, %p2012_p1  ;;  %p122_p9 = scmp.ne.s32.totalorder %s1872_s23, %s1868_s22 }
  0x1a   : > { %s371_s16 = sshll.u32 %s2263_s1, 4  ;;  %s2289_s21 = smov (%p36_p8, %s35_s21), 0  ;;  %s372_s16 = int_to_ptr.hbm [resolvable:$true] %s371_s16 }
  0x1b   : > { %1487 = dma.hbm_to_vmem [thread:$0]  (!%p2035_p7), %s372_s16, 16, %s374_s19, [#allocation3]  }
  0x1c   : > { %2266 = sst [smem:[#allocation20_spill]] %s2289_s21  ;;  %s2291_s14 = smov (!%p36_p8, %s38_s14), %s1888_s27 }
  0x1d   : > { %s112_s18 = ssub.s32 %s1884_s26, %s2289_s21  ;;  %p123_p10 = scmp.eq.s32.totalorder %s1892_s28, 0 }
  0x1e   : > { %p40_p11 = scmp.ge.s32.totalorder %s2291_s14, 2  ;;  %p113_p12 = scmp.eq.s32.totalorder %s112_s18, 0 }
  0x1f   : > { %p2052_p13 = por %p123_p10, %p122_p9  ;;  %p1511_p0 = scmp.lt.s32.totalorder %s1892_s28, 4 }
  0x20   : > { %s2293_s14 = smov (%p40_p11, %s2291_s14), 0  ;;  %s443_s19 = sand.u32 1, %s1892_s28  }
  0x21   : > { %2268 = sst [smem:[#allocation21_spill]] %s2293_s14  ;;  %s445_s1 = sand.u32 1, %s1872_s23  }
  0x22   : > { %s2059_s16 = scalar_select %p113_p12, %s1872_s23, %s115_s15  }
  0x23   : > { %s2064_s11 = sshll.u32 %s445_s1, 4  ;;  %s2067_s27 = sshll.u32 %s1884_s26, 4 }
  0x24   : > { %2269 = sst [smem:[#allocation22_spill]] %s2059_s16  ;;  %s447_s7 = scalar_lea.vmem [#allocation6], %s2064_s11 }
  0x25   : > { %s2270_s3 = sld [smem:[#allocation25_spill]]  ;;  %s455_s12 = sshll.u32 %s447_s7, 4  ;;  %s456_s12 = int_to_ptr.vmem [resolvable:$true] %s455_s12 }
  0x26   : > { %p2076_p2 = pnand %p1511_p0, %p2052_p13  ;;  %s2272_s2 = sld [smem:[#allocation24_spill]] }
  0x27   : > { %s2083_s21 = scalar_lea.sflag [#allocation3], %s443_s19  ;;  %s1895_s7 = smov 128  }
  0x28   : > { %s1897_s29 = smov [#allocation4]   ;;  %s2273_s4 = sld [smem:[#allocation26_spill]] }
  0x29   : > { %s385_s18 = sshll.u32 %s1897_s29, 4  ;;  %s2274_s6 = sld [smem:[#allocation27_spill]]  ;;  %s386_s18 = int_to_ptr.vmem [resolvable:$true] %s385_s18 }
  0x2a   : > { %s1898_s26 = smov [#allocation9]  }
  0x2b   : > { %s452_s10 = scalar_lea.hbm %s2270_s3, %s2067_s27  ;;  %s469_s3 = scalar_lea.vmem [#allocation7], %s2064_s11 }
  0x2c   : > { %s453_s14 = sshll.u32 %s452_s10, 4  ;;  %s383_s16 = sshll.u32 %s2272_s2, 4  ;;  %s454_s14 = int_to_ptr.hbm [resolvable:$true] %s453_s14  ;;  %s384_s16 = int_to_ptr.hbm [resolvable:$true] %s383_s16 }
  0x2d   : > { %s1896_s10 = smov 8   ;;  %s477_s23 = sshll.u32 %s469_s3, 4  ;;  %s478_s23 = int_to_ptr.vmem [resolvable:$true] %s477_s23 }
  0x2e   : > { %1500 = dma.hbm_to_vmem [thread:$0]  (!%p2076_p2), %s454_s14, 256, %s456_s12, %s2083_s21, %s1895_s7, %s1895_s7, %s1896_s10  }
  0x2f   : > { %s474_s2 = scalar_lea.hbm %s2273_s4, %s2067_s27  ;;  %s394_s29 = sshll.u32 %s2274_s6, 4  ;;  %s395_s29 = int_to_ptr.hbm [resolvable:$true] %s394_s29 }
  0x30   : > { %1490 = dma.hbm_to_vmem [thread:$0]  (!%p2035_p7), %s384_s16, 16, %s386_s18, [#allocation5]  }
  0x31   : > { %s475_s19 = sshll.u32 %s474_s2, 4  ;;  %s396_s16 = sshll.u32 %s1898_s26, 4  ;;  %s476_s19 = int_to_ptr.hbm [resolvable:$true] %s475_s19  ;;  %s397_s16 = int_to_ptr.vmem [resolvable:$true] %s396_s16 }
  0x32   : > { %1503 = dma.hbm_to_vmem [thread:$0]  (!%p2076_p2), %s476_s19, 256, %s478_s23, %s2083_s21, %s1895_s7, %s1895_s7, %s1896_s10  }
  0x33   : > { %s411_s18 = sshll.u32 %s2239_s8, 4  ;;  %s1899_s23 = smov [#allocation10]   ;;  %s412_s18 = int_to_ptr.hbm [resolvable:$true] %s411_s18 }
  0x34   : > { %1493 = dma.hbm_to_vmem [thread:$0]  (!%p2035_p7), %s395_s29, 2048, %s397_s16, [#allocation5], %s1895_s7, %s1895_s7, %s1896_s10  }
  0x35   : > { %s413_s15 = sshll.u32 %s1899_s23, 4  ;;  %s1900_s19 = smov 64   ;;  %s414_s15 = int_to_ptr.vmem [resolvable:$true] %s413_s15 }
  0x36   : > { %s1901_s12 = smov 4   ;;  %s496_s2 = scalar_lea.hbm %s2236_s5, %s2067_s27 }
  0x37   : > { %1496 = dma.hbm_to_vmem [thread:$0]  (!%p2035_p7), %s412_s18, 1024, %s414_s15, [#allocation11], %s1900_s19, %s1900_s19, %s1901_s12  }
  0x38   : > { %s497_s3 = sshll.u32 %s496_s2, 4  ;;  %s491_s4 = scalar_lea.vmem [#allocation8], %s2064_s11  ;;  %s498_s3 = int_to_ptr.hbm [resolvable:$true] %s497_s3 }
  0x39   : > { %s499_s6 = sshll.u32 %s491_s4, 4  ;;  %511 = sbr.rel (%p2027_p5) target bundleno = 616 (0x268), region = 60  ;;  %s500_s6 = int_to_ptr.vmem [resolvable:$true] %s499_s6 }
  0x3a   : > { %1506 = dma.hbm_to_vmem [thread:$0]  (!%p2076_p2), %s498_s3, 256, %s500_s6, %s2083_s21, %s1895_s7, %s1895_s7, %s1896_s10  }
  0x3e   : > { %1843 = dma.done.wait (%p2012_p1), [#allocation3], 16  }
  0x3f   : > { %1845 = vsyncadd (%p2012_p1), [#allocation3], 4294967280 }
  0x40   : > { %1847 = dma.done.wait (%p2012_p1), [#allocation5], 16  }
  0x41   : > { %1849 = vsyncadd (%p2012_p1), [#allocation5], 4294967280  ;;  %s2275_s4 = sadd.s32 4294967295, %s1892_s28   ;;  %s525_s11 = sand.u32 1, %s1868_s22  }
  0x42   : > { %s523_s6 = sand.u32 1, %s2275_s4   ;;  %s2141_s27 = sshll.u32 %s525_s11, 4 }
  0x43   : > { %s524_s17 = scalar_lea.sflag [#allocation3], %s523_s6  ;;  %s527_s20 = scalar_lea.vmem [#allocation6], %s2141_s27 }
  0x44   : > { %1851 = dma.done.wait (%p2020_p4), %s524_s17, 768  }
  0x45   : > { %1853 = vsyncadd (%p2020_p4), %s524_s17, 4294966528  ;;  %s537_s1 = scalar_lea.vmem [#allocation7], %s2141_s27  ;;  %s547_s21 = scalar_lea.vmem [#allocation8], %s2141_s27 }
  0x46   : > { %1855 = dma.done.wait (%p2012_p1), [#allocation5], 2048  }
  0x47   : > { %1857 = vsyncadd (%p2012_p1), [#allocation5], 4294965248 }
  0x48   : > { %1859 = dma.done.wait (%p2012_p1), [#allocation11], 1024  }
  0x49   : > { %1861 = vsyncadd (%p2012_p1), [#allocation11], 4294966272  ;;  %s1310_s13 = sshll.u32 %s1876_s24, 1  ;;  %p641_p3 = scmp.lt.s32.totalorder %s1880_s25, 1  ;;  %v1902_v2 = vmov 128.0   ;;  %v1446_v17 = vld [vmem:[#allocation10 + $0x38] sm:$0xff] }
  0x4a   : > { %p643_p4 = scmp.lt.s32.totalorder %s1310_s13, 3  ;;  %1594 = vrcp.f32 %v1902_v2  ;;  %968 = vmatpush.bf16.msra.mxu2 %v1446_v17  ;;  %v1445_v18 = vld [vmem:[#allocation10 + $0x30] sm:$0xff]  ;;  %v1444_v19 = vld [vmem:[#allocation10 + $0x28] sm:$0xff]  ;;  %v1443_v20 = vld [vmem:[#allocation10 + $0x20] sm:$0xff]  ;;  %s1903_s24 = smov 16  }
  0x4b   : > { %s2295_s25 = smov (!%p641_p3, %s1880_s25), 1  ;;  %v1442_v21 = vld [vmem:[#allocation10 + $0x18] sm:$0xff]  ;;  %v1441_v22 = vld [vmem:[#allocation10 + $0x10] sm:$0xff]  ;;  %v1440_v23 = vld [vmem:[#allocation10 + $0x8] sm:$0xff]  ;;  %s2276_s26 = sld [smem:[#allocation31_spill]] }
  0x4c   : > { %s2297_s13 = smov (!%p643_p4, %s1310_s13), 3  ;;  %s1311_s7 = sshll.u32 %s2295_s25, 2  ;;  %v1439_v25 = vld [vmem:[#allocation10] sm:$0xff]  ;;  %v1591_v39 = vld [vmem:[#allocation2] ss:$0 sm:$0xff] }
  0x4d   : > { %s2161_s10 = sadd.s32 %s1311_s7, %s2297_s13  ;;  %v1592_v43 = vld [vmem:[#allocation4] ss:$0 sm:$0xff]  ;;  %s1904_s25 = smov 112   ;;  %v1380_v54 = vld [vmem:[#allocation9 + $0x70] sm:$0xf] }
  0x4e   : > { %s1312_s29 = sshll.u32 %s2161_s10, 3  ;;  %969 = vmatpush.bf16.msra.mxu2 %v1445_v18  ;;  %v1438_v55 = vld [vmem:[#allocation9 + $0x74] sm:$0xf0]  ;;  %v1437_v56 = vld [vmem:[#allocation9 + $0x74] sm:$0xf]  ;;  %s1315_s19 = sshll.u32 %s2161_s10, 2 }
  0x4f   : > { %s648_s23 = scalar_lea.vmem %s2231_s0, %s1312_s29  ;;  %v1381_v57 = vor.u32 %v1438_v55, %v1380_v54  ;;  %v1382_v58 = vld [vmem:[#allocation9 + $0x78] sm:$0xf0]  ;;  %v1372_v60 = vld [vmem:[#allocation9 + $0x60] sm:$0xf]  ;;  %v1436_v61 = vld [vmem:[#allocation9 + $0x64] sm:$0xf0] }
  0x50   : > { %v683_v0 = vld [vmem:[%s648_s23] sm:$0xff]  ;;  %v684_v1 = vld [vmem:[%s648_s23 + $0x8] sm:$0xff]  ;;  %v1595_v3 = vpop.eup %1594  ;;  %v1385_v59 = vor.u32 %v1437_v56, %v1382_v58  ;;  %v1373_v63 = vor.u32 %v1436_v61, %v1372_v60  ;;  %v1364_v2 = vld [vmem:[#allocation9 + $0x50] sm:$0xf]  ;;  %s2277_s6 = sld [smem:[#allocation28_spill]] }
  0x51   : > { %685 = vadd.xlane.f32.xlu0 %v683_v0  ;;  %v690_v4 = vmul.f32 128.0, %v1595_v3  ;;  %vm694_vm0 = vweird.f32 %v1595_v3  ;;  %871 = vmatpush.bf16.msra.mxu0 %v1381_v57  ;;  %v1435_v62 = vld [vmem:[#allocation9 + $0x64] sm:$0xf]  ;;  %v1350_v17 = vld [vmem:[#allocation9 + $0x38] sm:$0xf0]  ;;  %s681_s2 = scalar_lea.vmem %s2276_s26, %s1315_s19  ;;  %s2278_s17 = sld [smem:[#allocation29_spill]] }
  0x52   : > { %970 = vmatpush.bf16.msra.mxu2 %v1444_v19  ;;  %885 = vmatpush.bf16.msra.mxu1 %v1385_v59  ;;  %s2279_s13 = sld [smem:[#allocation30_spill]] }
  0x53   : > { %v691_v5 = vsub.f32 1.0, %v690_v4  ;;  %v1433_v4 = vld [vmem:[#allocation9 + $0x54] sm:$0xf] }
  0x55   : > { %v692_v6 = vmul.f32 %v1595_v3, %v691_v5  ;;  %872 = vmatpush.bf16.msra.mxu0 %v1373_v63 }
  0x56   : > { %971 = vmatpush.bf16.msra.mxu2 %v1443_v20  ;;  %v1340_v20 = vld [vmem:[#allocation9 + $0x20] sm:$0xf] }
  0x57   : > { %v693_v7 = vadd.f32 %v1595_v3, %v692_v6  ;;  %v1366_v6 = vld [vmem:[#allocation9 + $0x58] sm:$0xf0] }
  0x58   : > { %s671_s7 = scalar_lea.vmem %s2279_s13, %s1315_s19 }
  0x59   : > { %687 = vadd.xlane.f32.xlu0 %v684_v1  ;;  %v695_v8 = vsel %vm694_vm0, %v1595_v3, %v693_v7  ;;  %v1434_v3 = vld [vmem:[#allocation9 + $0x54] sm:$0xf0]  ;;  %v1369_v7 = vor.u32 %v1433_v4, %v1366_v6 }
  0x5a   : > { %972 = vmatpush.bf16.msra.mxu2 %v1442_v21  ;;  %v1365_v5 = vor.u32 %v1434_v3, %v1364_v2  ;;  %v1428_v21 = vld [vmem:[#allocation9 + $0x24] sm:$0xf0]  ;;  %v785_v3 = vld [vmem:[%s2277_s6] sm:$0x3] }
  0x5b   : > { %v787_v4 = vperm.slane %v785_v3, 0 }
  0x5c   : > { %873 = vmatpush.bf16.msra.mxu0 %v1365_v5  ;;  %v788_v5 = vperm.slane %v785_v3, 1 }
  0x5e   : > { %973 = vmatpush.bf16.msra.mxu2 %v1441_v22  ;;  %v1427_v22 = vld [vmem:[#allocation9 + $0x24] sm:$0xf] }
  0x62   : > { %974 = vmatpush.bf16.msra.mxu2 %v1440_v23  ;;  %v1341_v23 = vor.u32 %v1428_v21, %v1340_v20 }
  0x66   : > { %975 = vmatpush.bf16.msra.mxu2 %v1439_v25 }
  0xc4   : > { %v686_v9 = vpop.xlane.xlu0 %685 }
  0xc5   : > { %v696_v10 = vmul.f32 %v695_v8, %v686_v9  ;;  %v1432_v9 = vld [vmem:[#allocation9 + $0x44] sm:$0xf0] }
  0xc7   : > { %v698_v11 = vsub.f32 %v683_v0, %v696_v10  ;;  %v1374_v0 = vld [vmem:[#allocation9 + $0x68] sm:$0xf0]  ;;  %v1431_v10 = vld [vmem:[#allocation9 + $0x44] sm:$0xf] }
  0xc9   : > { %v700_v12 = vmul.f32 %v698_v11, %v698_v11 }
  0xcb   : > { %702 = vadd.xlane.f32.xlu1 %v700_v12 }
  0xcc   : > { %v688_v13 = vpop.xlane.xlu0 %687 }
  0xcd   : > { %v697_v14 = vmul.f32 %v695_v8, %v688_v13 }
  0xcf   : > { %v699_v15 = vsub.f32 %v684_v1, %v697_v14  ;;  %v1377_v1 = vor.u32 %v1435_v62, %v1374_v0  ;;  %v1348_v14 = vld [vmem:[#allocation9 + $0x30] sm:$0xf]  ;;  %v1593_v62 = vld [vmem:[%s2240_s9] ss:$0 sm:$0xff] }
  0xd1   : > { %v701_v16 = vmul.f32 %v699_v15, %v699_v15  ;;  %886 = vmatpush.bf16.msra.mxu1 %v1377_v1 }
  0xd3   : > { %704 = vadd.xlane.f32.xlu1 %v701_v16  ;;  %v1429_v16 = vld [vmem:[#allocation9 + $0x34] sm:$0xf] }
  0xd4   : > { %v1353_v19 = vor.u32 %v1429_v16, %v1350_v17 }
  0xd5   : > { %887 = vmatpush.bf16.msra.mxu1 %v1369_v7 }
 0x13e   : > { %v703_v24 = vpop.xlane.xlu1 %702 }
 0x13f   : > { %v706_v26 = vmul.f32 %v703_v24, %v695_v8  ;;  %v1342_v24 = vld [vmem:[#allocation9 + $0x28] sm:$0xf0] }
 0x140   : > { %v1345_v25 = vor.u32 %v1427_v22, %v1342_v24 }
 0x141   : > { %v708_v27 = vadd.f32 1e-05, %v706_v26  ;;  %v1332_v26 = vld [vmem:[#allocation9 + $0x10] sm:$0xf] }
 0x143   : > { %1596 = vrsqrt.f32 %v708_v27  ;;  %vm716_vm2 = vweird.f32 %v708_v27 }
 0x146   : > { %v705_v28 = vpop.xlane.xlu1 %704 }
 0x147   : > { %v707_v29 = vmul.f32 %v705_v28, %v695_v8  ;;  %v1356_v8 = vld [vmem:[#allocation9 + $0x40] sm:$0xf]  ;;  %v1425_v28 = vld [vmem:[#allocation9 + $0x14] sm:$0xf] }
 0x148   : > { %v1357_v12 = vor.u32 %v1432_v9, %v1356_v8 }
 0x149   : > { %v1597_v30 = vpop.eup %1596  ;;  %v709_v31 = vadd.f32 1e-05, %v707_v29 }
 0x14a   : > { %v711_v32 = vmul.f32 %v1597_v30, %v708_v27  ;;  %vm717_vm1 = vweird.f32 %v1597_v30  ;;  %874 = vmatpush.bf16.msra.mxu0 %v1357_v12  ;;  %v1426_v27 = vld [vmem:[#allocation9 + $0x14] sm:$0xf0] }
 0x14b   : > { %1598 = vrsqrt.f32 %v709_v31  ;;  %vm718_vm3 = vmor %vm716_vm2, %vm717_vm1  ;;  %vm726_vm5 = vweird.f32 %v709_v31  ;;  %v1333_v29 = vor.u32 %v1426_v27, %v1332_v26 }
 0x14c   : > { %v712_v33 = vmul.f32 %v1597_v30, %v711_v32  ;;  %v1324_v32 = vld [vmem:[#allocation9] sm:$0xf] }
 0x14e   : > { %v713_v34 = vmul.f32 0.5, %v712_v33  ;;  %v1424_v33 = vld [vmem:[#allocation9 + $0x4] sm:$0xf0] }
 0x150   : > { %v714_v35 = vsub.f32 1.5, %v713_v34  ;;  %v1423_v34 = vld [vmem:[#allocation9 + $0x4] sm:$0xf] }
 0x151   : > { %v1599_v36 = vpop.eup %1598 }
 0x152   : > { %v715_v37 = vmul.f32 %v1597_v30, %v714_v35  ;;  %v721_v38 = vmul.f32 %v1599_v36, %v709_v31  ;;  %vm727_vm4 = vweird.f32 %v1599_v36  ;;  %v1325_v35 = vor.u32 %v1424_v33, %v1324_v32 }
 0x153   : > { %vm728_vm6 = vmor %vm726_vm5, %vm727_vm4 }
 0x154   : > { %v719_v40 = vsel %vm718_vm3, %v1597_v30, %v715_v37  ;;  %v722_v41 = vmul.f32 %v1599_v36, %v721_v38  ;;  %v1334_v30 = vld [vmem:[#allocation9 + $0x18] sm:$0xf0] }
 0x155   : > { %v730_v42 = vmul.f32 %v719_v40, %v698_v11  ;;  %v1358_v11 = vld [vmem:[#allocation9 + $0x48] sm:$0xf0]  ;;  %v1337_v31 = vor.u32 %v1425_v28, %v1334_v30 }
 0x156   : > { %v723_v44 = vmul.f32 0.5, %v722_v41  ;;  %v1361_v13 = vor.u32 %v1431_v10, %v1358_v11  ;;  %v753_v40 = vld [vmem:[%s537_s1 + $0x8] sm:$0xff] }
 0x157   : > { %v736_v45 = vmul.f32 %v1591_v39, %v730_v42  ;;  %v744_v42 = vld [vmem:[%s527_s20] sm:$0xff] }
 0x158   : > { %v724_v46 = vsub.f32 1.5, %v723_v44  ;;  %888 = vmatpush.bf16.msra.mxu1 %v1361_v13  ;;  %v762_v44 = vld [vmem:[%s547_s21] sm:$0xff] }
 0x159   : > { %v2167_v47 = vadd.f32 %v1592_v43, %v736_v45 }
 0x15a   : > { %v725_v48 = vmul.f32 %v1599_v36, %v724_v46 }
 0x15b   : > { %758 = vrot.lane.b32.xlu0 %v2167_v47, %s1903_s24  ;;  %748 = vrot.lane.b32.xlu2 %v2167_v47, %s1904_s25 }
 0x15c   : > { %v729_v49 = vsel %vm728_vm6, %v1599_v36, %v725_v48  ;;  %889 = vmatpush.bf16.msra.mxu1 %v1353_v19  ;;  %v1326_v36 = vld [vmem:[#allocation9 + $0x8] sm:$0xf0] }
 0x15d   : > { %v731_v50 = vmul.f32 %v729_v49, %v699_v15  ;;  %v1430_v15 = vld [vmem:[#allocation9 + $0x34] sm:$0xf0]  ;;  %v1329_v37 = vor.u32 %v1423_v34, %v1326_v36 }
 0x15e   : > { %v1349_v18 = vor.u32 %v1430_v15, %v1348_v14  ;;  %v763_v49 = vld [vmem:[%s547_s21 + $0x8] sm:$0xff] }
 0x15f   : > { %v737_v51 = vmul.f32 %v1591_v39, %v731_v50  ;;  %v752_v39 = vld [vmem:[%s537_s1] sm:$0xff]  ;;  %v746_v50 = vmul.f32 %v744_v42, %v2167_v47 }
 0x160   : > { %875 = vmatpush.bf16.msra.mxu0 %v1349_v18  ;;  %890 = vmatpush.bf16.msra.mxu1 %v1345_v25 }
 0x161   : > { %v2171_v52 = vadd.f32 %v1592_v43, %v737_v51  ;;  %v745_v43 = vld [vmem:[%s527_s20 + $0x8] sm:$0xff]  ;;  %s661_s20 = scalar_lea.vmem %s2278_s17, %s1315_s19 }
 0x163   : > { %760 = vrot.lane.b32.xlu1 %v2171_v52, %s1903_s24  ;;  %750 = vrot.lane.b32.xlu2 %v2171_v52, %s1904_s25  ;;  %v899_v53 = vpack.c.bf16 %v2171_v52, %v2167_v47  ;;  %v747_v51 = vmul.f32 %v745_v43, %v2171_v52 }
 0x164   : > { %876 = vmatpush.bf16.msra.mxu0 %v1341_v23  ;;  %891 = vmatpush.bf16.msra.mxu1 %v1337_v31 }
 0x165   : > { %976 = vmatmul.bf16.vlgmr.msra.gmra.mxu2 %v899_v53 }
 0x168   : > { %877 = vmatpush.bf16.msra.mxu0 %v1333_v29  ;;  %892 = vmatpush.bf16.msra.mxu1 %v1329_v37 }
 0x16c   : > { %878 = vmatpush.bf16.msra.mxu0 %v1325_v35 }
 0x1b5   : > { %v749_v38 = vpop.permute.xlu2 %748 }
 0x1b6   : > { %v754_v46 = vmul.f32 %v752_v39, %v749_v38 }
 0x1b8   : > { %v756_v55 = vadd.f32 %v754_v46, %v746_v50 }
 0x1bd   : > { %v751_v41 = vpop.permute.xlu2 %750 }
 0x1be   : > { %v755_v48 = vmul.f32 %v753_v40, %v751_v41 }
 0x1c0   : > { %v757_v56 = vadd.f32 %v755_v48, %v747_v51 }
 0x1cd   : > { %v759_v45 = vpop.permute.xlu0 %758 }
 0x1ce   : > { %v764_v53 = vmul.f32 %v762_v44, %v759_v45 }
 0x1d0   : > { %v766_v58 = vadd.f32 %v764_v53, %v756_v55 }
 0x1d5   : > { %v761_v54 = vpop.permute.xlu1 %760 }
 0x1d6   : > { %v765_v57 = vmul.f32 %v763_v49, %v761_v54 }
 0x1d8   : > { %v767_v59 = vadd.f32 %v765_v57, %v757_v56 }
 0x1da   : > { %v768_v60 = vpack.c.bf16 %v767_v59, %v766_v58 }
 0x1dc   : > { %879 = vmatmul.bf16.vlgmr.msra.gmra.mxu0 %v768_v60  ;;  %893 = vmatmul.bf16.vlgmr.msra.gmra.mxu1 %v768_v60 }
 0x1e8   : > { %v977_v61 = vpop.f32.mrf.mxu2 }
 0x1e9   : > { %v978_v47 = vadd.f32 %v1593_v62, %v977_v61 }
 0x1f0   : > { %v979_v63 = vpop.f32.mrf.mxu2 }
 0x1f1   : > { %v980_v0 = vadd.f32 %v1593_v62, %v979_v63 }
 0x1f3   : > { %v1460_v52 = vpack.c.bf16 %v980_v0, %v978_v47 }
 0x1f5   : > { %1461 = vst [vmem:[%s681_s2] sm:$0xff] %v1460_v52  }
 0x259   : > { %v880_v1 = vpop.f32.mrf.mxu0  ;;  %v894_v2 = vpop.f32.mrf.mxu1 }
 0x25a   : > { %v881_v8 = vadd.f32 %v880_v1, %v787_v4  ;;  %v895_v9 = vadd.f32 %v894_v2, %v788_v5 }
 0x261   : > { %v882_v6 = vpop.f32.mrf.mxu0  ;;  %v896_v7 = vpop.f32.mrf.mxu1 }
 0x262   : > { %v883_v10 = vadd.f32 %v882_v6, %v787_v4  ;;  %v897_v11 = vadd.f32 %v896_v7, %v788_v5 }
 0x264   : > { %v1450_v12 = vpack.c.bf16 %v883_v10, %v881_v8  ;;  %v1455_v13 = vpack.c.bf16 %v897_v11, %v895_v9 }
 0x266   : > { %1451 = vst [vmem:[%s661_s20] sm:$0xff] %v1450_v12  }
 0x267   : > { %1456 = vst [vmem:[%s671_s7] sm:$0xff] %v1455_v13  }
 0x268 PF: > { %s26_s28 = sadd.s32 1, %s1892_s28   ;;  %s2280_s10 = sld [smem:[#allocation17_spill]] }
 0x269   : > { %p23_p1 = scmp.ge.s32.totalorder %s26_s28, 6   ;;  %s2281_s23 = sld [smem:[#allocation22_spill]] }
 0x26a   : > { %s2282_s24 = sld [smem:[#allocation18_spill]]  ;;  %s2286_s21 = smov %s1868_s22 }
 0x26b   : > { %s2283_s25 = sld [smem:[#allocation19_spill]]  ;;  %25 = sbr.rel (!%p23_p1) target bundleno = 16 (0x10), region = 164 }
 0x26c   : > { %s2284_s26 = sld [smem:[#allocation20_spill]] }
 0x26d   : > { %s2285_s27 = sld [smem:[#allocation21_spill]] }
 0x26e   : > { %s2287_s22 = smov %s2280_s10 }
 0x270   :  { %1074 = vsyncpa [#allocation3], 1 }
 0x271   :  { %1076 = vsyncpa [#allocation3 + $0x1], 1 }
 0x272   :  { %1077 = vsyncpa [#allocation5], 1 }
 0x273   :  { %1078 = vsyncpa [#allocation11], 1 }

// kernel: conformer_layer_forward.7
= control target key start
LH: loop header
LB: loop body
LE: loop exit
PB: predicated region body
PF: predicated region fallthrough
CT: control target
= control target key end

     0   :  { %s2012_s0 = inlined_call_operand.hbm [shape: f32[64,128], index: 0, kind: input, shape index: {}]   ;;  %s2013_s1 = inlined_call_operand.hbm [shape: f32[1,128], index: 1, kind: input, shape index: {}]   ;;  %s2014_s2 = inlined_call_operand.hbm [shape: f32[1,128], index: 2, kind: input, shape index: {}]   ;;  %s2015_s3 = inlined_call_operand.hbm [shape: bf16[128,256], index: 3, kind: input, shape index: {}]   ;;  %s2016_s4 = inlined_call_operand.hbm [shape: f32[1,256], index: 4, kind: input, shape index: {}]   ;;  %s2017_s5 = inlined_call_operand.hbm [shape: bf16[256,128], index: 5, kind: input, shape index: {}]   ;;  %s2018_s6 = inlined_call_operand.hbm [shape: f32[1,128], index: 6, kind: input, shape index: {}]   ;;  %s2019_s7 = inlined_call_operand.hbm [shape: f32[1,128], index: 7, kind: input, shape index: {}]   ;;  %s2020_s8 = inlined_call_operand.hbm [shape: f32[1,128], index: 8, kind: input, shape index: {}]   ;;  %s2021_s9 = inlined_call_operand.vmem [shape: f32[64,128], index: 9, kind: output, shape index: {}]  }
   0x1   :  { %2025 = sst [smem:[#allocation21_spill]] %s2013_s1 }
   0x2   :  { %14 = vsyncpa [#allocation3], 0 }
   0x3   :  { %16 = vsyncpa [#allocation3 + $0x1], 0 }
   0x4   :  { %17 = vsyncpa [#allocation5], 0 }
   0x5   :  { %18 = vsyncpa [#allocation8], 0 }
   0x6   :  { %19 = vsyncpa [#allocation11], 0 }
   0x7   :  { %20 = vsyncpa [#allocation14], 0  ;;  %s1789_s30 = smov 0   ;;  %s1791_s10 = smov 0  }
   0x8   :  { %s1793_s11 = smov 0   ;;  %s1795_s12 = smov 0  }
   0x9 LB: > { %s2026_s1 = sld [smem:[#allocation21_spill]]  ;;  %s2022_s16 = sadd.s32 4294967295, %s1724_s12   ;;  %s1724_s12 = sphi %s1795_s12, %s2042_s12   ;;  %s1720_s11 = sphi %s1793_s11, %s2041_s11   ;;  %s1716_s10 = sphi %s1791_s10, %s2040_s10   ;;  %s1712_s30 = sphi %s1789_s30, %s2039_s30  }
   0xa   : > { %p1062_p0 = scmp.ge.s32.totalorder %s1724_s12, 1  ;;  %p1816_p1 = scmp.eq.s32.totalorder %s2022_s16, 0 }
   0xb   : > { %p251_p2 = scmp.lt.s32.totalorder %s1724_s12, 5  ;;  %s1726_s19 = smov [#allocation4]  }
   0xc   : > { %s265_s20 = sshll.u32 %s1726_s19, 4  ;;  %s286_s23 = sshll.u32 %s2015_s3, 4  ;;  %s266_s20 = int_to_ptr.vmem [resolvable:$true] %s265_s20  ;;  %s287_s23 = int_to_ptr.hbm [resolvable:$true] %s286_s23 }
   0xd   : > { %p1821_p3 = pnand %p1062_p0, %p251_p2  ;;  %s1727_s25 = smov [#allocation7]  }
   0xe   : > { %s288_s26 = sshll.u32 %s1727_s25, 4  ;;  %s2023_s27 = smov 128   ;;  %s289_s26 = int_to_ptr.vmem [resolvable:$true] %s288_s26 }
   0xf   : > { %s263_s15 = sshll.u32 %s2026_s1, 4  ;;  %p1288_p4 = pneg %p1821_p3  ;;  %s264_s15 = int_to_ptr.hbm [resolvable:$true] %s263_s15 }
  0x10   : > { %s2024_s28 = smov 8   ;;  %s312_s14 = sshll.u32 %s2017_s5, 4  ;;  %s313_s14 = int_to_ptr.hbm [resolvable:$true] %s312_s14 }
  0x11   : > { %p1832_p5 = pnand %p1288_p4, %p1816_p1  ;;  %s1730_s19 = smov [#allocation10]  }
  0x12   : > { %s314_s21 = sshll.u32 %s1730_s19, 4  ;;  %s1732_s16 = smov 4   ;;  %s315_s21 = int_to_ptr.vmem [resolvable:$true] %s314_s21 }
  0x13   : > { %1291 = dma.hbm_to_vmem [thread:$0]  (!%p1832_p5), %s264_s15, 16, %s266_s20, [#allocation5]  }
  0x14   : > { %1297 = dma.hbm_to_vmem [thread:$0]  (!%p1832_p5), %s287_s23, 2048, %s289_s26, [#allocation8], %s2023_s27, %s2023_s27, %s2024_s28  }
  0x15   : > { %s339_s15 = sshll.u32 %s2019_s7, 4  ;;  %s1731_s20 = smov 64   ;;  %s340_s15 = int_to_ptr.hbm [resolvable:$true] %s339_s15 }
  0x16   : > { %1303 = dma.hbm_to_vmem [thread:$0]  (!%p1832_p5), %s313_s14, 2048, %s315_s21, [#allocation11], %s1731_s20, %s1731_s20, %s1732_s16  }
  0x17   : > { %s1733_s23 = smov [#allocation13]   ;;  %s275_s13 = sshll.u32 %s2014_s2, 4  ;;  %s276_s13 = int_to_ptr.hbm [resolvable:$true] %s275_s13 }
  0x18   : > { %s341_s26 = sshll.u32 %s1733_s23, 4  ;;  %s301_s25 = sshll.u32 %s2016_s4, 4  ;;  %s342_s26 = int_to_ptr.vmem [resolvable:$true] %s341_s26  ;;  %s302_s25 = int_to_ptr.hbm [resolvable:$true] %s301_s25 }
  0x19   : > { %1309 = dma.hbm_to_vmem [thread:$0]  (!%p1832_p5), %s340_s15, 16, %s342_s26, [#allocation14]  }
  0x1a   : > { %s1734_s28 = smov [#allocation6]   ;;  %s1735_s16 = smov [#allocation9]  }
  0x1b   : > { %s277_s1 = sshll.u32 %s1734_s28, 4  ;;  %s303_s27 = sshll.u32 %s1735_s16, 4  ;;  %s278_s1 = int_to_ptr.vmem [resolvable:$true] %s277_s1  ;;  %s304_s27 = int_to_ptr.vmem [resolvable:$true] %s303_s27 }
  0x1c   : > { %1294 = dma.hbm_to_vmem [thread:$0]  (!%p1832_p5), %s276_s13, 16, %s278_s1, [#allocation5]  }
  0x1d   : > { %s327_s15 = sshll.u32 %s2018_s6, 4  ;;  %s351_s1 = sshll.u32 %s2020_s8, 4  ;;  %s328_s15 = int_to_ptr.hbm [resolvable:$true] %s327_s15  ;;  %s352_s1 = int_to_ptr.hbm [resolvable:$true] %s351_s1 }
  0x1e   : > { %1300 = dma.hbm_to_vmem [thread:$0]  (!%p1832_p5), %s302_s25, 32, %s304_s27, [#allocation8]  }
  0x1f   : > { %s1736_s23 = smov [#allocation12]   ;;  %s1737_s29 = smov [#allocation15]  }
  0x20   : > { %s329_s26 = sshll.u32 %s1736_s23, 4  ;;  %s353_s13 = sshll.u32 %s1737_s29, 4  ;;  %s330_s26 = int_to_ptr.vmem [resolvable:$true] %s329_s26  ;;  %s354_s13 = int_to_ptr.vmem [resolvable:$true] %s353_s13 }
  0x21   : > { %1306 = dma.hbm_to_vmem [thread:$0]  (!%p1832_p5), %s328_s15, 16, %s330_s26, [#allocation11]  }
  0x22   : > { %1312 = dma.hbm_to_vmem [thread:$0]  (!%p1832_p5), %s352_s1, 16, %s354_s13, [#allocation14]  }
  0x23   : > { %s1874_s19 = sadd.s32 1, %s1724_s12   ;;  %s33_s25 = sadd.s32 1, %s1720_s11 }
  0x24   : > { %s30_s22 = ssub.s32 %s1724_s12, %s1874_s19  ;;  %p40_p7 = scmp.ne.s32.totalorder %s1720_s11, %s1716_s10 }
  0x25   : > { %p31_p6 = scmp.eq.s32.totalorder %s30_s22, 0  ;;  %p41_p8 = scmp.eq.s32.totalorder %s1724_s12, 0 }
  0x26   : > { %p46_p9 = scmp.ne.s32.totalorder %s1716_s10, %s1712_s30  ;;  %p1325_p11 = scmp.lt.s32.totalorder %s1724_s12, 4 }
  0x27   : > { %s1885_s16 = scalar_select %p31_p6, %s1720_s11, %s33_s25  }
  0x28   : > { %p1889_p10 = por %p1816_p1, %p46_p9  ;;  %s364_s14 = sand.u32 1, %s1720_s11  }
  0x29   : > { %s1221_s24 = sshll.u32 %s1724_s12, 4  ;;  %p42_p12 = por %p41_p8, %p40_p7 }
  0x2a   : > { %s1072_s21 = sshll.u32 %s364_s14, 4  ;;  %s373_s20 = scalar_lea.hbm %s2012_s0, %s1221_s24 }
  0x2b   : > { %s374_s1 = sshll.u32 %s373_s20, 4  ;;  %s368_s23 = scalar_lea.vmem [#allocation2], %s1072_s21  ;;  %s375_s1 = int_to_ptr.hbm [resolvable:$true] %s374_s1 }
  0x2c   : > { %s376_s26 = sshll.u32 %s368_s23, 4  ;;  %p1899_p13 = pnand %p1325_p11, %p42_p12  ;;  %s377_s26 = int_to_ptr.vmem [resolvable:$true] %s376_s26 }
  0x2d   : > { %s365_s29 = scalar_lea.sflag [#allocation3], %s364_s14  ;;  %s1644_s13 = sshra.s32 %s375_s1, 4  ;;  %s1645_s13 = int_to_ptr.hbm [resolvable:$true] %s1644_s13 }
  0x2e   : > { %s1646_s22 = scalar_lea.hbm %s1645_s13, 16  ;;  %p1648_p2 = pneg %p1899_p13 }
  0x2f   : > { %p1647_p0 = scmp.ne.s32.totalorder %s1645_s13, %s1646_s22  ;;  %s1651_s21 = scalar_lea.hbm %s2012_s0, 64 }
  0x30   : > { %p1652_p6 = scmp.lt.s32.totalorder %s1645_s13, %s2012_s0  ;;  %p1653_p7 = scmp.lt.s32.totalorder %s1651_s21, %s1646_s22 }
  0x31   : > { %p1649_p4 = pnand %p1648_p2, %p1647_p0 }
  0x32   : > { %p1654_p8 = por %p1653_p7, %p1652_p6 }
  0x33   : > { %p1650_p5 = pneg %p1649_p4 }
  0x35   : > { %p1655_p9 = pnand %p1654_p8, %p1650_p5 }
  0x37   : > { %1658 = shalt.err (!%p1655_p9)
}
  0x38   : > { %s2032_s14 = smov 8   ;;  %s2033_s20 = smov 128  }
  0x39   : > { %1316 = dma.hbm_to_vmem [thread:$0]  (!%p1899_p13), %s375_s1, 256, %s377_s26, %s365_s29, %s2033_s20, %s2033_s20, %s2032_s14  }
  0x3a   : > { %388 = sbr.rel (%p1821_p3) target bundleno = 667 (0x29b), region = 56  ;;  %s390_s23 = sand.u32 (!%p1821_p3), 1, %s1716_s10  }
  0x3b   : > { %s1076_s25 = sshll.u32 (!%p1821_p3), %s390_s23, 4  ;;  %s391_s24 = scalar_lea.sflag (!%p1821_p3), [#allocation3], %s390_s23 }
  0x3c   : > { %s394_s15 = scalar_lea.vmem (!%p1821_p3), [#allocation2], %s1076_s25 }
  0x3f   : > { %1691 = dma.done.wait (%p1889_p10), %s391_s24, 256  }
  0x40   : > { %1693 = vsyncadd (%p1889_p10), %s391_s24, 4294967040 }
  0x41   : > { %1695 = dma.done.wait (%p1816_p1), [#allocation5], 32  }
  0x42   : > { %1697 = vsyncadd (%p1816_p1), [#allocation5], 4294967264 }
  0x43   : > { %1699 = dma.done.wait (%p1816_p1), [#allocation8], 2080  }
  0x44   : > { %1701 = vsyncadd (%p1816_p1), [#allocation8], 4294965216 }
  0x45   : > { %1703 = dma.done.wait (%p1816_p1), [#allocation11], 2064  }
  0x46   : > { %1705 = vsyncadd (%p1816_p1), [#allocation11], 4294965232 }
  0x47   : > { %1707 = dma.done.wait (%p1816_p1), [#allocation14], 32  }
  0x48   : > { %1709 = vsyncadd (%p1816_p1), [#allocation14], 4294967264  ;;  %v1939_v0 = vld [vmem:[%s394_s15] sm:$0xff]  ;;  %v1942_v1 = vld [vmem:[%s394_s15 + $0x8] sm:$0xff]  ;;  %v1738_v2 = vmov 128.0   ;;  %s2038_s17 = sadd.s32 4294967295, %s1724_s12  }
  0x49   : > { %479 = vadd.xlane.f32.xlu0 %v1939_v0  ;;  %1382 = vrcp.f32 %v1738_v2  ;;  %v1145_v17 = vld [vmem:[#allocation7 + $0x70] sm:$0xf]  ;;  %v1237_v18 = vld [vmem:[#allocation7 + $0x74] sm:$0xf0]  ;;  %v1236_v19 = vld [vmem:[#allocation7 + $0x74] sm:$0xf] }
  0x4a   : > { %v1146_v20 = vor.u32 %v1237_v18, %v1145_v17  ;;  %v1147_v21 = vld [vmem:[#allocation7 + $0x78] sm:$0xf0]  ;;  %v1137_v23 = vld [vmem:[#allocation7 + $0x60] sm:$0xf]  ;;  %v1235_v24 = vld [vmem:[#allocation7 + $0x64] sm:$0xf0] }
  0x4b   : > { %v1150_v22 = vor.u32 %v1236_v19, %v1147_v21  ;;  %v1234_v25 = vld [vmem:[#allocation7 + $0x64] sm:$0xf]  ;;  %v1138_v26 = vor.u32 %v1235_v24, %v1137_v23  ;;  %v1139_v27 = vld [vmem:[#allocation7 + $0x68] sm:$0xf0]  ;;  %v1129_v29 = vld [vmem:[#allocation7 + $0x50] sm:$0xf] }
  0x4c   : > { %641 = vmatpush.bf16.msra.mxu0 %v1146_v20  ;;  %v1142_v28 = vor.u32 %v1234_v25, %v1139_v27  ;;  %v1233_v30 = vld [vmem:[#allocation7 + $0x54] sm:$0xf0]  ;;  %v1232_v31 = vld [vmem:[#allocation7 + $0x54] sm:$0xf]  ;;  %v1131_v33 = vld [vmem:[#allocation7 + $0x58] sm:$0xf0] }
  0x4d   : > { %655 = vmatpush.bf16.msra.mxu1 %v1150_v22  ;;  %v1130_v32 = vor.u32 %v1233_v30, %v1129_v29  ;;  %v1134_v34 = vor.u32 %v1232_v31, %v1131_v33  ;;  %v1121_v35 = vld [vmem:[#allocation7 + $0x40] sm:$0xf]  ;;  %v1231_v36 = vld [vmem:[#allocation7 + $0x44] sm:$0xf0]  ;;  %v1230_v37 = vld [vmem:[#allocation7 + $0x44] sm:$0xf] }
  0x4e   : > { %v1122_v38 = vor.u32 %v1231_v36, %v1121_v35  ;;  %v1123_v39 = vld [vmem:[#allocation7 + $0x48] sm:$0xf0]  ;;  %v1113_v41 = vld [vmem:[#allocation7 + $0x30] sm:$0xf]  ;;  %v1229_v42 = vld [vmem:[#allocation7 + $0x34] sm:$0xf0] }
  0x4f   : > { %v1383_v3 = vpop.eup %1382  ;;  %v1126_v40 = vor.u32 %v1230_v37, %v1123_v39  ;;  %v1228_v43 = vld [vmem:[#allocation7 + $0x34] sm:$0xf]  ;;  %v1114_v44 = vor.u32 %v1229_v42, %v1113_v41  ;;  %v1115_v45 = vld [vmem:[#allocation7 + $0x38] sm:$0xf0]  ;;  %v1105_v47 = vld [vmem:[#allocation7 + $0x20] sm:$0xf] }
  0x50   : > { %v484_v4 = vmul.f32 128.0, %v1383_v3  ;;  %vm488_vm0 = vweird.f32 %v1383_v3  ;;  %642 = vmatpush.bf16.msra.mxu0 %v1138_v26  ;;  %v1118_v46 = vor.u32 %v1228_v43, %v1115_v45  ;;  %v1227_v48 = vld [vmem:[#allocation7 + $0x24] sm:$0xf0]  ;;  %v1226_v49 = vld [vmem:[#allocation7 + $0x24] sm:$0xf]  ;;  %v1253_v35 = vld [vmem:[#allocation10 + $0x78] sm:$0xff] }
  0x51   : > { %481 = vadd.xlane.f32.xlu0 %v1942_v1  ;;  %656 = vmatpush.bf16.msra.mxu1 %v1142_v28  ;;  %v1106_v50 = vor.u32 %v1227_v48, %v1105_v47  ;;  %v1107_v51 = vld [vmem:[#allocation7 + $0x28] sm:$0xf0]  ;;  %v1097_v53 = vld [vmem:[#allocation7 + $0x10] sm:$0xf]  ;;  %v1225_v54 = vld [vmem:[#allocation7 + $0x14] sm:$0xf0] }
  0x52   : > { %v485_v5 = vsub.f32 1.0, %v484_v4  ;;  %v1110_v52 = vor.u32 %v1226_v49, %v1107_v51  ;;  %v1224_v55 = vld [vmem:[#allocation7 + $0x14] sm:$0xf]  ;;  %v1098_v56 = vor.u32 %v1225_v54, %v1097_v53  ;;  %v1099_v57 = vld [vmem:[#allocation7 + $0x18] sm:$0xf0]  ;;  %897 = vmatpush.bf16.msra.mxu3 %v1253_v35  ;;  %v1243_v37 = vld [vmem:[#allocation10 + $0x28] sm:$0xff] }
  0x53   : > { %v1089_v58 = vld [vmem:[#allocation7] sm:$0xf]  ;;  %v1223_v59 = vld [vmem:[#allocation7 + $0x4] sm:$0xf0]  ;;  %v1102_v60 = vor.u32 %v1224_v55, %v1099_v57  ;;  %v1222_v61 = vld [vmem:[#allocation7 + $0x4] sm:$0xf] }
  0x54   : > { %v486_v6 = vmul.f32 %v1383_v3, %v485_v5  ;;  %643 = vmatpush.bf16.msra.mxu0 %v1130_v32  ;;  %v1091_v62 = vld [vmem:[#allocation7 + $0x8] sm:$0xf0]  ;;  %v1090_v2 = vor.u32 %v1223_v59, %v1089_v58  ;;  %v1379_v24 = vld [vmem:[#allocation4] ss:$0 sm:$0xff]  ;;  %v1380_v29 = vld [vmem:[#allocation6] ss:$0 sm:$0xff] }
  0x55   : > { %657 = vmatpush.bf16.msra.mxu1 %v1134_v34  ;;  %v1094_v4 = vor.u32 %v1222_v61, %v1091_v62  ;;  %v1245_v34 = vld [vmem:[#allocation10 + $0x38] sm:$0xff]  ;;  %v1252_v36 = vld [vmem:[#allocation10 + $0x70] sm:$0xff]  ;;  %v1242_v39 = vld [vmem:[#allocation10 + $0x20] sm:$0xff]  ;;  %s1085_s18 = sshll.u32 %s2038_s17, 1 }
  0x56   : > { %v487_v7 = vadd.f32 %v1383_v3, %v486_v6  ;;  %883 = vmatpush.bf16.msra.mxu2 %v1245_v34  ;;  %898 = vmatpush.bf16.msra.mxu3 %v1252_v36  ;;  %v1241_v43 = vld [vmem:[#allocation10 + $0x18] sm:$0xff]  ;;  %v1240_v49 = vld [vmem:[#allocation10 + $0x10] sm:$0xff]  ;;  %v1239_v53 = vld [vmem:[#allocation10 + $0x8] sm:$0xff]  ;;  %p472_p1 = scmp.lt.s32.totalorder %s1085_s18, 7 }
  0x57   : > { %v1247_v54 = vld [vmem:[#allocation10 + $0x48] sm:$0xff]  ;;  %v1238_v59 = vld [vmem:[#allocation10] sm:$0xff] }
  0x58   : > { %v1945_v8 = vsel %vm488_vm0, %v1383_v3, %v487_v7  ;;  %644 = vmatpush.bf16.msra.mxu0 %v1122_v38  ;;  %v1251_v38 = vld [vmem:[#allocation10 + $0x68] sm:$0xff]  ;;  %s2044_s18 = smov (!%p472_p1, %s1085_s18), 7 }
  0x59   : > { %658 = vmatpush.bf16.msra.mxu1 %v1126_v40  ;;  %v1250_v40 = vld [vmem:[#allocation10 + $0x60] sm:$0xff]  ;;  %s1086_s27 = sshll.u32 %s2044_s18, 3 }
  0x5a   : > { %899 = vmatpush.bf16.msra.mxu3 %v1251_v38  ;;  %s475_s30 = scalar_lea.vmem %s2021_s9, %s1086_s27 }
  0x5c   : > { %645 = vmatpush.bf16.msra.mxu0 %v1114_v44  ;;  %v1249_v44 = vld [vmem:[#allocation10 + $0x58] sm:$0xff] }
  0x5d   : > { %659 = vmatpush.bf16.msra.mxu1 %v1118_v46 }
  0x5e   : > { %900 = vmatpush.bf16.msra.mxu3 %v1250_v40 }
  0x60   : > { %646 = vmatpush.bf16.msra.mxu0 %v1106_v50  ;;  %v1248_v50 = vld [vmem:[#allocation10 + $0x50] sm:$0xff] }
  0x61   : > { %660 = vmatpush.bf16.msra.mxu1 %v1110_v52 }
  0x62   : > { %901 = vmatpush.bf16.msra.mxu3 %v1249_v44 }
  0x64   : > { %647 = vmatpush.bf16.msra.mxu0 %v1098_v56 }
  0x65   : > { %661 = vmatpush.bf16.msra.mxu1 %v1102_v60  ;;  %v1246_v60 = vld [vmem:[#allocation10 + $0x40] sm:$0xff] }
  0x66   : > { %902 = vmatpush.bf16.msra.mxu3 %v1248_v50 }
  0x68   : > { %648 = vmatpush.bf16.msra.mxu0 %v1090_v2 }
  0x69   : > { %662 = vmatpush.bf16.msra.mxu1 %v1094_v4 }
  0x6a   : > { %903 = vmatpush.bf16.msra.mxu3 %v1247_v54 }
  0x6e   : > { %904 = vmatpush.bf16.msra.mxu3 %v1246_v60 }
  0xbc   : > { %v480_v9 = vpop.xlane.xlu0 %479 }
  0xbd   : > { %v490_v10 = vmul.f32 %v1945_v8, %v480_v9 }
  0xbf   : > { %v1949_v11 = vsub.f32 %v1939_v0, %v490_v10 }
  0xc1   : > { %v494_v12 = vmul.f32 %v1949_v11, %v1949_v11 }
  0xc3   : > { %496 = vadd.xlane.f32.xlu1 %v494_v12 }
  0xc4   : > { %v482_v13 = vpop.xlane.xlu0 %481 }
  0xc5   : > { %v491_v14 = vmul.f32 %v1945_v8, %v482_v13 }
  0xc7   : > { %v1955_v15 = vsub.f32 %v1942_v1, %v491_v14 }
  0xc9   : > { %v495_v16 = vmul.f32 %v1955_v15, %v1955_v15 }
  0xcb   : > { %498 = vadd.xlane.f32.xlu1 %v495_v16 }
 0x136   : > { %v497_v63 = vpop.xlane.xlu1 %496 }
 0x137   : > { %v500_v3 = vmul.f32 %v497_v63, %v1945_v8 }
 0x139   : > { %v502_v5 = vadd.f32 1e-05, %v500_v3 }
 0x13b   : > { %1384 = vrsqrt.f32 %v502_v5  ;;  %vm510_vm2 = vweird.f32 %v502_v5 }
 0x13e   : > { %v499_v6 = vpop.xlane.xlu1 %498 }
 0x13f   : > { %v501_v7 = vmul.f32 %v499_v6, %v1945_v8 }
 0x141   : > { %v1385_v9 = vpop.eup %1384  ;;  %v503_v10 = vadd.f32 1e-05, %v501_v7 }
 0x142   : > { %v505_v12 = vmul.f32 %v1385_v9, %v502_v5  ;;  %vm511_vm1 = vweird.f32 %v1385_v9 }
 0x143   : > { %1386 = vrsqrt.f32 %v503_v10  ;;  %vm512_vm3 = vmor %vm510_vm2, %vm511_vm1  ;;  %vm520_vm5 = vweird.f32 %v503_v10 }
 0x144   : > { %v506_v13 = vmul.f32 %v1385_v9, %v505_v12 }
 0x146   : > { %v507_v14 = vmul.f32 0.5, %v506_v13 }
 0x148   : > { %v508_v16 = vsub.f32 1.5, %v507_v14 }
 0x149   : > { %v1387_v17 = vpop.eup %1386 }
 0x14a   : > { %v509_v18 = vmul.f32 %v1385_v9, %v508_v16  ;;  %v515_v19 = vmul.f32 %v1387_v17, %v503_v10  ;;  %vm521_vm4 = vweird.f32 %v1387_v17 }
 0x14b   : > { %vm522_vm6 = vmor %vm520_vm5, %vm521_vm4 }
 0x14c   : > { %v516_v20 = vmul.f32 %v1387_v17, %v515_v19  ;;  %v513_v22 = vsel %vm512_vm3, %v1385_v9, %v509_v18 }
 0x14d   : > { %v524_v8 = vmul.f32 %v513_v22, %v1949_v11  ;;  %v1244_v11 = vld [vmem:[#allocation10 + $0x30] sm:$0xff] }
 0x14e   : > { %v517_v21 = vmul.f32 0.5, %v516_v20  ;;  %884 = vmatpush.bf16.msra.mxu2 %v1244_v11 }
 0x14f   : > { %v530_v28 = vmul.f32 %v1379_v24, %v524_v8 }
 0x150   : > { %v518_v23 = vsub.f32 1.5, %v517_v21 }
 0x151   : > { %v536_v31 = vadd.f32 %v1380_v29, %v530_v28 }
 0x152   : > { %v519_v25 = vmul.f32 %v1387_v17, %v518_v23  ;;  %885 = vmatpush.bf16.msra.mxu2 %v1243_v37 }
 0x154   : > { %v523_v26 = vsel %vm522_vm6, %v1387_v17, %v519_v25 }
 0x155   : > { %v525_v27 = vmul.f32 %v523_v26, %v1955_v15  ;;  %v555_v15 = vld [vmem:[#allocation9] sm:$0x3] }
 0x156   : > { %886 = vmatpush.bf16.msra.mxu2 %v1242_v39  ;;  %v557_v41 = vperm.slane %v555_v15, 0  ;;  %v558_v42 = vperm.slane %v555_v15, 1 }
 0x157   : > { %v531_v30 = vmul.f32 %v1379_v24, %v525_v27 }
 0x159   : > { %v537_v32 = vadd.f32 %v1380_v29, %v531_v30 }
 0x15a   : > { %887 = vmatpush.bf16.msra.mxu2 %v1241_v43 }
 0x15b   : > { %v538_v33 = vpack.c.bf16 %v537_v32, %v536_v31 }
 0x15d   : > { %649 = vmatmul.bf16.vlgmr.msra.gmra.mxu0 %v538_v33  ;;  %663 = vmatmul.bf16.vlgmr.msra.gmra.mxu1 %v538_v33 }
 0x15e   : > { %888 = vmatpush.bf16.msra.mxu2 %v1240_v49 }
 0x162   : > { %889 = vmatpush.bf16.msra.mxu2 %v1239_v53 }
 0x166   : > { %890 = vmatpush.bf16.msra.mxu2 %v1238_v59 }
 0x1da   : > { %v650_v45 = vpop.f32.mrf.mxu0  ;;  %v664_v46 = vpop.f32.mrf.mxu1 }
 0x1db   : > { %v1963_v47 = vadd.f32 %v650_v45, %v557_v41  ;;  %v1965_v48 = vadd.f32 %v664_v46, %v558_v42 }
 0x1dd   : > { %v1151_v51 = vmul.f32 -1.442695, %v1963_v47  ;;  %v1152_v52 = vmul.f32 -1.442695, %v1965_v48 }
 0x1df   : > { %1388 = vpow2.f32 %v1151_v51 }
 0x1e0   : > { %1390 = vpow2.f32 %v1152_v52 }
 0x1e2   : > { %v652_v55 = vpop.f32.mrf.mxu0  ;;  %v666_v56 = vpop.f32.mrf.mxu1 }
 0x1e3   : > { %v1969_v57 = vadd.f32 %v652_v55, %v557_v41  ;;  %v1971_v58 = vadd.f32 %v666_v56, %v558_v42 }
 0x1e5   : > { %v1389_v61 = vpop.eup %1388  ;;  %v1153_v62 = vmul.f32 -1.442695, %v1969_v57  ;;  %v1154_v3 = vmul.f32 -1.442695, %v1971_v58 }
 0x1e6   : > { %v1391_v63 = vpop.eup %1390  ;;  %v681_v2 = vadd.f32 1.0, %v1389_v61 }
 0x1e7   : > { %v682_v4 = vadd.f32 1.0, %v1391_v63  ;;  %1392 = vpow2.f32 %v1153_v62 }
 0x1e8   : > { %1394 = vrcp.f32 %v681_v2  ;;  %vm690_vm8 = vweird.f32 %v681_v2  ;;  %v694_v23 = vand.u32 2147483647, %v681_v2  ;;  %v696_v8 = vand.u32 2147483648, %v681_v2 }
 0x1e9   : > { %1396 = vrcp.f32 %v682_v4  ;;  %vm705_vm9 = vweird.f32 %v682_v4  ;;  %v709_v25 = vand.u32 2147483647, %v682_v4  ;;  %v711_v30 = vand.u32 2147483648, %v682_v4 }
 0x1ea   : > { %1398 = vpow2.f32 %v1154_v3  ;;  %vm695_vm13 = vcmp.eq.f32.partialorder %v694_v23, 8.507059e+37  ;;  %v697_v35 = vor.u32 1.1754944e-38, %v696_v8 }
 0x1eb   : > { %v712_v43 = vor.u32 1.1754944e-38, %v711_v30  ;;  %vm710_vm3 = vcmp.eq.f32.partialorder %v709_v25, 8.507059e+37 }
 0x1ed   : > { %v1393_v5 = vpop.eup %1392 }
 0x1ee   : > { %v1395_v6 = vpop.eup %1394  ;;  %v683_v7 = vadd.f32 1.0, %v1393_v5 }
 0x1ef   : > { %v1397_v9 = vpop.eup %1396  ;;  %v686_v10 = vmul.f32 %v1395_v6, %v681_v2  ;;  %vm691_vm7 = vweird.f32 %v1395_v6 }
 0x1f0   : > { %v1399_v12 = vpop.eup %1398  ;;  %v701_v13 = vmul.f32 %v1397_v9, %v682_v4  ;;  %1400 = vrcp.f32 %v683_v7  ;;  %v726_v27 = vand.u32 2147483648, %v683_v7  ;;  %vm1975_vm10 = vmor %vm690_vm8, %vm691_vm7  ;;  %vm706_vm11 = vweird.f32 %v1397_v9 }
 0x1f1   : > { %v687_v14 = vsub.f32 1.0, %v686_v10  ;;  %v684_v16 = vadd.f32 1.0, %v1399_v12  ;;  %v724_v34 = vand.u32 2147483647, %v683_v7  ;;  %vm720_vm14 = vweird.f32 %v683_v7  ;;  %vm1982_vm15 = vmor %vm705_vm9, %vm706_vm11 }
 0x1f2   : > { %v702_v17 = vsub.f32 1.0, %v701_v13  ;;  %v727_v38 = vor.u32 1.1754944e-38, %v726_v27 }
 0x1f3   : > { %v688_v18 = vmul.f32 %v1395_v6, %v687_v14  ;;  %1402 = vrcp.f32 %v684_v16  ;;  %v739_v15 = vand.u32 2147483647, %v684_v16  ;;  %v741_v39 = vand.u32 2147483648, %v684_v16 }
 0x1f4   : > { %v703_v20 = vmul.f32 %v1397_v9, %v702_v17  ;;  %vm725_vm2 = vcmp.eq.f32.partialorder %v724_v34, 8.507059e+37  ;;  %vm735_vm4 = vweird.f32 %v684_v16 }
 0x1f5   : > { %v689_v21 = vadd.f32 %v1395_v6, %v688_v18  ;;  %v742_v52 = vor.u32 1.1754944e-38, %v741_v39  ;;  %vm740_vm6 = vcmp.eq.f32.partialorder %v739_v15, 8.507059e+37 }
 0x1f6   : > { %v1401_v19 = vpop.eup %1400  ;;  %v704_v29 = vadd.f32 %v1397_v9, %v703_v20 }
 0x1f7   : > { %v716_v22 = vmul.f32 %v1401_v19, %v683_v7  ;;  %v693_v32 = vsel %vm1975_vm10, %v1395_v6, %v689_v21  ;;  %vm721_vm12 = vweird.f32 %v1401_v19 }
 0x1f8   : > { %v698_v40 = vsel %vm695_vm13, %v697_v35, %v693_v32  ;;  %v708_v41 = vsel %vm1982_vm15, %v1397_v9, %v704_v29  ;;  %vm722_vm0 = vmor %vm720_vm14, %vm721_vm12 }
 0x1f9   : > { %v1403_v24 = vpop.eup %1402  ;;  %v717_v26 = vsub.f32 1.0, %v716_v22  ;;  %v745_v49 = vmul.f32 %v698_v40, %v1963_v47  ;;  %v713_v50 = vsel %vm710_vm3, %v712_v43, %v708_v41  ;;  %v1381_v47 = vld [vmem:[#allocation12] ss:$0 sm:$0xff] }
 0x1fa   : > { %v731_v31 = vmul.f32 %v1403_v24, %v684_v16  ;;  %vm736_vm1 = vweird.f32 %v1403_v24  ;;  %v746_v56 = vmul.f32 %v713_v50, %v1965_v48 }
 0x1fb   : > { %v718_v33 = vmul.f32 %v1401_v19, %v717_v26  ;;  %vm737_vm5 = vmor %vm735_vm4, %vm736_vm1 }
 0x1fc   : > { %v732_v11 = vsub.f32 1.0, %v731_v31 }
 0x1fd   : > { %v719_v37 = vadd.f32 %v1401_v19, %v718_v33 }
 0x1fe   : > { %v733_v42 = vmul.f32 %v1403_v24, %v732_v11 }
 0x1ff   : > { %v723_v44 = vsel %vm722_vm0, %v1401_v19, %v719_v37 }
 0x200   : > { %v728_v45 = vsel %vm725_vm2, %v727_v38, %v723_v44  ;;  %v734_v46 = vadd.f32 %v1403_v24, %v733_v42 }
 0x201   : > { %v747_v51 = vmul.f32 %v728_v45, %v1969_v57 }
 0x202   : > { %v738_v53 = vsel %vm737_vm5, %v1403_v24, %v734_v46 }
 0x203   : > { %v743_v54 = vsel %vm740_vm6, %v742_v52, %v738_v53  ;;  %v749_v55 = vpack.c.bf16 %v747_v51, %v745_v49 }
 0x204   : > { %v748_v59 = vmul.f32 %v743_v54, %v1971_v58 }
 0x205   : > { %891 = vmatmul.bf16.vlgmr.msra.gmra.mxu2 %v749_v55 }
 0x206   : > { %v750_v60 = vpack.c.bf16 %v748_v59, %v746_v56 }
 0x208   : > { %905 = vmatmul.bf16.vlgmr.msra.gmra.mxu3 %v750_v60 }
 0x288   : > { %v892_v61 = vpop.f32.mrf.mxu2 }
 0x289   : > { %v893_v57 = vadd.f32 %v1381_v47, %v892_v61 }
 0x28b   : > { %v906_v62 = vpop.f32.mrf.mxu3 }
 0x28c   : > { %v907_v63 = vadd.f32 %v906_v62, %v893_v57 }
 0x28e   : > { %v911_v2 = vmul.f32 0.5, %v907_v63 }
 0x290   : > { %v913_v48 = vadd.f32 %v911_v2, %v1939_v0  ;;  %v894_v58 = vpop.f32.mrf.mxu2 }
 0x291   : > { %v895_v3 = vadd.f32 %v1381_v47, %v894_v58 }
 0x292   : > { %915 = vst [vmem:[%s475_s30] sm:$0xff] %v913_v48 }
 0x293   : > { %v908_v4 = vpop.f32.mrf.mxu3 }
 0x294   : > { %v909_v5 = vadd.f32 %v908_v4, %v895_v3 }
 0x296   : > { %v912_v6 = vmul.f32 0.5, %v909_v5 }
 0x298   : > { %v914_v7 = vadd.f32 %v912_v6, %v1942_v1 }
 0x29a   : > { %916 = vst [vmem:[%s475_s30 + $0x8] sm:$0xff] %v914_v7 }
 0x29b PF: > { %p23_p3 = scmp.ge.s32.totalorder %s1874_s19, 6   ;;  %s2039_s30 = smov %s1716_s10 }
 0x29c   : > { %s2040_s10 = smov %s1720_s11  ;;  %s2041_s11 = smov %s1885_s16 }
 0x29d   : > { %s2042_s12 = smov %s1874_s19  ;;  %25 = sbr.rel (!%p23_p3) target bundleno = 9 (0x9), region = 128 }
 0x2a2   :  { %939 = vsyncpa [#allocation3], 1 }
 0x2a3   :  { %941 = vsyncpa [#allocation3 + $0x1], 1 }
 0x2a4   :  { %942 = vsyncpa [#allocation5], 1 }
 0x2a5   :  { %943 = vsyncpa [#allocation8], 1 }
 0x2a6   :  { %944 = vsyncpa [#allocation11], 1 }
 0x2a7   :  { %945 = vsyncpa [#allocation14], 1 }

// kernel: conformer_layer_forward.10
= control target key start
LH: loop header
LB: loop body
LE: loop exit
PB: predicated region body
PF: predicated region fallthrough
CT: control target
= control target key end

     0   :  { %s1036_s24 = smov [#allocation3]   ;;  %s1212_s0 = inlined_call_operand.vmem [shape: s32[2], index: 0, kind: input, shape index: {}]   ;;  %s1213_s1 = inlined_call_operand.vmem [shape: f32[2,32,128], index: 1, kind: input, shape index: {}]   ;;  %s1214_s2 = inlined_call_operand.hbm [shape: f32[1,128], index: 2, kind: input, shape index: {}]   ;;  %s1215_s3 = inlined_call_operand.hbm [shape: f32[1,128], index: 3, kind: input, shape index: {}]   ;;  %s1216_s4 = inlined_call_operand.hbm [shape: bf16[128,256], index: 4, kind: input, shape index: {}]   ;;  %s1217_s5 = inlined_call_operand.vmem [shape: f32[1,256], index: 5, kind: input, shape index: {}]   ;;  %s1218_s6 = inlined_call_operand.vmem [shape: f32[2,32,128], index: 6, kind: output, shape index: {}]  }
   0x1   :  { %s12_s23 = sshll.u32 %s1212_s0, 4  ;;  %s13_s23 = int_to_ptr.vmem [resolvable:$true] %s12_s23 }
   0x2   :  { %15 = dma.vmem_to_smem %s13_s23, 16, %s1036_s24, [#allocation2] }
   0x3   :  { %1006 = dma.done.wait [#allocation2], 16 }
   0x4   :  { %1007 = vsyncadd [#allocation2], 4294967280 }
   0x5   :  { %18 = sfence }
   0x6   :  { %19 = vsyncpa [#allocation5], 0 }
   0x7   :  { %20 = vsyncpa [#allocation7], 0  ;;  %s1081_s25 = smov 0   ;;  %s1083_s26 = smov 0  }
   0x8   :  { %s1085_s27 = smov 0   ;;  %s1087_s28 = smov 0  }
   0x9   :  { %s1089_s29 = smov 0  }
   0xa LB: > { %s207_s7 = sshll.u32 %s1215_s3, 4  ;;  %s691_s8 = sadd.s32 4294967295, %s1034_s29   ;;  %s1034_s29 = sphi %s1089_s29, %s26_s29   ;;  %s1030_s28 = sphi %s1087_s28, %s1225_s28   ;;  %s1026_s27 = sphi %s1085_s27, %s1224_s27   ;;  %s1022_s26 = sphi %s1083_s26, %s1223_s26   ;;  %s1018_s25 = sphi %s1081_s25, %s1222_s25   ;;  %s208_s7 = int_to_ptr.hbm [resolvable:$true] %s207_s7 }
   0xb   : > { %p693_p0 = scmp.ge.s32.totalorder %s1034_s29, 1  ;;  %p183_p1 = scmp.lt.s32.totalorder %s1034_s29, 5 }
   0xc   : > { %p1112_p2 = scmp.eq.s32.totalorder %s691_s8, 0  ;;  %s1037_s11 = smov [#allocation6]  }
   0xd   : > { %p1116_p3 = pnand %p693_p0, %p183_p1  ;;  %s209_s12 = sshll.u32 %s1037_s11, 4  ;;  %s210_s12 = int_to_ptr.vmem [resolvable:$true] %s209_s12 }
   0xe   : > { %s35_s14 = sadd.s32 1, %s1026_s27  ;;  %s38_s15 = sadd.s32 1, %s1030_s28 }
   0xf   : > { %p805_p4 = pneg %p1116_p3  ;;  %p36_p6 = scmp.ge.s32.totalorder %s35_s14, 2 }
  0x10   : > { %s195_s18 = sshll.u32 %s1214_s2, 4  ;;  %s1038_s19 = smov [#allocation4]   ;;  %s196_s18 = int_to_ptr.hbm [resolvable:$true] %s195_s18 }
  0x11   : > { %p1124_p5 = pnand %p1112_p2, %p805_p4  ;;  %s1227_s14 = smov (%p36_p6, %s35_s14), 0 }
  0x12   : > { %s1229_s15 = smov (!%p36_p6, %s38_s15), %s1030_s28  ;;  %s197_s20 = sshll.u32 %s1038_s19, 4  ;;  %s198_s20 = int_to_ptr.vmem [resolvable:$true] %s197_s20 }
  0x13   : > { %811 = dma.hbm_to_vmem [thread:$0]  (!%p1124_p5), %s208_s7, 16, %s210_s12, [#allocation7]  }
  0x14   : > { %s218_s23 = sshll.u32 %s1216_s4, 4  ;;  %p40_p7 = scmp.ge.s32.totalorder %s1229_s15, 2  ;;  %s219_s23 = int_to_ptr.hbm [resolvable:$true] %s218_s23 }
  0x15   : > { %808 = dma.hbm_to_vmem [thread:$0]  (!%p1124_p5), %s196_s18, 16, %s198_s20, [#allocation5]  }
  0x16   : > { %s1231_s15 = smov (%p40_p7, %s1229_s15), 0  ;;  %s1039_s24 = smov [#allocation8]  }
  0x17   : > { %s220_s0 = sshll.u32 %s1039_s24, 4  ;;  %s1040_s30 = smov 128   ;;  %s221_s0 = int_to_ptr.vmem [resolvable:$true] %s220_s0 }
  0x18   : > { %s1041_s7 = smov 8   ;;  %252 = sbr.rel (%p1116_p3) target bundleno = 485 (0x1e5), region = 40 }
  0x19   : > { %814 = dma.hbm_to_vmem [thread:$0]  (!%p1124_p5), %s219_s23, 2048, %s221_s0, [#allocation7], %s1040_s30, %s1040_s30, %s1041_s7  }
  0x1d   : > { %1009 = dma.done.wait (%p1112_p2), [#allocation5], 16  }
  0x1e   : > { %1011 = vsyncadd (%p1112_p2), [#allocation5], 4294967280 }
  0x1f   : > { %1013 = dma.done.wait (%p1112_p2), [#allocation7], 2064  }
  0x20   : > { %1015 = vsyncadd (%p1112_p2), [#allocation7], 4294965232  ;;  %s702_s8 = sshll.u32 %s1018_s25, 1  ;;  %p300_p8 = scmp.lt.s32.totalorder %s1022_s26, 1  ;;  %v1042_v2 = vmov 128.0  }
  0x21   : > { %p302_p9 = scmp.lt.s32.totalorder %s702_s8, 3  ;;  %870 = vrcp.f32 %v1042_v2  ;;  %v766_v17 = vld [vmem:[#allocation8 + $0x70] sm:$0xf]  ;;  %v792_v18 = vld [vmem:[#allocation8 + $0x74] sm:$0xf0]  ;;  %s1188_s20 = sld [smem:[#allocation3 + %s1022_s26]] }
  0x22   : > { %s301_s10 = scalar_select %p300_p8, %s1022_s26, 1  ;;  %v791_v19 = vld [vmem:[#allocation8 + $0x74] sm:$0xf]  ;;  %v767_v20 = vor.u32 %v792_v18, %v766_v17  ;;  %v768_v21 = vld [vmem:[#allocation8 + $0x78] sm:$0xf0] }
  0x23   : > { %s1233_s8 = smov (!%p302_p9, %s702_s8), 3  ;;  %v771_v22 = vor.u32 %v791_v19, %v768_v21  ;;  %v758_v23 = vld [vmem:[#allocation8 + $0x60] sm:$0xf]  ;;  %v790_v24 = vld [vmem:[#allocation8 + $0x64] sm:$0xf0]  ;;  %s774_s21 = sshll.u32 %s1018_s25, 4 }
  0x24   : > { %s703_s11 = sshll.u32 %s301_s10, 2  ;;  %483 = vmatpush.bf16.msra.mxu0 %v767_v20  ;;  %v789_v25 = vld [vmem:[#allocation8 + $0x64] sm:$0xf]  ;;  %v759_v26 = vor.u32 %v790_v24, %v758_v23  ;;  %v760_v27 = vld [vmem:[#allocation8 + $0x68] sm:$0xf0] }
  0x25   : > { %s1160_s12 = sadd.s32 %s703_s11, %s1233_s8  ;;  %497 = vmatpush.bf16.msra.mxu1 %v771_v22  ;;  %v763_v28 = vor.u32 %v789_v25, %v760_v27  ;;  %v750_v29 = vld [vmem:[#allocation8 + $0x50] sm:$0xf]  ;;  %v788_v30 = vld [vmem:[#allocation8 + $0x54] sm:$0xf0]  ;;  %v787_v31 = vld [vmem:[#allocation8 + $0x54] sm:$0xf] }
  0x26   : > { %s704_s13 = sshll.u32 %s1160_s12, 3  ;;  %v751_v32 = vor.u32 %v788_v30, %v750_v29  ;;  %v752_v33 = vld [vmem:[#allocation8 + $0x58] sm:$0xf0]  ;;  %v742_v35 = vld [vmem:[#allocation8 + $0x40] sm:$0xf] }
  0x27   : > { %s307_s9 = scalar_lea.vmem %s1213_s1, %s704_s13  ;;  %v871_v3 = vpop.eup %870  ;;  %v755_v34 = vor.u32 %v787_v31, %v752_v33  ;;  %v786_v36 = vld [vmem:[#allocation8 + $0x44] sm:$0xf0]  ;;  %v785_v37 = vld [vmem:[#allocation8 + $0x44] sm:$0xf]  ;;  %v744_v39 = vld [vmem:[#allocation8 + $0x48] sm:$0xf0]  ;;  %s317_s22 = scalar_lea.vmem %s1218_s6, %s704_s13 }
  0x28   : > { %v319_v0 = vld [vmem:[%s307_s9] sm:$0xff]  ;;  %v320_v1 = vld [vmem:[%s307_s9 + $0x8] sm:$0xff]  ;;  %v326_v4 = vmul.f32 128.0, %v871_v3  ;;  %vm330_vm0 = vweird.f32 %v871_v3  ;;  %484 = vmatpush.bf16.msra.mxu0 %v759_v26  ;;  %v743_v38 = vor.u32 %v786_v36, %v742_v35  ;;  %v747_v40 = vor.u32 %v785_v37, %v744_v39  ;;  %v734_v41 = vld [vmem:[#allocation8 + $0x30] sm:$0xf] }
  0x29   : > { %321 = vadd.xlane.f32.xlu0 %v319_v0  ;;  %498 = vmatpush.bf16.msra.mxu1 %v763_v28  ;;  %v784_v42 = vld [vmem:[#allocation8 + $0x34] sm:$0xf0]  ;;  %v783_v43 = vld [vmem:[#allocation8 + $0x34] sm:$0xf]  ;;  %v736_v45 = vld [vmem:[#allocation8 + $0x38] sm:$0xf0] }
  0x2a   : > { %v327_v5 = vsub.f32 1.0, %v326_v4  ;;  %v735_v44 = vor.u32 %v784_v42, %v734_v41  ;;  %v739_v46 = vor.u32 %v783_v43, %v736_v45  ;;  %v726_v47 = vld [vmem:[#allocation8 + $0x20] sm:$0xf]  ;;  %v782_v48 = vld [vmem:[#allocation8 + $0x24] sm:$0xf0] }
  0x2b   : > { %v781_v49 = vld [vmem:[#allocation8 + $0x24] sm:$0xf]  ;;  %v727_v50 = vor.u32 %v782_v48, %v726_v47  ;;  %v728_v51 = vld [vmem:[#allocation8 + $0x28] sm:$0xf0]  ;;  %v718_v53 = vld [vmem:[#allocation8 + $0x10] sm:$0xf]  ;;  %v555_v47 = vstv %s774_s21 }
  0x2c   : > { %v328_v6 = vmul.f32 %v871_v3, %v327_v5  ;;  %485 = vmatpush.bf16.msra.mxu0 %v751_v32  ;;  %v731_v52 = vor.u32 %v781_v49, %v728_v51  ;;  %v780_v54 = vld [vmem:[#allocation8 + $0x14] sm:$0xf0]  ;;  %v779_v55 = vld [vmem:[#allocation8 + $0x14] sm:$0xf]  ;;  %v720_v57 = vld [vmem:[#allocation8 + $0x18] sm:$0xf0] }
  0x2d   : > { %499 = vmatpush.bf16.msra.mxu1 %v755_v34  ;;  %v719_v56 = vor.u32 %v780_v54, %v718_v53  ;;  %v710_v58 = vld [vmem:[#allocation8] sm:$0xf]  ;;  %v778_v59 = vld [vmem:[#allocation8 + $0x4] sm:$0xf0]  ;;  %v723_v60 = vor.u32 %v779_v55, %v720_v57  ;;  %v777_v61 = vld [vmem:[#allocation8 + $0x4] sm:$0xf]  ;;  %v559_v55 = vstv %s1188_s20 }
  0x2e   : > { %v329_v7 = vadd.f32 %v871_v3, %v328_v6  ;;  %v712_v62 = vld [vmem:[#allocation8 + $0x8] sm:$0xf0]  ;;  %v868_v22 = vld [vmem:[#allocation4] ss:$0 sm:$0xff]  ;;  %v869_v27 = vld [vmem:[#allocation6] ss:$0 sm:$0xff] }
  0x2f   : > { %v715_v2 = vor.u32 %v777_v61, %v712_v62 }
  0x30   : > { %v1168_v8 = vsel %vm330_vm0, %v871_v3, %v329_v7  ;;  %486 = vmatpush.bf16.msra.mxu0 %v743_v38 }
  0x31   : > { %323 = vadd.xlane.f32.xlu0 %v320_v1  ;;  %500 = vmatpush.bf16.msra.mxu1 %v747_v40  ;;  %v552_v40 = vlaneseq }
  0x33   : > { %v553_v45 = vshrl.u32 %v552_v40, 7 }
  0x34   : > { %487 = vmatpush.bf16.msra.mxu0 %v735_v44 }
  0x35   : > { %501 = vmatpush.bf16.msra.mxu1 %v739_v46  ;;  %v556_v53 = vadd.s32 %v555_v47, %v553_v45  ;;  %v554_v62 = vadd.s32 8, %v553_v45 }
  0x37   : > { %vm560_vm11 = vcmp.lt.s32.totalorder %v556_v53, %v559_v55 }
  0x38   : > { %488 = vmatpush.bf16.msra.mxu0 %v727_v50 }
  0x39   : > { %502 = vmatpush.bf16.msra.mxu1 %v731_v52 }
  0x3c   : > { %489 = vmatpush.bf16.msra.mxu0 %v719_v56 }
  0x3d   : > { %503 = vmatpush.bf16.msra.mxu1 %v723_v60 }
  0x41   : > { %504 = vmatpush.bf16.msra.mxu1 %v715_v2 }
  0x9c   : > { %v322_v9 = vpop.xlane.xlu0 %321 }
  0x9d   : > { %v332_v10 = vmul.f32 %v1168_v8, %v322_v9 }
  0x9f   : > { %v1171_v11 = vsub.f32 %v319_v0, %v332_v10  ;;  %v711_v0 = vor.u32 %v778_v59, %v710_v58 }
  0xa1   : > { %v336_v12 = vmul.f32 %v1171_v11, %v1171_v11  ;;  %490 = vmatpush.bf16.msra.mxu0 %v711_v0 }
  0xa3   : > { %338 = vadd.xlane.f32.xlu1 %v336_v12 }
  0xa4   : > { %v324_v13 = vpop.xlane.xlu0 %323 }
  0xa5   : > { %v333_v14 = vmul.f32 %v1168_v8, %v324_v13 }
  0xa7   : > { %v1176_v15 = vsub.f32 %v320_v1, %v333_v14 }
  0xa9   : > { %v337_v16 = vmul.f32 %v1176_v15, %v1176_v15 }
  0xab   : > { %340 = vadd.xlane.f32.xlu1 %v337_v16 }
 0x116   : > { %v339_v63 = vpop.xlane.xlu1 %338 }
 0x117   : > { %v342_v1 = vmul.f32 %v339_v63, %v1168_v8 }
 0x119   : > { %v344_v3 = vadd.f32 1e-05, %v342_v1 }
 0x11b   : > { %872 = vrsqrt.f32 %v344_v3  ;;  %vm352_vm2 = vweird.f32 %v344_v3 }
 0x11e   : > { %v341_v4 = vpop.xlane.xlu1 %340 }
 0x11f   : > { %v343_v5 = vmul.f32 %v341_v4, %v1168_v8 }
 0x121   : > { %v873_v6 = vpop.eup %872  ;;  %v345_v7 = vadd.f32 1e-05, %v343_v5 }
 0x122   : > { %v347_v9 = vmul.f32 %v873_v6, %v344_v3  ;;  %vm353_vm1 = vweird.f32 %v873_v6 }
 0x123   : > { %874 = vrsqrt.f32 %v345_v7  ;;  %vm354_vm3 = vmor %vm352_vm2, %vm353_vm1  ;;  %vm362_vm5 = vweird.f32 %v345_v7 }
 0x124   : > { %v348_v10 = vmul.f32 %v873_v6, %v347_v9 }
 0x126   : > { %v349_v12 = vmul.f32 0.5, %v348_v10 }
 0x128   : > { %v350_v13 = vsub.f32 1.5, %v349_v12 }
 0x129   : > { %v875_v14 = vpop.eup %874 }
 0x12a   : > { %v351_v16 = vmul.f32 %v873_v6, %v350_v13  ;;  %v357_v17 = vmul.f32 %v875_v14, %v345_v7  ;;  %vm363_vm4 = vweird.f32 %v875_v14 }
 0x12b   : > { %vm364_vm6 = vmor %vm362_vm5, %vm363_vm4 }
 0x12c   : > { %v358_v18 = vmul.f32 %v875_v14, %v357_v17  ;;  %v355_v20 = vsel %vm354_vm3, %v873_v6, %v351_v16  ;;  %v557_v6 = vadd.s32 %v555_v47, %v554_v62 }
 0x12d   : > { %v366_v8 = vmul.f32 %v355_v20, %v1171_v11  ;;  %v397_v11 = vld [vmem:[%s1217_s5] sm:$0x3] }
 0x12e   : > { %v359_v19 = vmul.f32 0.5, %v358_v18  ;;  %v400_v32 = vperm.slane %v397_v11, 1  ;;  %v399_v50 = vperm.slane %v397_v11, 0  ;;  %vm561_vm0 = vcmp.lt.s32.totalorder %v557_v6, %v559_v55 }
 0x12f   : > { %v372_v26 = vmul.f32 %v868_v22, %v366_v8 }
 0x130   : > { %v360_v21 = vsub.f32 1.5, %v359_v19 }
 0x131   : > { %v378_v29 = vadd.f32 %v869_v27, %v372_v26 }
 0x132   : > { %v361_v23 = vmul.f32 %v875_v14, %v360_v21 }
 0x134   : > { %v365_v24 = vsel %vm364_vm6, %v875_v14, %v361_v23 }
 0x135   : > { %v367_v25 = vmul.f32 %v365_v24, %v1176_v15 }
 0x137   : > { %v373_v28 = vmul.f32 %v868_v22, %v367_v25 }
 0x139   : > { %v379_v30 = vadd.f32 %v869_v27, %v373_v28 }
 0x13b   : > { %v380_v31 = vpack.c.bf16 %v379_v30, %v378_v29 }
 0x13d   : > { %491 = vmatmul.bf16.vlgmr.msra.gmra.mxu0 %v380_v31  ;;  %505 = vmatmul.bf16.vlgmr.msra.gmra.mxu1 %v380_v31 }
 0x1ba   : > { %v506_v33 = vpop.f32.mrf.mxu1  ;;  %v492_v48 = vpop.f32.mrf.mxu0 }
 0x1bb   : > { %v507_v34 = vadd.f32 %v506_v33, %v400_v32  ;;  %v493_v58 = vadd.f32 %v492_v48, %v399_v50 }
 0x1bd   : > { %v772_v35 = vmul.f32 -1.442695, %v507_v34 }
 0x1bf   : > { %876 = vpow2.f32 %v772_v35 }
 0x1c2   : > { %v508_v15 = vpop.f32.mrf.mxu1  ;;  %v494_v5 = vpop.f32.mrf.mxu0 }
 0x1c3   : > { %v509_v36 = vadd.f32 %v508_v15, %v400_v32  ;;  %v495_v10 = vadd.f32 %v494_v5, %v399_v50 }
 0x1c5   : > { %v877_v37 = vpop.eup %876  ;;  %v773_v38 = vmul.f32 -1.442695, %v509_v36 }
 0x1c6   : > { %v517_v39 = vadd.f32 1.0, %v877_v37 }
 0x1c7   : > { %878 = vpow2.f32 %v773_v38 }
 0x1c8   : > { %880 = vrcp.f32 %v517_v39  ;;  %v530_v49 = vand.u32 2147483648, %v517_v39  ;;  %v528_v52 = vand.u32 2147483647, %v517_v39  ;;  %vm524_vm8 = vweird.f32 %v517_v39 }
 0x1ca   : > { %v531_v57 = vor.u32 1.1754944e-38, %v530_v49  ;;  %vm529_vm10 = vcmp.eq.f32.partialorder %v528_v52, 8.507059e+37 }
 0x1cd   : > { %v879_v41 = vpop.eup %878 }
 0x1ce   : > { %v881_v42 = vpop.eup %880  ;;  %v518_v43 = vadd.f32 1.0, %v879_v41 }
 0x1cf   : > { %v520_v44 = vmul.f32 %v881_v42, %v517_v39  ;;  %vm525_vm7 = vweird.f32 %v881_v42 }
 0x1d0   : > { %882 = vrcp.f32 %v518_v43  ;;  %vm526_vm9 = vmor %vm524_vm8, %vm525_vm7  ;;  %v545_v1 = vand.u32 2147483648, %v518_v43  ;;  %v543_v4 = vand.u32 2147483647, %v518_v43  ;;  %vm539_vm13 = vweird.f32 %v518_v43 }
 0x1d1   : > { %v521_v46 = vsub.f32 1.0, %v520_v44 }
 0x1d2   : > { %v546_v9 = vor.u32 1.1754944e-38, %v545_v1  ;;  %vm544_vm15 = vcmp.eq.f32.partialorder %v543_v4, 8.507059e+37 }
 0x1d3   : > { %v522_v51 = vmul.f32 %v881_v42, %v521_v46 }
 0x1d5   : > { %v523_v54 = vadd.f32 %v881_v42, %v522_v51 }
 0x1d6   : > { %v883_v56 = vpop.eup %882 }
 0x1d7   : > { %v527_v59 = vsel %vm526_vm9, %v881_v42, %v523_v54  ;;  %v535_v60 = vmul.f32 %v883_v56, %v518_v43  ;;  %vm540_vm12 = vweird.f32 %v883_v56 }
 0x1d8   : > { %v532_v61 = vsel %vm529_vm10, %v531_v57, %v527_v59  ;;  %vm541_vm14 = vmor %vm539_vm13, %vm540_vm12 }
 0x1d9   : > { %v549_v63 = vmul.f32 %v532_v61, %v493_v58  ;;  %v536_v0 = vsub.f32 1.0, %v535_v60 }
 0x1db   : > { %v566_v2 = vsel %vm560_vm11, %v549_v63, 0.0  ;;  %v537_v3 = vmul.f32 %v883_v56, %v536_v0 }
 0x1dc   : > { %568 = vst [vmem:[%s317_s22] sm:$0xff] %v566_v2 }
 0x1dd   : > { %v538_v7 = vadd.f32 %v883_v56, %v537_v3 }
 0x1df   : > { %v542_v12 = vsel %vm541_vm14, %v883_v56, %v538_v7 }
 0x1e0   : > { %v547_v13 = vsel %vm544_vm15, %v546_v9, %v542_v12 }
 0x1e1   : > { %v550_v14 = vmul.f32 %v547_v13, %v495_v10 }
 0x1e3   : > { %v567_v16 = vsel %vm561_vm0, %v550_v14, 0.0 }
 0x1e4   : > { %569 = vst [vmem:[%s317_s22 + $0x8] sm:$0xff] %v567_v16 }
 0x1e5 PF: > { %s26_s29 = sadd.s32 1, %s1034_s29   ;;  %s1222_s25 = smov %s1026_s27 }
 0x1e6   : > { %p23_p10 = scmp.ge.s32.totalorder %s26_s29, 6   ;;  %s1223_s26 = smov %s1030_s28 }
 0x1e7   : > { %s1224_s27 = smov %s1227_s14  ;;  %s1225_s28 = smov %s1231_s15 }
 0x1e8   :  { %25 = sbr.rel (!%p23_p10) target bundleno = 10 (0xa), region = 83 }
 0x1ed   :  { %600 = vsyncpa [#allocation5], 1 }
 0x1ee   :  { %602 = vsyncpa [#allocation5 + $0x1], 1 }
 0x1ef   :  { %603 = vsyncpa [#allocation7], 1 }

// kernel: conformer_layer_forward.9
= control target key start
LH: loop header
LB: loop body
LE: loop exit
PB: predicated region body
PF: predicated region fallthrough
CT: control target
= control target key end

     0   :  { %s2247_s27 = smov [#allocation6]   ;;  %s2913_s0 = inlined_call_operand.vmem [shape: s32[2], index: 0, kind: input, shape index: {}]   ;;  %s2914_s1 = inlined_call_operand.vmem [shape: bf16[2,32,128], index: 1, kind: input, shape index: {}]   ;;  %s2915_s2 = inlined_call_operand.vmem [shape: bf16[2,32,128], index: 2, kind: input, shape index: {}]   ;;  %s2916_s3 = inlined_call_operand.vmem [shape: bf16[2,32,128], index: 3, kind: input, shape index: {}]   ;;  %s2917_s4 = inlined_call_operand.vmem [shape: f32[2,32,128], index: 4, kind: input, shape index: {}]   ;;  %s2918_s5 = inlined_call_operand.hbm [shape: bf16[128,128], index: 5, kind: input, shape index: {}]   ;;  %s2919_s6 = inlined_call_operand.hbm [shape: f32[1,128], index: 6, kind: input, shape index: {}]   ;;  %s2920_s7 = inlined_call_operand.vmem [shape: f32[2,32,128], index: 7, kind: output, shape index: {}]  }
   0x1   :  { %2921 = sst [smem:[#allocation16_spill]] %s2918_s5  ;;  %s13_s26 = sshll.u32 %s2913_s0, 4  ;;  %s14_s26 = int_to_ptr.vmem [resolvable:$true] %s13_s26 }
   0x2   :  { %2922 = sst [smem:[#allocation17_spill]] %s2919_s6 }
   0x3   :  { %16 = dma.vmem_to_smem %s14_s26, 16, %s2247_s27, [#allocation5] }
   0x4   :  { %2209 = dma.done.wait [#allocation5], 16 }
   0x5   :  { %2210 = vsyncadd [#allocation5], 4294967280 }
   0x6   :  { %19 = sfence }
   0x7   :  { %20 = vsyncpa [#allocation8], 0 }
   0x8   :  { %21 = vsyncpa [#allocation10], 0  ;;  %s2311_s28 = smov 0   ;;  %s2313_s29 = smov 0  }
   0x9   :  { %s2315_s30 = smov 0   ;;  %s2317_s8 = smov 0  }
   0xa   :  { %s2319_s9 = smov 0   ;;  %s2321_s10 = smov 0  }
   0xb   :  { %s2323_s0 = smov 0  }
   0xc LB: > { %s1799_s11 = sadd.s32 4294967295, %s2245_s0   ;;  %s39_s12 = sadd.s32 1, %s2233_s8  ;;  %s2245_s0 = sphi %s2323_s0, %s27_s0   ;;  %s2241_s10 = sphi %s2321_s10, %s2943_s10   ;;  %s2237_s9 = sphi %s2319_s9, %s2942_s9   ;;  %s2233_s8 = sphi %s2317_s8, %s2941_s8   ;;  %s2229_s30 = sphi %s2315_s30, %s2940_s30   ;;  %s2225_s29 = sphi %s2313_s29, %s2939_s29   ;;  %s2221_s28 = sphi %s2311_s28, %s2938_s28  }
   0xd   : > { %p40_p0 = scmp.ge.s32.totalorder %s39_s12, 2  ;;  %s42_s13 = sadd.s32 1, %s2237_s9 }
   0xe   : > { %s46_s14 = sadd.s32 1, %s2241_s10  ;;  %p1801_p1 = scmp.ge.s32.totalorder %s2245_s0, 1 }
   0xf   : > { %s2945_s12 = smov (%p40_p0, %s39_s12), 0  ;;  %s2947_s13 = smov (!%p40_p0, %s42_s13), %s2237_s9 }
  0x10   : > { %p233_p2 = scmp.lt.s32.totalorder %s2245_s0, 9  ;;  %p44_p3 = scmp.ge.s32.totalorder %s2947_s13, 2 }
  0x11   : > { %p2355_p4 = scmp.eq.s32.totalorder %s1799_s11, 0  ;;  %s2925_s5 = sld [smem:[#allocation16_spill]] }
  0x12   : > { %p2359_p5 = pnand %p1801_p1, %p233_p2  ;;  %s2949_s13 = smov (%p44_p3, %s2947_s13), 0 }
  0x13   : > { %2926 = sst [smem:[#allocation14_spill]] %s2949_s13  ;;  %s2951_s14 = smov (!%p44_p3, %s46_s14), %s2241_s10 }
  0x14   : > { %p1923_p6 = pneg %p2359_p5  ;;  %p48_p7 = scmp.ge.s32.totalorder %s2951_s14, 2 }
  0x15   : > { %s2248_s20 = smov [#allocation7]   ;;  %s2249_s22 = smov 64  }
  0x16   : > { %s246_s21 = sshll.u32 %s2248_s20, 4  ;;  %p1924_p8 = pnand %p2355_p4, %p1923_p6  ;;  %s247_s21 = int_to_ptr.vmem [resolvable:$true] %s246_s21 }
  0x17   : > { %s244_s19 = sshll.u32 %s2925_s5, 4  ;;  %s2953_s14 = smov (%p48_p7, %s2951_s14), 0  ;;  %s245_s19 = int_to_ptr.hbm [resolvable:$true] %s244_s19 }
  0x18   : > { %2927 = sst [smem:[#allocation15_spill]] %s2953_s14  ;;  %s2250_s23 = smov 4  }
  0x19   : > { %1926 = dma.hbm_to_vmem [thread:$0]  (!%p1924_p8), %s245_s19, 1024, %s247_s21, [#allocation8], %s2249_s22, %s2249_s22, %s2250_s23  }
  0x1a   : > { %s2928_s6 = sld [smem:[#allocation17_spill]]  ;;  %s2251_s27 = smov [#allocation9]  }
  0x1b   : > { %s261_s11 = sshll.u32 %s2251_s27, 4  ;;  %s262_s11 = int_to_ptr.vmem [resolvable:$true] %s261_s11 }
  0x1d   : > { %326 = sbr.rel (%p2359_p5) target bundleno = 2432 (0x980), region = 44 }
  0x20   : > { %s259_s26 = sshll.u32 %s2928_s6, 4  ;;  %s260_s26 = int_to_ptr.hbm [resolvable:$true] %s259_s26 }
  0x21   : > { %1929 = dma.hbm_to_vmem [thread:$0]  (!%p1924_p8), %s260_s26, 16, %s262_s11, [#allocation10]  }
  0x22   : > { %2212 = dma.done.wait (%p2355_p4), [#allocation8], 1024  }
  0x23   : > { %2214 = vsyncadd (%p2355_p4), [#allocation8], 4294966272 }
  0x24   : > { %2216 = dma.done.wait (%p2355_p4), [#allocation10], 16  }
  0x25   : > { %2218 = vsyncadd (%p2355_p4), [#allocation10], 4294967280  ;;  %s1808_s17 = sshll.u32 %s2225_s29, 1  ;;  %p398_p9 = scmp.lt.s32.totalorder %s2229_s30, 1 }
  0x26   : > { %p400_p10 = scmp.lt.s32.totalorder %s1808_s17, 3  ;;  %s1811_s16 = sshll.u32 %s2221_s28, 1 }
  0x27   : > { %s399_s18 = scalar_select %p398_p9, %s2229_s30, 1 }
  0x28   : > { %s2955_s17 = smov (!%p400_p10, %s1808_s17), 3  ;;  %p410_p11 = scmp.lt.s32.totalorder %s1811_s16, 3 }
  0x29   : > { %s1809_s19 = sshll.u32 %s399_s18, 2  ;;  %p1823_p12 = scmp.ne.s32.totalorder %s2221_s28, 0 }
  0x2a   : > { %s403_s20 = sadd.s32 %s1809_s19, %s2955_s17  ;;  %s2957_s16 = smov (!%p410_p11, %s1811_s16), 3 }
  0x2b   : > { %s1810_s21 = sshll.u32 %s403_s20, 2  ;;  %s1819_s22 = sshll.u32 %s403_s20, 3 }
  0x2c   : > { %s2395_s15 = scalar_lea.vmem %s2914_s1, %s1810_s21  ;;  %s2400_s27 = scalar_lea.vmem %s2917_s4, %s1819_s22 }
  0x2d   : > { %s2405_s6 = scalar_lea.vmem %s2920_s7, %s1819_s22  ;;  %s413_s18 = sadd.s32 %s1809_s19, %s2957_s16 }
  0x2e   : > { %s1813_s17 = sshll.u32 %s413_s18, 2  ;;  %451 = sbr.rel (%p1823_p12) target bundleno = 58 (0x3a), region = 56 }
  0x2f   : > { %s2410_s13 = scalar_lea.vmem %s2915_s2, %s1813_s17  ;;  %s2415_s24 = scalar_lea.vmem %s2916_s3, %s1813_s17 }
  0x33   : > { %vm452_vm0 = vcmask 31744   ;;  %v2252_v0 = vmov -inf   ;;  %v2253_v1 = vmov 0.0  }
  0x34   : > { %453 = vst.msk [vmem:[#allocation2] sm:$0xff] %vm452_vm0, %v2252_v0 }
  0x35   : > { %454 = vst.msk [vmem:[#allocation2 + $0x8] sm:$0xff] %vm452_vm0, %v2252_v0 }
  0x36   : > { %455 = vst [vmem:[#allocation3] sm:$0xff] %v2253_v1 }
  0x37   : > { %456 = vst [vmem:[#allocation3 + $0x8] sm:$0xff] %v2253_v1 }
  0x38   : > { %457 = vst [vmem:[#allocation4] sm:$0xff] %v2253_v1 }
  0x39   : > { %458 = vst [vmem:[#allocation4 + $0x8] sm:$0xff] %v2253_v1 }
  0x3a PF: > { %s2419_s5 = sld [smem:[#allocation6 + %s2229_s30]]  ;;  %s1824_s14 = sshll.u32 %s2225_s29, 4 }
  0x3b   : > { %s2423_s16 = sshll.u32 %s2221_s28, 4  ;;  %s462_s19 = sadd.s32 16, %s1824_s14 }
  0x3c   : > { %s464_s22 = sadd.s32 16, %s2423_s16 }
  0x40   : > { %p463_p13 = scmp.le.s32.totalorder %s462_s19, %s2419_s5  ;;  %p465_p0 = scmp.le.s32.totalorder %s464_s22, %s2419_s5 }
  0x41   : > { %p468_p2 = scmp.lt.s32.totalorder %s2423_s16, %s2419_s5 }
  0x42   : > { %p2430_p1 = pnand %p465_p0, %p463_p13 }
  0x44   : > { %p467_p3 = pneg %p2430_p1 }
  0x46   : > { %p469_p4 = pnand %p468_p2, %p467_p3 }
  0x47   : > { %s2254_s30 = smov (!%p469_p4), 96   ;;  %s2255_s26 = smov (!%p469_p4), 64  }
  0x48   : > { %472 = sbr.rel (%p469_p4) target bundleno = 1156 (0x484), region = 60  ;;  %s2257_s11 = smov (!%p469_p4), 32  }
  0x4d   : > { %v1902_v2 = vld [vmem:[%s2410_s13] sm:$0xff]  ;;  %vm489_vm1 = vcmask 261120   ;;  %vm512_vm2 = vcmask 130048   ;;  %v2256_v9 = vmov 0   ;;  %vm599_vm3 = vcmask 7168   ;;  %v2460_v14 = vld [vmem:[#allocation2 + $0x8] sm:$0xff] }
  0x4e   : > { %v494_v3 = vsel %vm489_vm1, %v1902_v2, 0  ;;  %v1901_v4 = vld [vmem:[%s2395_s15] sm:$0xff]  ;;  %604 = vrot.lane.b32.xlu1 %v1902_v2, %s2254_s30  ;;  %2012 = vset.pattern.permute.xlu2 %v2256_v9  ;;  %v2258_v51 = vmov 1   ;;  %vm720_vm4 = vcmask 15368   ;;  %v2259_v55 = vmov 2  }
  0x4f   : > { %503 = vmatpush.bf16.xpose.msra.mxu0 %v494_v3  ;;  %2011 = vset.pattern.permute.xlu1 %v2256_v9  ;;  %v2451_v10 = vld [vmem:[#allocation2] sm:$0xff]  ;;  %v2260_v59 = vmov 3   ;;  %vm841_vm5 = vcmask 23568   ;;  %vm962_vm6 = vcmask 31768   ;;  %vm680_vm7 = vcmask 523520  }
  0x50   : > { %v2475_v20 = vld [vmem:[%s2415_s24] sm:$0xff]  ;;  %2013 = vset.pattern.permute.xlu0 %v2258_v51  ;;  %vm801_vm8 = vcmask 785920   ;;  %vm922_vm9 = vcmask 1048320  }
  0x51   : > { %588 = vmatpush.bf16.msra.mxu1 %v2475_v20 }
  0x56   : > { %1834 = vmatmul.msk.bf16.vlgmr.msra.gmra.mxu0 %vm489_vm1, %v1901_v4 }
  0xc0   : > { %v605_v18 = vpop.permute.xlu1 %604 }
  0xc1   : > { %v610_v19 = vsel %vm489_vm1, %v605_v18, 0 }
  0xc2   : > { %619 = vmatpush.bf16.xpose.msra.mxu2 %v610_v19 }
  0xd3   : > { %v505_v5 = vpop.f32.mrf.mxu0 }
  0xd4   : > { %v513_v6 = vsel %vm512_vm2, %v505_v5, -inf }
  0xd5   : > { %514 = vmax.xlane.f32.xlu0 %v513_v6 }
  0xdb   : > { %v507_v7 = vpop.f32.mrf.mxu0 }
  0xdc   : > { %v516_v8 = vsel %vm512_vm2, %v507_v7, -inf }
  0xdd   : > { %517 = vmax.xlane.f32.xlu0 %v516_v8 }
  0xf1   : > { %725 = vrot.lane.b32.xlu0 %v1902_v2, %s2255_s26 }
 0x148   : > { %v515_v11 = vpop.xlane.xlu0 %514 }
 0x149   : > { %v2454_v12 = vmax.f32 %v2451_v10, %v515_v11 }
 0x14b   : > { %v521_v13 = vsub.f32 %v2451_v10, %v2454_v12  ;;  %600 = vst.msk [vmem:[#allocation2] sm:$0xff] %vm599_vm3, %v2454_v12  ;;  %529 = vperm.xlu1 %2011, %v2454_v12  }
 0x14d   : > { %v523_v11 = vmul.f32 1.442695, %v521_v13 }
 0x150   : > { %v518_v15 = vpop.xlane.xlu0 %517 }
 0x151   : > { %v2463_v16 = vmax.f32 %v2460_v14, %v518_v15 }
 0x152   : > { %v626_v52 = vld [vmem:[#allocation2] sm:$0xff] }
 0x153   : > { %v522_v17 = vsub.f32 %v2460_v14, %v2463_v16  ;;  %601 = vst.msk [vmem:[#allocation2 + $0x8] sm:$0xff] %vm599_vm3, %v2463_v16  ;;  %534 = vperm.xlu2 %2012, %v2463_v16   ;;  %723 = vrot.lane.b32.xlu1 %v1901_v4, %s2255_s26 }
 0x154   : > { %2016 = vset.pattern.permute.xlu1 %v2259_v55 }
 0x155   : > { %v525_v8 = vmul.f32 1.442695, %v522_v17 }
 0x15a   : > { %v627_v57 = vld [vmem:[#allocation2 + $0x8] sm:$0xff] }
 0x15b   : > { %602 = vrot.lane.b32.xlu2 %v1901_v4, %s2254_s30  ;;  %844 = vrot.lane.b32.xlu1 %v1901_v4, %s2257_s11 }
 0x15c   : > { %2014 = vset.pattern.permute.xlu2 %v2258_v51 }
 0x163   : > { %846 = vrot.lane.b32.xlu2 %v1902_v2, %s2257_s11  ;;  %v726_v21 = vpop.permute.xlu0 %725 }
 0x164   : > { %v731_v22 = vsel %vm489_vm1, %v726_v21, 0 }
 0x165   : > { %740 = vmatpush.bf16.xpose.msrb.mxu1 %v731_v22 }
 0x1ad   : > { %v535_v23 = vpop.permute.xlu2 %534 }
 0x1ae   : > { %v538_v25 = vsub.f32 %v507_v7, %v535_v23 }
 0x1b0   : > { %v541_v26 = vmul.f32 1.442695, %v538_v25 }
 0x1b2   : > { %2026 = vpow2.f32 %v541_v26 }
 0x1b5   : > { %v603_v24 = vpop.permute.xlu2 %602 }
 0x1b6   : > { %1840 = vmatmul.msk.bf16.vlgmr.msra.gmra.mxu2 %vm489_vm1, %v603_v24 }
 0x1b8   : > { %v2481_v33 = vpop.eup %2026 }
 0x1b9   : > { %v560_v23 = vsel %vm512_vm2, %v2481_v33, 0.0 }
 0x1bd   : > { %v530_v27 = vpop.permute.xlu1 %529  ;;  %v847_v28 = vpop.permute.xlu2 %846 }
 0x1be   : > { %v537_v29 = vsub.f32 %v505_v5, %v530_v27  ;;  %v852_v30 = vsel %vm489_vm1, %v847_v28, 0 }
 0x1bf   : > { %861 = vmatpush.bf16.xpose.msrb.mxu0 %v852_v30 }
 0x1c0   : > { %v539_v31 = vmul.f32 1.442695, %v537_v29 }
 0x1c2   : > { %2028 = vpow2.f32 %v539_v31 }
 0x1c3   : > { %2030 = vpow2.f32 %v525_v8 }
 0x1c4   : > { %2032 = vpow2.f32 %v523_v11 }
 0x1c5   : > { %v724_v32 = vpop.permute.xlu1 %723 }
 0x1c8   : > { %v2483_v34 = vpop.eup %2028 }
 0x1c9   : > { %v571_v35 = vpack.c.bf16 %v2481_v33, %v2483_v34  ;;  %v2031_v13 = vpop.eup %2030  ;;  %v557_v25 = vsel %vm512_vm2, %v2483_v34, 0.0 }
 0x1ca   : > { %v2033_v16 = vpop.eup %2032 }
 0x1cb   : > { %1839 = vmatmul.msk.bf16.vlgmr.msra.gmra.mxu1 %vm512_vm2, %v571_v35 }
 0x1cd   : > { %v845_v36 = vpop.permute.xlu1 %844 }
 0x1ce   : > { %1844 = vmatmul.msk.bf16.vlgmr.msrb.gmra.mxu0 %vm489_vm1, %v845_v36 }
 0x1db   : > { %1842 = vmatmul.msk.bf16.vlgmr.msrb.gmra.mxu1 %vm489_vm1, %v724_v32 }
 0x239   : > { %v2490_v37 = vpop.f32.mrf.mxu2 }
 0x23a   : > { %v628_v38 = vsel %vm512_vm2, %v2490_v37, -inf }
 0x23b   : > { %629 = vmax.xlane.f32.xlu2 %v628_v38 }
 0x241   : > { %v2494_v39 = vpop.f32.mrf.mxu2 }
 0x242   : > { %v631_v40 = vsel %vm512_vm2, %v2494_v39, -inf }
 0x243   : > { %632 = vmax.xlane.f32.xlu1 %v631_v40 }
 0x248   : > { %v2498_v41 = vpop.f32.mrf.mxu1 }
 0x24b   : > { %v2500_v42 = vpop.f32.mrf.mxu0 }
 0x24c   : > { %v870_v43 = vsel %vm512_vm2, %v2500_v42, -inf }
 0x24d   : > { %871 = vmax.xlane.f32.xlu2 %v870_v43  ;;  %v568_v43 = vld [vmem:[#allocation4 + $0x8] sm:$0xff] }
 0x250   : > { %v2504_v44 = vpop.f32.mrf.mxu1 }
 0x253   : > { %v2506_v45 = vpop.f32.mrf.mxu0 }
 0x254   : > { %v873_v46 = vsel %vm512_vm2, %v2506_v45, -inf }
 0x255   : > { %874 = vmax.xlane.f32.xlu1 %v873_v46 }
 0x258   : > { %v2510_v47 = vpop.f32.mrf.mxu1 }
 0x259   : > { %v749_v48 = vsel %vm512_vm2, %v2510_v47, -inf }
 0x25a   : > { %750 = vmax.xlane.f32.xlu0 %v749_v48 }
 0x260   : > { %v2514_v49 = vpop.f32.mrf.mxu1 }
 0x261   : > { %v752_v50 = vsel %vm512_vm2, %v2514_v49, -inf }
 0x262   : > { %753 = vmax.xlane.f32.xlu2 %v752_v50 }
 0x26e   : > { %688 = vrot.lane.b32.xlu1 %v2475_v20, %s2254_s30 }
 0x2ae   : > { %v630_v53 = vpop.xlane.xlu2 %629 }
 0x2af   : > { %v634_v54 = vmax.f32 %v626_v52, %v630_v53 }
 0x2b1   : > { %721 = vst.msk [vmem:[#allocation2] sm:$0xff] %vm720_vm4, %v634_v54  ;;  %644 = vperm.xlu0 %2013, %v634_v54   ;;  %v636_v14 = vsub.f32 %v626_v52, %v634_v54 }
 0x2b3   : > { %v638_v12 = vmul.f32 1.442695, %v636_v14 }
 0x2b5   : > { %2034 = vpow2.f32 %v638_v12  ;;  %v543_v12 = vld [vmem:[#allocation3] sm:$0xff] }
 0x2b6   : > { %v633_v56 = vpop.xlane.xlu1 %632 }
 0x2b7   : > { %v635_v58 = vmax.f32 %v627_v57, %v633_v56 }
 0x2b8   : > { %v2523_v61 = vld [vmem:[#allocation2] sm:$0xff] }
 0x2b9   : > { %722 = vst.msk [vmem:[#allocation2 + $0x8] sm:$0xff] %vm720_vm4, %v635_v58  ;;  %649 = vperm.xlu2 %2014, %v635_v58   ;;  %2018 = vset.pattern.permute.xlu0 %v2260_v59  ;;  %v637_v17 = vsub.f32 %v627_v57, %v635_v58 }
 0x2bb   : > { %v2035_v21 = vpop.eup %2034 }
 0x2c0   : > { %v872_v60 = vpop.xlane.xlu2 %871  ;;  %v2532_v1 = vld [vmem:[#allocation2 + $0x8] sm:$0xff] }
 0x2c1   : > { %2015 = vset.pattern.permute.xlu2 %v2259_v55 }
 0x2c8   : > { %v875_v15 = vpop.xlane.xlu1 %874 }
 0x2cd   : > { %v751_v62 = vpop.xlane.xlu0 %750 }
 0x2ce   : > { %v2526_v63 = vmax.f32 %v2523_v61, %v751_v62 }
 0x2d0   : > { %v757_v0 = vsub.f32 %v2523_v61, %v2526_v63  ;;  %842 = vst.msk [vmem:[#allocation2] sm:$0xff] %vm841_vm5, %v2526_v63  ;;  %765 = vperm.xlu2 %2015, %v2526_v63  }
 0x2d2   : > { %v759_v40 = vmul.f32 1.442695, %v757_v0 }
 0x2d5   : > { %v754_v2 = vpop.xlane.xlu2 %753 }
 0x2d6   : > { %v2535_v3 = vmax.f32 %v2532_v1, %v754_v2 }
 0x2d7   : > { %v2537_v4 = vld [vmem:[#allocation2] sm:$0xff] }
 0x2d8   : > { %v758_v5 = vsub.f32 %v2532_v1, %v2535_v3  ;;  %843 = vst.msk [vmem:[#allocation2 + $0x8] sm:$0xff] %vm841_vm5, %v2535_v3  ;;  %809 = vrot.lane.b32.xlu2 %v2475_v20, %s2255_s26  ;;  %770 = vperm.xlu1 %2016, %v2535_v3   ;;  %v2546_v6 = vmax.f32 %v2537_v4, %v872_v60 }
 0x2d9   : > { %2020 = vset.pattern.permute.xlu2 %v2256_v9 }
 0x2da   : > { %v878_v7 = vsub.f32 %v2537_v4, %v2546_v6  ;;  %963 = vst.msk [vmem:[#allocation2] sm:$0xff] %vm962_vm6, %v2546_v6 }
 0x2dc   : > { %v880_v50 = vmul.f32 1.442695, %v878_v7 }
 0x2df   : > { %v2559_v18 = vld [vmem:[#allocation2 + $0x8] sm:$0xff] }
 0x2e0   : > { %930 = vrot.lane.b32.xlu2 %v2475_v20, %s2257_s11  ;;  %2017 = vset.pattern.permute.xlu1 %v2260_v59  ;;  %v2565_v19 = vmax.f32 %v2559_v18, %v875_v15  ;;  %v640_v20 = vmul.f32 1.442695, %v637_v17  ;;  %v689_v24 = vpop.permute.xlu1 %688 }
 0x2e1   : > { %886 = vperm.xlu1 %2017, %v2546_v6   ;;  %701 = vmatpush.bf16.msra.mxu3 %v689_v24  ;;  %v567_v6 = vld [vmem:[#allocation4] sm:$0xff] }
 0x2e2   : > { %891 = vperm.xlu0 %2018, %v2565_v19   ;;  %v879_v10 = vsub.f32 %v2559_v18, %v2565_v19  ;;  %964 = vst.msk [vmem:[#allocation2 + $0x8] sm:$0xff] %vm962_vm6, %v2565_v19  ;;  %2036 = vpow2.f32 %v640_v20 }
 0x2e4   : > { %v882_v57 = vmul.f32 1.442695, %v879_v10 }
 0x2e8   : > { %552 = vperm.xlu2 %2020, %v2031_v13   ;;  %v2037_v22 = vpop.eup %2036 }
 0x2e9   : > { %2019 = vset.pattern.permute.xlu1 %v2256_v9 }
 0x2ea   : > { %547 = vperm.xlu1 %2019, %v2033_v16   ;;  %2023 = vset.pattern.permute.xlu0 %v2259_v55 }
 0x2f0   : > { %2021 = vset.pattern.permute.xlu2 %v2258_v51 }
 0x2f1   : > { %662 = vperm.xlu2 %2021, %v2035_v21  }
 0x2f9   : > { %667 = vperm.xlu2 %2021, %v2037_v22  }
 0x301   : > { %2022 = vset.pattern.permute.xlu2 %v2259_v55 }
 0x30c   : > { %561 = vadd.xlane.f32.xlu0 %v560_v23 }
 0x313   : > { %v650_v9 = vpop.permute.xlu2 %649 }
 0x314   : > { %v653_v26 = vsub.f32 %v2494_v39, %v650_v9  ;;  %558 = vadd.xlane.f32.xlu1 %v557_v25 }
 0x316   : > { %v656_v27 = vmul.f32 1.442695, %v653_v26 }
 0x318   : > { %2038 = vpow2.f32 %v656_v27 }
 0x31e   : > { %v2039_v28 = vpop.eup %2038 }
 0x31f   : > { %v675_v29 = vsel %vm512_vm2, %v2039_v28, 0.0 }
 0x320   : > { %676 = vadd.xlane.f32.xlu1 %v675_v29 }
 0x323   : > { %v645_v30 = vpop.permute.xlu0 %644 }
 0x324   : > { %v652_v31 = vsub.f32 %v2490_v37, %v645_v30 }
 0x326   : > { %v654_v32 = vmul.f32 1.442695, %v652_v31 }
 0x328   : > { %2040 = vpow2.f32 %v654_v32 }
 0x329   : > { %2042 = vpow2.f32 %v759_v40 }
 0x32a   : > { %v766_v33 = vpop.permute.xlu2 %765  ;;  %2044 = vpow2.f32 %v880_v50 }
 0x32b   : > { %v773_v51 = vsub.f32 %v2510_v47, %v766_v33 }
 0x32d   : > { %v775_v53 = vmul.f32 1.442695, %v773_v51 }
 0x32e   : > { %v2041_v35 = vpop.eup %2040 }
 0x32f   : > { %v672_v36 = vsel %vm512_vm2, %v2041_v35, 0.0  ;;  %v687_v38 = vpack.c.bf16 %v2039_v28, %v2041_v35  ;;  %v2043_v52 = vpop.eup %2042  ;;  %2046 = vpow2.f32 %v775_v53  ;;  %v761_v28 = vmul.f32 1.442695, %v758_v5 }
 0x330   : > { %673 = vadd.xlane.f32.xlu2 %v672_v36 }
 0x331   : > { %1841 = vmatmul.msk.bf16.vlgmr.msra.gmra.mxu3 %vm512_vm2, %v687_v38 }
 0x332   : > { %v810_v34 = vpop.permute.xlu2 %809 }
 0x333   : > { %822 = vmatpush.bf16.msrb.mxu3 %v810_v34 }
 0x33a   : > { %v931_v39 = vpop.permute.xlu2 %930 }
 0x33b   : > { %943 = vmatpush.bf16.msrb.mxu2 %v931_v39 }
 0x342   : > { %v553_v37 = vpop.permute.xlu2 %552 }
 0x343   : > { %v570_v46 = vmul.f32 %v568_v43, %v553_v37 }
 0x345   : > { %v596_v48 = vadd.f32 %v2504_v44, %v570_v46  ;;  %v2045_v44 = vpop.eup %2044 }
 0x346   : > { %v2047_v47 = vpop.eup %2046 }
 0x347   : > { %598 = vst.msk [vmem:[#allocation4 + $0x8] sm:$0xff] %vm489_vm1, %v596_v48  ;;  %v793_v3 = vsel %vm512_vm2, %v2047_v47, 0.0 }
 0x348   : > { %783 = vperm.xlu2 %2022, %v2043_v52  }
 0x34a   : > { %v771_v54 = vpop.permute.xlu1 %770 }
 0x34b   : > { %v774_v55 = vsub.f32 %v2514_v49, %v771_v54  ;;  %v663_v16 = vpop.permute.xlu2 %662 }
 0x34d   : > { %v777_v56 = vmul.f32 1.442695, %v774_v55 }
 0x34e   : > { %v684_v46 = vld [vmem:[#allocation4 + $0x8] sm:$0xff] }
 0x34f   : > { %2048 = vpow2.f32 %v777_v56 }
 0x350   : > { %2024 = vset.pattern.permute.xlu2 %v2260_v59  ;;  %2050 = vpow2.f32 %v882_v57 }
 0x351   : > { %904 = vperm.xlu2 %2024, %v2045_v44  }
 0x353   : > { %v887_v58 = vpop.permute.xlu1 %886 }
 0x354   : > { %v894_v60 = vsub.f32 %v2500_v42, %v887_v58  ;;  %v892_v61 = vpop.permute.xlu0 %891 }
 0x355   : > { %v2049_v62 = vpop.eup %2048  ;;  %v895_v63 = vsub.f32 %v2506_v45, %v892_v61  ;;  %v544_v45 = vld [vmem:[#allocation3 + $0x8] sm:$0xff] }
 0x356   : > { %v896_v0 = vmul.f32 1.442695, %v894_v60  ;;  %v808_v2 = vpack.c.bf16 %v2049_v62, %v2047_v47  ;;  %v2051_v4 = vpop.eup %2050  ;;  %v556_v19 = vmul.f32 %v553_v37, %v544_v45  ;;  %v796_v1 = vsel %vm512_vm2, %v2049_v62, 0.0 }
 0x357   : > { %v898_v49 = vmul.f32 1.442695, %v895_v63 }
 0x358   : > { %2052 = vpow2.f32 %v896_v0  ;;  %1843 = vmatmul.msk.bf16.vlgmr.msrb.gmra.mxu3 %vm512_vm2, %v808_v2 }
 0x359   : > { %2054 = vpow2.f32 %v898_v49  ;;  %909 = vperm.xlu2 %2024, %v2051_v4  }
 0x35a   : > { %2056 = vpow2.f32 %v761_v28 }
 0x35c   : > { %v548_v7 = vpop.permute.xlu1 %547 }
 0x35d   : > { %v569_v8 = vmul.f32 %v567_v6, %v548_v7  ;;  %v555_v13 = vmul.f32 %v548_v7, %v543_v12 }
 0x35e   : > { %v2053_v11 = vpop.eup %2052 }
 0x35f   : > { %v2055_v15 = vpop.eup %2054  ;;  %v595_v42 = vadd.f32 %v2498_v41, %v569_v8  ;;  %v668_v41 = vpop.permute.xlu2 %667  ;;  %v914_v5 = vsel %vm512_vm2, %v2053_v11, 0.0 }
 0x360   : > { %v929_v18 = vpack.c.bf16 %v2055_v15, %v2053_v11  ;;  %v2057_v30 = vpop.eup %2056  ;;  %v686_v48 = vmul.f32 %v684_v46, %v668_v41 }
 0x361   : > { %597 = vst.msk [vmem:[#allocation4] sm:$0xff] %vm489_vm1, %v595_v42 }
 0x362   : > { %1845 = vmatmul.msk.bf16.vlgmr.msrb.gmra.mxu2 %vm512_vm2, %v929_v18 }
 0x368   : > { %v683_v34 = vld [vmem:[#allocation4] sm:$0xff] }
 0x369   : > { %v685_v40 = vmul.f32 %v683_v34, %v663_v16 }
 0x37f   : > { %v562_v14 = vpop.xlane.xlu0 %561 }
 0x380   : > { %v564_v10 = vadd.f32 %v562_v14, %v556_v19 }
 0x382   : > { %566 = vst.msk [vmem:[#allocation3 + $0x8] sm:$0xff] %vm489_vm1, %v564_v10 }
 0x387   : > { %v559_v17 = vpop.xlane.xlu1 %558 }
 0x388   : > { %v563_v20 = vadd.f32 %v559_v17, %v555_v13 }
 0x389   : > { %v659_v21 = vld [vmem:[#allocation3 + $0x8] sm:$0xff] }
 0x38a   : > { %565 = vst.msk [vmem:[#allocation3] sm:$0xff] %vm489_vm1, %v563_v20  ;;  %v671_v22 = vmul.f32 %v668_v41, %v659_v21 }
 0x391   : > { %v658_v9 = vld [vmem:[#allocation3] sm:$0xff] }
 0x392   : > { %v670_v25 = vmul.f32 %v663_v16, %v658_v9 }
 0x393   : > { %v677_v23 = vpop.xlane.xlu1 %676 }
 0x394   : > { %v679_v24 = vadd.f32 %v677_v23, %v671_v22 }
 0x396   : > { %682 = vst.msk [vmem:[#allocation3 + $0x8] sm:$0xff] %vm680_vm7, %v679_v24 }
 0x39d   : > { %v780_v62 = vld [vmem:[#allocation3 + $0x8] sm:$0xff] }
 0x3a3   : > { %v674_v26 = vpop.xlane.xlu2 %673 }
 0x3a4   : > { %v678_v27 = vadd.f32 %v674_v26, %v670_v25 }
 0x3a6   : > { %681 = vst.msk [vmem:[#allocation3] sm:$0xff] %vm680_vm7, %v678_v27 }
 0x3ab   : > { %v784_v38 = vpop.permute.xlu2 %783 }
 0x3ad   : > { %v779_v61 = vld [vmem:[#allocation3] sm:$0xff] }
 0x3ae   : > { %v791_v63 = vmul.f32 %v784_v38, %v779_v61 }
 0x3b3   : > { %v905_v39 = vpop.permute.xlu2 %904 }
 0x3b4   : > { %v703_v29 = vpop.f32.mrf.mxu3 }
 0x3b5   : > { %710 = vrot.lane.b32.xlu0 %v703_v29, %s2257_s11 }
 0x3bb   : > { %v910_v50 = vpop.permute.xlu2 %909 }
 0x3bc   : > { %v705_v31 = vpop.f32.mrf.mxu3 }
 0x3bd   : > { %788 = vperm.xlu0 %2023, %v2057_v30   ;;  %712 = vrot.lane.b32.xlu1 %v705_v31, %s2257_s11 }
 0x3c5   : > { %2025 = vset.pattern.permute.xlu0 %v2260_v59  ;;  %v917_v59 = vsel %vm512_vm2, %v2055_v15, 0.0 }
 0x3db   : > { %v824_v32 = vpop.f32.mrf.mxu3 }
 0x3dc   : > { %831 = vrot.lane.b32.xlu2 %v824_v32, %s2255_s26 }
 0x3e3   : > { %v826_v33 = vpop.f32.mrf.mxu3 }
 0x3e4   : > { %833 = vrot.lane.b32.xlu2 %v826_v33, %s2255_s26 }
 0x3e5   : > { %v945_v35 = vpop.f32.mrf.mxu2 }
 0x3e7   : > { %797 = vadd.xlane.f32.xlu0 %v796_v1  ;;  %794 = vadd.xlane.f32.xlu1 %v793_v3 }
 0x3ed   : > { %v947_v36 = vpop.f32.mrf.mxu2 }
 0x3ef   : > { %915 = vadd.xlane.f32.xlu1 %v914_v5 }
 0x3fb   : > { %952 = vrot.lane.b32.xlu0 %v945_v35, %s2254_s30 }
 0x408   : > { %954 = vrot.lane.b32.xlu1 %v947_v36, %s2254_s30 }
 0x40d   : > { %918 = vadd.xlane.f32.xlu2 %v917_v59 }
 0x427   : > { %v711_v43 = vpop.permute.xlu0 %710 }
 0x428   : > { %v716_v37 = vadd.f32 %v711_v43, %v685_v40 }
 0x42a   : > { %718 = vst.msk [vmem:[#allocation4] sm:$0xff] %vm680_vm7, %v716_v37 }
 0x42f   : > { %v713_v51 = vpop.permute.xlu1 %712  ;;  %v789_v44 = vpop.permute.xlu0 %788 }
 0x430   : > { %v717_v52 = vadd.f32 %v713_v51, %v686_v48  ;;  %v792_v0 = vmul.f32 %v789_v44, %v780_v62 }
 0x431   : > { %v804_v53 = vld [vmem:[#allocation4] sm:$0xff] }
 0x432   : > { %719 = vst.msk [vmem:[#allocation4 + $0x8] sm:$0xff] %vm680_vm7, %v717_v52  ;;  %v806_v54 = vmul.f32 %v804_v53, %v784_v38 }
 0x436   : > { %v832_v55 = vpop.permute.xlu2 %831 }
 0x437   : > { %v837_v56 = vadd.f32 %v832_v55, %v806_v54 }
 0x439   : > { %839 = vst.msk [vmem:[#allocation4] sm:$0xff] %vm801_vm8, %v837_v56  ;;  %v805_v57 = vld [vmem:[#allocation4 + $0x8] sm:$0xff] }
 0x43a   : > { %v807_v58 = vmul.f32 %v805_v57, %v789_v44 }
 0x43e   : > { %v834_v47 = vpop.permute.xlu2 %833 }
 0x43f   : > { %v838_v60 = vadd.f32 %v834_v47, %v807_v58 }
 0x440   : > { %v925_v42 = vld [vmem:[#allocation4] sm:$0xff] }
 0x441   : > { %840 = vst.msk [vmem:[#allocation4 + $0x8] sm:$0xff] %vm801_vm8, %v838_v60  ;;  %v927_v18 = vmul.f32 %v925_v42, %v905_v39 }
 0x448   : > { %v926_v14 = vld [vmem:[#allocation4 + $0x8] sm:$0xff] }
 0x449   : > { %v928_v10 = vmul.f32 %v926_v14, %v910_v50 }
 0x45a   : > { %v798_v2 = vpop.xlane.xlu0 %797  ;;  %v795_v49 = vpop.xlane.xlu1 %794 }
 0x45b   : > { %v800_v4 = vadd.f32 %v798_v2, %v792_v0  ;;  %v799_v6 = vadd.f32 %v795_v49, %v791_v63 }
 0x45d   : > { %803 = vst.msk [vmem:[#allocation3 + $0x8] sm:$0xff] %vm801_vm8, %v800_v4 }
 0x45e   : > { %802 = vst.msk [vmem:[#allocation3] sm:$0xff] %vm801_vm8, %v799_v6 }
 0x462   : > { %v916_v11 = vpop.xlane.xlu1 %915 }
 0x464   : > { %v901_v16 = vld [vmem:[#allocation3 + $0x8] sm:$0xff] }
 0x465   : > { %v900_v7 = vld [vmem:[#allocation3] sm:$0xff]  ;;  %v913_v17 = vmul.f32 %v910_v50, %v901_v16 }
 0x466   : > { %v912_v8 = vmul.f32 %v905_v39, %v900_v7 }
 0x468   : > { %v920_v15 = vadd.f32 %v916_v11, %v912_v8 }
 0x46a   : > { %923 = vst.msk [vmem:[#allocation3] sm:$0xff] %vm922_vm9, %v920_v15 }
 0x46d   : > { %v953_v45 = vpop.permute.xlu0 %952 }
 0x46e   : > { %v958_v19 = vadd.f32 %v953_v45, %v927_v18 }
 0x470   : > { %960 = vst.msk [vmem:[#allocation4] sm:$0xff] %vm922_vm9, %v958_v19 }
 0x47a   : > { %v955_v12 = vpop.permute.xlu1 %954 }
 0x47b   : > { %v959_v13 = vadd.f32 %v955_v12, %v928_v10 }
 0x47d   : > { %961 = vst.msk [vmem:[#allocation4 + $0x8] sm:$0xff] %vm922_vm9, %v959_v13 }
 0x480   : > { %v919_v20 = vpop.xlane.xlu2 %918 }
 0x481   : > { %v921_v21 = vadd.f32 %v919_v20, %v913_v17 }
 0x483   : > { %924 = vst.msk [vmem:[#allocation3 + $0x8] sm:$0xff] %vm922_vm9, %v921_v21 }
 0x484 PF: > { %p966_p5 = pnand %p468_p2, %p2430_p1 }
 0x485   : > { %s2261_s18 = smov (!%p966_p5), 96   ;;  %s2262_s17 = smov (!%p966_p5), 32  }
 0x486   : > { %969 = sbr.rel (%p966_p5) target bundleno = 2254 (0x8ce), region = 64  ;;  %s2263_s29 = smov (!%p966_p5), 64  }
 0x48b   : > { %v1905_v41 = vld [vmem:[%s2410_s13] sm:$0xff]  ;;  %vm1002_vm10 = vcmask 261120   ;;  %v976_v26 = vlaneseq  ;;  %v979_v29 = vstv %s1824_s14  ;;  %v984_v30 = vstv %s2423_s16  ;;  %v2678_v54 = vld [vmem:[#allocation2 + $0x8] sm:$0xff] }
 0x48c   : > { %1121 = vrot.lane.b32.xlu2 %v1905_v41, %s2261_s18  ;;  %v1007_v22 = vsel %vm1002_vm10, %v1905_v41, 0  ;;  %v1904_v23 = vld [vmem:[%s2395_s15] sm:$0xff]  ;;  %v986_v33 = vstv %s2419_s5  ;;  %vm1027_vm14 = vcmask 130048   ;;  %v2264_v43 = vmov 0  }
 0x48d   : > { %1016 = vmatpush.bf16.xpose.msra.mxu0 %v1007_v22  ;;  %v977_v27 = vshrl.u32 %v976_v26, 7  ;;  %v983_v28 = vand.u32 127, %v976_v26  ;;  %2058 = vset.pattern.permute.xlu1 %v2264_v43  ;;  %v2669_v50 = vld [vmem:[#allocation2] sm:$0xff]  ;;  %vm1116_vm1 = vcmask 7168   ;;  %vm1241_vm2 = vcmask 15368  }
 0x48e   : > { %v2701_v0 = vld [vmem:[%s2415_s24] sm:$0xff]  ;;  %v2265_v21 = vmov 1   ;;  %vm1366_vm3 = vcmask 23568   ;;  %vm1491_vm4 = vcmask 31768   ;;  %vm1199_vm5 = vcmask 523520  }
 0x48f   : > { %v980_v31 = vadd.s32 %v979_v29, %v977_v27  ;;  %v985_v32 = vadd.s32 %v984_v30, %v983_v28  ;;  %v978_v1 = vadd.s32 8, %v977_v27  ;;  %1105 = vmatpush.bf16.msra.mxu1 %v2701_v0  ;;  %2059 = vset.pattern.permute.xlu0 %v2265_v21  ;;  %vm1324_vm6 = vcmask 785920  }
 0x490   : > { %2060 = vset.pattern.permute.xlu2 %v2265_v21  ;;  %vm1449_vm7 = vcmask 1048320  }
 0x491   : > { %vm987_vm11 = vcmp.ge.s32.totalorder %v980_v31, %v986_v33  ;;  %vm989_vm12 = vcmp.ge.s32.totalorder %v985_v32, %v986_v33  ;;  %v981_v5 = vadd.s32 %v979_v29, %v978_v1  ;;  %v2266_v1 = vmov 2  }
 0x492   : > { %vm2647_vm13 = vmor %vm987_vm11, %vm989_vm12 }
 0x493   : > { %vm988_vm15 = vcmp.ge.s32.totalorder %v981_v5, %v986_v33  ;;  %v2267_v5 = vmov 3  }
 0x494   : > { %1119 = vrot.lane.b32.xlu2 %v1904_v23, %s2261_s18  ;;  %1854 = vmatmul.msk.bf16.vlgmr.msra.gmra.mxu0 %vm1002_vm10, %v1904_v23  ;;  %vm2654_vm0 = vmor %vm988_vm15, %vm989_vm12 }
 0x49c   : > { %1371 = vrot.lane.b32.xlu2 %v1905_v41, %s2262_s17 }
 0x4e6   : > { %v1122_v24 = vpop.permute.xlu2 %1121 }
 0x4e7   : > { %v1127_v9 = vsel %vm1002_vm10, %v1122_v24, 0 }
 0x4e8   : > { %1136 = vmatpush.bf16.xpose.msra.mxu2 %v1127_v9 }
 0x4ee   : > { %v1120_v25 = vpop.permute.xlu2 %1119 }
 0x4ef   : > { %1860 = vmatmul.msk.bf16.vlgmr.msra.gmra.mxu2 %vm1002_vm10, %v1120_v25 }
 0x4f6   : > { %v1372_v60 = vpop.permute.xlu2 %1371 }
 0x4f7   : > { %v1377_v4 = vsel %vm1002_vm10, %v1372_v60, 0 }
 0x4f8   : > { %1386 = vmatpush.bf16.xpose.msrb.mxu0 %v1377_v4 }
 0x511   : > { %v1018_v35 = vpop.f32.mrf.mxu0 }
 0x512   : > { %v1023_v36 = vsel %vm2647_vm13, -10000.0, %v1018_v35 }
 0x513   : > { %v1028_v59 = vsel %vm1027_vm14, %v1023_v36, -inf }
 0x514   : > { %1029 = vmax.xlane.f32.xlu0 %v1028_v59 }
 0x519   : > { %v1020_v34 = vpop.f32.mrf.mxu0 }
 0x51a   : > { %v1024_v39 = vsel %vm2654_vm0, -10000.0, %v1020_v34 }
 0x51b   : > { %v1031_v40 = vsel %vm1027_vm14, %v1024_v39, -inf }
 0x51c   : > { %1032 = vmax.xlane.f32.xlu0 %v1031_v40 }
 0x530   : > { %1246 = vrot.lane.b32.xlu0 %v1905_v41, %s2263_s29 }
 0x572   : > { %v1138_v37 = vpop.f32.mrf.mxu2 }
 0x573   : > { %v2665_v46 = vsel %vm2647_vm13, -10000.0, %v1138_v37 }
 0x574   : > { %v1147_v48 = vsel %vm1027_vm14, %v2665_v46, -inf }
 0x575   : > { %1148 = vmax.xlane.f32.xlu2 %v1147_v48 }
 0x57a   : > { %v1140_v44 = vpop.f32.mrf.mxu2 }
 0x57b   : > { %v2691_v58 = vsel %vm2654_vm0, -10000.0, %v1140_v44 }
 0x57c   : > { %v1150_v47 = vsel %vm1027_vm14, %v2691_v58, -inf }
 0x587   : > { %v1030_v51 = vpop.xlane.xlu0 %1029 }
 0x588   : > { %v2672_v52 = vmax.f32 %v2669_v50, %v1030_v51 }
 0x58a   : > { %v1036_v53 = vsub.f32 %v2669_v50, %v2672_v52  ;;  %1117 = vst.msk [vmem:[#allocation2] sm:$0xff] %vm1116_vm1, %v2672_v52  ;;  %1044 = vperm.xlu1 %2058, %v2672_v52  }
 0x58f   : > { %v1033_v55 = vpop.xlane.xlu0 %1032 }
 0x590   : > { %v2681_v56 = vmax.f32 %v2678_v54, %v1033_v55 }
 0x591   : > { %v2695_v62 = vld [vmem:[#allocation2] sm:$0xff] }
 0x592   : > { %v1037_v57 = vsub.f32 %v2678_v54, %v2681_v56  ;;  %1118 = vst.msk [vmem:[#allocation2 + $0x8] sm:$0xff] %vm1116_vm1, %v2681_v56  ;;  %1049 = vperm.xlu1 %2058, %v2681_v56  }
 0x599   : > { %v2721_v17 = vld [vmem:[#allocation2 + $0x8] sm:$0xff] }
 0x59a   : > { %1244 = vrot.lane.b32.xlu1 %v1904_v23, %s2263_s29 }
 0x59b   : > { %2062 = vset.pattern.permute.xlu1 %v2266_v1 }
 0x5a2   : > { %1369 = vrot.lane.b32.xlu1 %v1904_v23, %s2262_s17  ;;  %v1247_v2 = vpop.permute.xlu0 %1246 }
 0x5a3   : > { %v1252_v49 = vsel %vm1002_vm10, %v1247_v2, 0 }
 0x5a4   : > { %1261 = vmatpush.bf16.xpose.msrb.mxu1 %v1252_v49  ;;  %v1038_v49 = vmul.f32 1.442695, %v1036_v53 }
 0x5cc   : > { %1151 = vmax.xlane.f32.xlu1 %v1150_v47 }
 0x5e8   : > { %v1149_v61 = vpop.xlane.xlu2 %1148 }
 0x5e9   : > { %v2698_v63 = vmax.f32 %v2695_v62, %v1149_v61  ;;  %v1040_v61 = vmul.f32 1.442695, %v1037_v57 }
 0x5eb   : > { %1242 = vst.msk [vmem:[#allocation2] sm:$0xff] %vm1241_vm2, %v2698_v63  ;;  %v1155_v50 = vsub.f32 %v2695_v62, %v2698_v63 }
 0x5ed   : > { %v1157_v56 = vmul.f32 1.442695, %v1155_v50 }
 0x5fc   : > { %v1045_v6 = vpop.permute.xlu1 %1044 }
 0x5fd   : > { %v1052_v7 = vsub.f32 %v1023_v36, %v1045_v6  ;;  %v2765_v36 = vld [vmem:[#allocation2] sm:$0xff] }
 0x5ff   : > { %v1054_v8 = vmul.f32 1.442695, %v1052_v7 }
 0x601   : > { %2072 = vpow2.f32 %v1054_v8 }
 0x604   : > { %v1050_v11 = vpop.permute.xlu1 %1049 }
 0x605   : > { %v1053_v15 = vsub.f32 %v1024_v39, %v1050_v11 }
 0x607   : > { %v1056_v42 = vmul.f32 1.442695, %v1053_v15  ;;  %v2708_v45 = vpop.eup %2072 }
 0x608   : > { %v1082_v14 = vsel %vm2647_vm13, 0.0, %v2708_v45 }
 0x609   : > { %2074 = vpow2.f32 %v1056_v42 }
 0x60a   : > { %2076 = vpow2.f32 %v1040_v61 }
 0x60b   : > { %2078 = vpow2.f32 %v1038_v49 }
 0x60c   : > { %v1245_v18 = vpop.permute.xlu1 %1244 }
 0x60f   : > { %v2710_v19 = vpop.eup %2074 }
 0x610   : > { %v1083_v10 = vsel %vm2654_vm0, 0.0, %v2710_v19  ;;  %v2077_v57 = vpop.eup %2076 }
 0x611   : > { %v1088_v12 = vpack.c.bf16 %v1083_v10, %v1082_v14 }
 0x613   : > { %1859 = vmatmul.msk.bf16.vlgmr.msra.gmra.mxu1 %vm1027_vm14, %v1088_v12  ;;  %v1075_v12 = vsel %vm1027_vm14, %v2710_v19, 0.0 }
 0x614   : > { %v1370_v13 = vpop.permute.xlu1 %1369 }
 0x615   : > { %1864 = vmatmul.msk.bf16.vlgmr.msrb.gmra.mxu0 %vm1002_vm10, %v1370_v13  ;;  %v1072_v13 = vsel %vm1027_vm14, %v2708_v45, 0.0 }
 0x623   : > { %1862 = vmatmul.msk.bf16.vlgmr.msrb.gmra.mxu1 %vm1002_vm10, %v1245_v18 }
 0x63f   : > { %v1152_v16 = vpop.xlane.xlu1 %1151 }
 0x640   : > { %v2724_v20 = vmax.f32 %v2721_v17, %v1152_v16 }
 0x642   : > { %1243 = vst.msk [vmem:[#allocation2 + $0x8] sm:$0xff] %vm1241_vm2, %v2724_v20 }
 0x649   : > { %v2774_v40 = vld [vmem:[#allocation2 + $0x8] sm:$0xff] }
 0x690   : > { %v2730_v41 = vpop.f32.mrf.mxu1 }
 0x692   : > { %v1388_v22 = vpop.f32.mrf.mxu0 }
 0x693   : > { %v2734_v23 = vsel %vm2647_vm13, -10000.0, %v1388_v22 }
 0x694   : > { %v1397_v24 = vsel %vm1027_vm14, %v2734_v23, -inf }
 0x695   : > { %1398 = vmax.xlane.f32.xlu2 %v1397_v24 }
 0x698   : > { %v2738_v9 = vpop.f32.mrf.mxu1 }
 0x69a   : > { %v1390_v25 = vpop.f32.mrf.mxu0 }
 0x69b   : > { %v2742_v26 = vsel %vm2654_vm0, -10000.0, %v1390_v25 }
 0x69c   : > { %v1400_v27 = vsel %vm1027_vm14, %v2742_v26, -inf }
 0x69d   : > { %1401 = vmax.xlane.f32.xlu1 %v1400_v27  ;;  %v1085_v27 = vld [vmem:[#allocation4 + $0x8] sm:$0xff] }
 0x6a0   : > { %v1263_v28 = vpop.f32.mrf.mxu1 }
 0x6a1   : > { %v2748_v29 = vsel %vm2647_vm13, -10000.0, %v1263_v28 }
 0x6a2   : > { %v1272_v30 = vsel %vm1027_vm14, %v2748_v29, -inf }
 0x6a3   : > { %1273 = vmax.xlane.f32.xlu0 %v1272_v30 }
 0x6a8   : > { %v1265_v31 = vpop.f32.mrf.mxu1 }
 0x6a9   : > { %v2754_v32 = vsel %vm2654_vm0, -10000.0, %v1265_v31 }
 0x6aa   : > { %v1275_v33 = vsel %vm1027_vm14, %v2754_v32, -inf }
 0x6ab   : > { %1276 = vmax.xlane.f32.xlu2 %v1275_v33 }
 0x6b6   : > { %1209 = vrot.lane.b32.xlu1 %v2701_v0, %s2261_s18 }
 0x6b7   : > { %1163 = vperm.xlu0 %2059, %v2698_v63  }
 0x6bf   : > { %2064 = vset.pattern.permute.xlu0 %v2267_v5 }
 0x6c3   : > { %1168 = vperm.xlu2 %2060, %v2724_v20  }
 0x6cb   : > { %2061 = vset.pattern.permute.xlu2 %v2266_v1 }
 0x708   : > { %v1399_v35 = vpop.xlane.xlu2 %1398 }
 0x710   : > { %v1402_v51 = vpop.xlane.xlu1 %1401 }
 0x716   : > { %v1274_v59 = vpop.xlane.xlu0 %1273 }
 0x717   : > { %v2768_v34 = vmax.f32 %v2765_v36, %v1274_v59 }
 0x719   : > { %v1280_v39 = vsub.f32 %v2765_v36, %v2768_v34  ;;  %1367 = vst.msk [vmem:[#allocation2] sm:$0xff] %vm1366_vm3, %v2768_v34  ;;  %1288 = vperm.xlu2 %2061, %v2768_v34  }
 0x71e   : > { %v1277_v37 = vpop.xlane.xlu2 %1276 }
 0x71f   : > { %v2777_v48 = vmax.f32 %v2774_v40, %v1277_v37 }
 0x720   : > { %v2779_v55 = vld [vmem:[#allocation2] sm:$0xff] }
 0x721   : > { %v1281_v44 = vsub.f32 %v2774_v40, %v2777_v48  ;;  %1368 = vst.msk [vmem:[#allocation2 + $0x8] sm:$0xff] %vm1366_vm3, %v2777_v48  ;;  %1334 = vrot.lane.b32.xlu2 %v2701_v0, %s2263_s29  ;;  %1293 = vperm.xlu1 %2062, %v2777_v48   ;;  %v2788_v47 = vmax.f32 %v2779_v55, %v1399_v35 }
 0x722   : > { %2066 = vset.pattern.permute.xlu2 %v2264_v43 }
 0x723   : > { %v1405_v60 = vsub.f32 %v2779_v55, %v2788_v47  ;;  %1492 = vst.msk [vmem:[#allocation2] sm:$0xff] %vm1491_vm4, %v2788_v47  ;;  %v1284_v50 = vmul.f32 1.442695, %v1281_v44 }
 0x725   : > { %v1407_v19 = vmul.f32 1.442695, %v1405_v60 }
 0x726   : > { %v1169_v2 = vpop.permute.xlu2 %1168 }
 0x727   : > { %v1172_v4 = vsub.f32 %v2691_v58, %v1169_v2  ;;  %v2079_v58 = vpop.eup %2078 }
 0x728   : > { %v1396_v6 = vld [vmem:[#allocation2 + $0x8] sm:$0xff]  ;;  %v1210_v7 = vpop.permute.xlu1 %1209 }
 0x729   : > { %v1175_v8 = vmul.f32 1.442695, %v1172_v4  ;;  %v1164_v11 = vpop.permute.xlu0 %1163  ;;  %1459 = vrot.lane.b32.xlu2 %v2701_v0, %s2262_s17  ;;  %2063 = vset.pattern.permute.xlu1 %v2267_v5  ;;  %v1404_v15 = vmax.f32 %v1396_v6, %v1402_v51  ;;  %v1084_v4 = vld [vmem:[#allocation4] sm:$0xff] }
 0x72a   : > { %v1171_v54 = vsub.f32 %v2665_v46, %v1164_v11  ;;  %1413 = vperm.xlu1 %2063, %v2788_v47   ;;  %1222 = vmatpush.bf16.msra.mxu3 %v1210_v7  ;;  %v1156_v46 = vsub.f32 %v2721_v17, %v2724_v20 }
 0x72b   : > { %1418 = vperm.xlu0 %2064, %v1404_v15   ;;  %v1406_v52 = vsub.f32 %v1396_v6, %v1404_v15  ;;  %1493 = vst.msk [vmem:[#allocation2 + $0x8] sm:$0xff] %vm1491_vm4, %v1404_v15  ;;  %2080 = vpow2.f32 %v1175_v8 }
 0x72c   : > { %v1173_v53 = vmul.f32 1.442695, %v1171_v54  ;;  %v1159_v14 = vmul.f32 1.442695, %v1156_v46 }
 0x72d   : > { %v1409_v45 = vmul.f32 1.442695, %v1406_v52 }
 0x72e   : > { %2082 = vpow2.f32 %v1173_v53  ;;  %v1059_v53 = vld [vmem:[#allocation3 + $0x8] sm:$0xff] }
 0x72f   : > { %2084 = vpow2.f32 %v1157_v56 }
 0x730   : > { %2086 = vpow2.f32 %v1159_v14 }
 0x731   : > { %1067 = vperm.xlu2 %2066, %v2077_v57   ;;  %v2081_v0 = vpop.eup %2080 }
 0x732   : > { %2065 = vset.pattern.permute.xlu1 %v2264_v43  ;;  %v1203_v42 = vsel %vm2654_vm0, 0.0, %v2081_v0  ;;  %v1194_v16 = vsel %vm1027_vm14, %v2081_v0, 0.0  ;;  %v1058_v0 = vld [vmem:[#allocation3] sm:$0xff] }
 0x733   : > { %1062 = vperm.xlu1 %2065, %v2079_v58   ;;  %2069 = vset.pattern.permute.xlu0 %v2266_v1 }
 0x734   : > { %v2083_v62 = vpop.eup %2082 }
 0x735   : > { %v1202_v63 = vsel %vm2647_vm13, 0.0, %v2083_v62  ;;  %v2085_v10 = vpop.eup %2084  ;;  %v1191_v17 = vsel %vm1027_vm14, %v2083_v62, 0.0 }
 0x736   : > { %v1208_v18 = vpack.c.bf16 %v1203_v42, %v1202_v63  ;;  %v2087_v43 = vpop.eup %2086 }
 0x738   : > { %1861 = vmatmul.msk.bf16.vlgmr.msra.gmra.mxu3 %vm1027_vm14, %v1208_v18 }
 0x739   : > { %2067 = vset.pattern.permute.xlu2 %v2265_v21  ;;  %v1282_v21 = vmul.f32 1.442695, %v1280_v39 }
 0x73a   : > { %1181 = vperm.xlu2 %2067, %v2085_v10  }
 0x73b   : > { %2088 = vpow2.f32 %v1282_v21 }
 0x73c   : > { %2090 = vpow2.f32 %v1407_v19 }
 0x73d   : > { %2092 = vpow2.f32 %v1409_v45 }
 0x741   : > { %v2089_v24 = vpop.eup %2088 }
 0x742   : > { %1186 = vperm.xlu2 %2067, %v2087_v43   ;;  %v2091_v28 = vpop.eup %2090 }
 0x743   : > { %v2093_v36 = vpop.eup %2092 }
 0x74a   : > { %2068 = vset.pattern.permute.xlu2 %v2266_v1 }
 0x755   : > { %1076 = vadd.xlane.f32.xlu0 %v1075_v12 }
 0x75d   : > { %1073 = vadd.xlane.f32.xlu1 %v1072_v13 }
 0x765   : > { %1195 = vadd.xlane.f32.xlu1 %v1194_v16 }
 0x76b   : > { %1192 = vadd.xlane.f32.xlu2 %v1191_v17 }
 0x773   : > { %v1289_v20 = vpop.permute.xlu2 %1288 }
 0x774   : > { %v1296_v33 = vsub.f32 %v2748_v29, %v1289_v20 }
 0x776   : > { %v1298_v35 = vmul.f32 1.442695, %v1296_v33 }
 0x778   : > { %2094 = vpow2.f32 %v1298_v35 }
 0x77b   : > { %v1335_v22 = vpop.permute.xlu2 %1334 }
 0x77c   : > { %1347 = vmatpush.bf16.msrb.mxu3 %v1335_v22 }
 0x77e   : > { %v2095_v37 = vpop.eup %2094 }
 0x77f   : > { %v1327_v61 = vsel %vm2647_vm13, 0.0, %v2095_v37  ;;  %v1316_v13 = vsel %vm1027_vm14, %v2095_v37, 0.0 }
 0x783   : > { %1306 = vperm.xlu2 %2068, %v2089_v24   ;;  %v1460_v25 = vpop.permute.xlu2 %1459 }
 0x784   : > { %1472 = vmatpush.bf16.msrb.mxu2 %v1460_v25 }
 0x78b   : > { %2070 = vset.pattern.permute.xlu2 %v2267_v5  ;;  %v1068_v30 = vpop.permute.xlu2 %1067 }
 0x78c   : > { %v1087_v31 = vmul.f32 %v1085_v27, %v1068_v30  ;;  %1431 = vperm.xlu2 %2070, %v2091_v28   ;;  %v1071_v38 = vmul.f32 %v1068_v30, %v1059_v53 }
 0x78e   : > { %v1113_v1 = vadd.f32 %v2738_v9, %v1087_v31 }
 0x790   : > { %1115 = vst.msk [vmem:[#allocation4 + $0x8] sm:$0xff] %vm1002_vm10, %v1113_v1 }
 0x793   : > { %v1294_v59 = vpop.permute.xlu1 %1293 }
 0x794   : > { %v1297_v34 = vsub.f32 %v2754_v32, %v1294_v59  ;;  %1436 = vperm.xlu2 %2070, %v2093_v36   ;;  %v1182_v58 = vpop.permute.xlu2 %1181 }
 0x796   : > { %v1300_v39 = vmul.f32 1.442695, %v1297_v34 }
 0x797   : > { %v1205_v45 = vld [vmem:[#allocation4 + $0x8] sm:$0xff] }
 0x798   : > { %2096 = vpow2.f32 %v1300_v39 }
 0x79c   : > { %v1414_v51 = vpop.permute.xlu1 %1413  ;;  %v1187_v62 = vpop.permute.xlu2 %1186 }
 0x79d   : > { %v1421_v55 = vsub.f32 %v2734_v23, %v1414_v51  ;;  %v1419_v47 = vpop.permute.xlu0 %1418  ;;  %v1207_v27 = vmul.f32 %v1205_v45, %v1187_v62 }
 0x79e   : > { %v2097_v60 = vpop.eup %2096  ;;  %v1422_v29 = vsub.f32 %v2742_v26, %v1419_v47 }
 0x79f   : > { %v1423_v9 = vmul.f32 1.442695, %v1421_v55  ;;  %v1328_v2 = vsel %vm2654_vm0, 0.0, %v2097_v60 }
 0x7a0   : > { %v1425_v32 = vmul.f32 1.442695, %v1422_v29  ;;  %v1333_v49 = vpack.c.bf16 %v1328_v2, %v1327_v61 }
 0x7a1   : > { %2098 = vpow2.f32 %v1423_v9 }
 0x7a2   : > { %2100 = vpow2.f32 %v1425_v32  ;;  %1863 = vmatmul.msk.bf16.vlgmr.msrb.gmra.mxu3 %vm1027_vm14, %v1333_v49 }
 0x7a3   : > { %2102 = vpow2.f32 %v1284_v50 }
 0x7a5   : > { %v1063_v6 = vpop.permute.xlu1 %1062 }
 0x7a6   : > { %v1086_v23 = vmul.f32 %v1084_v4, %v1063_v6  ;;  %v1070_v40 = vmul.f32 %v1063_v6, %v1058_v0 }
 0x7a7   : > { %v2099_v7 = vpop.eup %2098 }
 0x7a8   : > { %v2842_v8 = vpop.eup %2100  ;;  %v1112_v26 = vadd.f32 %v2730_v41, %v1086_v23  ;;  %v1452_v11 = vsel %vm2647_vm13, 0.0, %v2099_v7  ;;  %v1441_v16 = vsel %vm1027_vm14, %v2099_v7, 0.0 }
 0x7a9   : > { %v1453_v15 = vsel %vm2654_vm0, 0.0, %v2842_v8  ;;  %v2103_v41 = vpop.eup %2102  ;;  %v1444_v33 = vsel %vm1027_vm14, %v2842_v8, 0.0 }
 0x7aa   : > { %1114 = vst.msk [vmem:[#allocation4] sm:$0xff] %vm1002_vm10, %v1112_v26  ;;  %v1458_v54 = vpack.c.bf16 %v1453_v15, %v1452_v11 }
 0x7ac   : > { %1865 = vmatmul.msk.bf16.vlgmr.msrb.gmra.mxu2 %vm1027_vm14, %v1458_v54 }
 0x7b1   : > { %v1204_v20 = vld [vmem:[#allocation4] sm:$0xff] }
 0x7b2   : > { %v1206_v22 = vmul.f32 %v1204_v20, %v1182_v58 }
 0x7bb   : > { %v1224_v52 = vpop.f32.mrf.mxu3 }
 0x7bc   : > { %1231 = vrot.lane.b32.xlu0 %v1224_v52, %s2262_s17 }
 0x7c3   : > { %v1226_v3 = vpop.f32.mrf.mxu3 }
 0x7c4   : > { %1311 = vperm.xlu0 %2069, %v2103_v41   ;;  %1233 = vrot.lane.b32.xlu1 %v1226_v3, %s2262_s17 }
 0x7c8   : > { %v1077_v56 = vpop.xlane.xlu0 %1076 }
 0x7c9   : > { %v1079_v57 = vadd.f32 %v1077_v56, %v1071_v38 }
 0x7cb   : > { %1081 = vst.msk [vmem:[#allocation3 + $0x8] sm:$0xff] %vm1002_vm10, %v1079_v57 }
 0x7cc   : > { %2071 = vset.pattern.permute.xlu0 %v2267_v5  ;;  %v1319_v5 = vsel %vm1027_vm14, %v2097_v60, 0.0 }
 0x7d0   : > { %v1074_v48 = vpop.xlane.xlu1 %1073 }
 0x7d1   : > { %v1078_v44 = vadd.f32 %v1074_v48, %v1070_v40 }
 0x7d2   : > { %v1178_v46 = vld [vmem:[#allocation3 + $0x8] sm:$0xff] }
 0x7d3   : > { %1080 = vst.msk [vmem:[#allocation3] sm:$0xff] %vm1002_vm10, %v1078_v44  ;;  %v1190_v63 = vmul.f32 %v1187_v62, %v1178_v46 }
 0x7d8   : > { %v1196_v42 = vpop.xlane.xlu1 %1195 }
 0x7d9   : > { %v1198_v18 = vadd.f32 %v1196_v42, %v1190_v63 }
 0x7da   : > { %v1177_v14 = vld [vmem:[#allocation3] sm:$0xff] }
 0x7db   : > { %1201 = vst.msk [vmem:[#allocation3 + $0x8] sm:$0xff] %vm1199_vm5, %v1198_v18  ;;  %v1189_v10 = vmul.f32 %v1182_v58, %v1177_v14 }
 0x7de   : > { %v1193_v43 = vpop.xlane.xlu2 %1192 }
 0x7df   : > { %v1197_v12 = vadd.f32 %v1193_v43, %v1189_v10 }
 0x7e1   : > { %1200 = vst.msk [vmem:[#allocation3] sm:$0xff] %vm1199_vm5, %v1197_v12 }
 0x7e2   : > { %v1303_v59 = vld [vmem:[#allocation3 + $0x8] sm:$0xff] }
 0x7e6   : > { %v1307_v36 = vpop.permute.xlu2 %1306 }
 0x7e8   : > { %v1302_v35 = vld [vmem:[#allocation3] sm:$0xff] }
 0x7e9   : > { %v1314_v34 = vmul.f32 %v1307_v36, %v1302_v35 }
 0x7ee   : > { %1320 = vadd.xlane.f32.xlu0 %v1319_v5  ;;  %1317 = vadd.xlane.f32.xlu1 %v1316_v13  ;;  %v1432_v60 = vpop.permute.xlu2 %1431 }
 0x7f6   : > { %1442 = vadd.xlane.f32.xlu1 %v1441_v16  ;;  %v1437_v32 = vpop.permute.xlu2 %1436 }
 0x825   : > { %v1349_v17 = vpop.f32.mrf.mxu3 }
 0x826   : > { %1356 = vrot.lane.b32.xlu2 %v1349_v17, %s2263_s29 }
 0x82d   : > { %v1351_v21 = vpop.f32.mrf.mxu3 }
 0x82e   : > { %v1232_v19 = vpop.permute.xlu0 %1231  ;;  %1358 = vrot.lane.b32.xlu2 %v1351_v21, %s2263_s29 }
 0x82f   : > { %v1237_v24 = vadd.f32 %v1232_v19, %v1206_v22  ;;  %v1474_v25 = vpop.f32.mrf.mxu2 }
 0x830   : > { %1481 = vrot.lane.b32.xlu0 %v1474_v25, %s2261_s18 }
 0x831   : > { %1239 = vst.msk [vmem:[#allocation4] sm:$0xff] %vm1199_vm5, %v1237_v24 }
 0x836   : > { %v1234_v28 = vpop.permute.xlu1 %1233  ;;  %v1312_v1 = vpop.permute.xlu0 %1311 }
 0x837   : > { %v1238_v30 = vadd.f32 %v1234_v28, %v1207_v27  ;;  %v1476_v31 = vpop.f32.mrf.mxu2  ;;  %v1315_v39 = vmul.f32 %v1312_v1, %v1303_v59 }
 0x838   : > { %1483 = vrot.lane.b32.xlu1 %v1476_v31, %s2261_s18  ;;  %v1329_v49 = vld [vmem:[#allocation4] sm:$0xff] }
 0x839   : > { %1240 = vst.msk [vmem:[#allocation4 + $0x8] sm:$0xff] %vm1199_vm5, %v1238_v30  ;;  %v1331_v4 = vmul.f32 %v1329_v49, %v1307_v36 }
 0x840   : > { %v1330_v7 = vld [vmem:[#allocation4 + $0x8] sm:$0xff] }
 0x841   : > { %v1332_v8 = vmul.f32 %v1330_v7, %v1312_v1 }
 0x857   : > { %1445 = vadd.xlane.f32.xlu2 %v1444_v33 }
 0x861   : > { %v1321_v37 = vpop.xlane.xlu0 %1320  ;;  %v1318_v51 = vpop.xlane.xlu1 %1317 }
 0x862   : > { %v1323_v55 = vadd.f32 %v1321_v37, %v1315_v39  ;;  %v1322_v47 = vadd.f32 %v1318_v51, %v1314_v34 }
 0x864   : > { %1326 = vst.msk [vmem:[#allocation3 + $0x8] sm:$0xff] %vm1324_vm6, %v1323_v55 }
 0x865   : > { %1325 = vst.msk [vmem:[#allocation3] sm:$0xff] %vm1324_vm6, %v1322_v47 }
 0x869   : > { %v1443_v61 = vpop.xlane.xlu1 %1442 }
 0x86b   : > { %v1428_v56 = vld [vmem:[#allocation3 + $0x8] sm:$0xff] }
 0x86c   : > { %v1427_v29 = vld [vmem:[#allocation3] sm:$0xff]  ;;  %v1440_v57 = vmul.f32 %v1437_v32, %v1428_v56 }
 0x86d   : > { %v1439_v9 = vmul.f32 %v1432_v60, %v1427_v29 }
 0x86f   : > { %v1447_v2 = vadd.f32 %v1443_v61, %v1439_v9 }
 0x871   : > { %1450 = vst.msk [vmem:[#allocation3] sm:$0xff] %vm1449_vm7, %v1447_v2 }
 0x880   : > { %v1357_v6 = vpop.permute.xlu2 %1356 }
 0x881   : > { %v1362_v23 = vadd.f32 %v1357_v6, %v1331_v4 }
 0x883   : > { %1364 = vst.msk [vmem:[#allocation4] sm:$0xff] %vm1324_vm6, %v1362_v23 }
 0x888   : > { %v1359_v26 = vpop.permute.xlu2 %1358 }
 0x889   : > { %v1363_v11 = vadd.f32 %v1359_v26, %v1332_v8 }
 0x88a   : > { %v1454_v15 = vld [vmem:[#allocation4] sm:$0xff] }
 0x88b   : > { %1365 = vst.msk [vmem:[#allocation4 + $0x8] sm:$0xff] %vm1324_vm6, %v1363_v11  ;;  %v1456_v54 = vmul.f32 %v1454_v15, %v1432_v60 }
 0x892   : > { %v1455_v41 = vld [vmem:[#allocation4 + $0x8] sm:$0xff] }
 0x893   : > { %v1457_v3 = vmul.f32 %v1455_v41, %v1437_v32 }
 0x8a2   : > { %v1482_v50 = vpop.permute.xlu0 %1481 }
 0x8a3   : > { %v1487_v52 = vadd.f32 %v1482_v50, %v1456_v54 }
 0x8a5   : > { %1489 = vst.msk [vmem:[#allocation4] sm:$0xff] %vm1449_vm7, %v1487_v52 }
 0x8aa   : > { %v1484_v53 = vpop.permute.xlu1 %1483 }
 0x8ab   : > { %v1488_v38 = vadd.f32 %v1484_v53, %v1457_v3 }
 0x8ad   : > { %1490 = vst.msk [vmem:[#allocation4 + $0x8] sm:$0xff] %vm1449_vm7, %v1488_v38 }
 0x8ca   : > { %v1446_v58 = vpop.xlane.xlu2 %1445 }
 0x8cb   : > { %v1448_v0 = vadd.f32 %v1446_v58, %v1440_v57 }
 0x8cd   : > { %1451 = vst.msk [vmem:[#allocation3 + $0x8] sm:$0xff] %vm1449_vm7, %v1448_v0 }
 0x8ce PF: > { %p1866_p6 = scmp.ne.s32.totalorder %s2221_s28, 1 }
 0x8d0   : > { %1497 = sbr.rel (%p1866_p6) target bundleno = 2432 (0x980), region = 68 }
 0x8d5   : > { %v1914_v40 = vld [vmem:[#allocation7 + $0x38] sm:$0xff]  ;;  %v1913_v48 = vld [vmem:[#allocation7 + $0x30] sm:$0xff]  ;;  %v1498_v44 = vld [vmem:[#allocation3] sm:$0xff] }
 0x8d6   : > { %1603 = vmatpush.bf16.msra.mxu0 %v1914_v40  ;;  %v1499_v46 = vld [vmem:[#allocation3 + $0x8] sm:$0xff]  ;;  %vm1500_vm8 = vcmp.gt.f32.partialorder %v1498_v44, 0.0  ;;  %v1911_v18 = vld [vmem:[#allocation7 + $0x20] sm:$0xff]  ;;  %v1910_v13 = vld [vmem:[#allocation7 + $0x18] sm:$0xff] }
 0x8d7   : > { %vm1501_vm9 = vcmp.gt.f32.partialorder %v1499_v46, 0.0  ;;  %v1502_v62 = vsel %vm1500_vm8, %v1498_v44, 1.0  ;;  %v1912_v42 = vld [vmem:[#allocation7 + $0x28] sm:$0xff]  ;;  %v1909_v45 = vld [vmem:[#allocation7 + $0x10] sm:$0xff]  ;;  %v1505_v59 = vld [vmem:[#allocation4 + $0x8] sm:$0xff] }
 0x8d8   : > { %v1503_v63 = vsel %vm1501_vm9, %v1499_v46, 1.0  ;;  %2105 = vrcp.f32 %v1502_v62  ;;  %vm1511_vm10 = vweird.f32 %v1502_v62  ;;  %v1515_v12 = vand.u32 2147483647, %v1502_v62  ;;  %v1908_v35 = vld [vmem:[#allocation7 + $0x8] sm:$0xff]  ;;  %v1504_v36 = vld [vmem:[#allocation4] sm:$0xff]  ;;  %v1907_v55 = vld [vmem:[#allocation7] sm:$0xff] }
 0x8d9   : > { %2107 = vrcp.f32 %v1503_v63  ;;  %v1517_v17 = vand.u32 2147483648, %v1502_v62  ;;  %v1532_v20 = vand.u32 2147483648, %v1503_v63  ;;  %vm1526_vm12 = vweird.f32 %v1503_v63  ;;  %v1536_v60 = vld [vmem:[%s2400_s27] sm:$0xff]  ;;  %v2104_v29 = vld [vmem:[#allocation9] ss:$0 sm:$0xff]  ;;  %v1537_v32 = vld [vmem:[%s2400_s27 + $0x8] sm:$0xff] }
 0x8da   : > { %1604 = vmatpush.bf16.msra.mxu0 %v1913_v48  ;;  %v1530_v22 = vand.u32 2147483647, %v1503_v63  ;;  %vm1516_vm0 = vcmp.eq.f32.partialorder %v1515_v12, 8.507059e+37 }
 0x8db   : > { %v1518_v28 = vor.u32 1.1754944e-38, %v1517_v17  ;;  %v1533_v30 = vor.u32 1.1754944e-38, %v1532_v20 }
 0x8dc   : > { %vm1531_vm1 = vcmp.eq.f32.partialorder %v1530_v22, 8.507059e+37 }
 0x8de   : > { %1605 = vmatpush.bf16.msra.mxu0 %v1912_v42  ;;  %v2106_v14 = vpop.eup %2105 }
 0x8df   : > { %v2108_v10 = vpop.eup %2107  ;;  %v1507_v43 = vmul.f32 %v2106_v14, %v1502_v62  ;;  %vm1512_vm11 = vweird.f32 %v2106_v14 }
 0x8e0   : > { %v1522_v5 = vmul.f32 %v2108_v10, %v1503_v63  ;;  %vm1527_vm13 = vweird.f32 %v2108_v10  ;;  %vm2882_vm14 = vmor %vm1511_vm10, %vm1512_vm11 }
 0x8e1   : > { %v1508_v16 = vsub.f32 1.0, %v1507_v43  ;;  %vm1528_vm15 = vmor %vm1526_vm12, %vm1527_vm13 }
 0x8e2   : > { %1606 = vmatpush.bf16.msra.mxu0 %v1911_v18  ;;  %v1523_v21 = vsub.f32 1.0, %v1522_v5 }
 0x8e3   : > { %v1509_v19 = vmul.f32 %v2106_v14, %v1508_v16 }
 0x8e4   : > { %v1524_v25 = vmul.f32 %v2108_v10, %v1523_v21 }
 0x8e5   : > { %v1510_v27 = vadd.f32 %v2106_v14, %v1509_v19 }
 0x8e6   : > { %1607 = vmatpush.bf16.msra.mxu0 %v1910_v13  ;;  %v1525_v31 = vadd.f32 %v2108_v10, %v1524_v25 }
 0x8e7   : > { %v1514_v33 = vsel %vm2882_vm14, %v2106_v14, %v1510_v27 }
 0x8e8   : > { %v1529_v1 = vsel %vm1528_vm15, %v2108_v10, %v1525_v31  ;;  %v1519_v34 = vsel %vm1516_vm0, %v1518_v28, %v1514_v33 }
 0x8e9   : > { %v1534_v39 = vsel %vm1531_vm1, %v1533_v30, %v1529_v1  ;;  %v1520_v37 = vmul.f32 %v1519_v34, %v1504_v36 }
 0x8ea   : > { %1608 = vmatpush.bf16.msra.mxu0 %v1909_v45  ;;  %v1535_v51 = vmul.f32 %v1534_v39, %v1505_v59 }
 0x8ec   : > { %v1538_v47 = vpack.c.bf16 %v1535_v51, %v1520_v37 }
 0x8ee   : > { %1609 = vmatpush.bf16.msra.mxu0 %v1908_v35 }
 0x8f2   : > { %1610 = vmatpush.bf16.msra.mxu0 %v1907_v55 }
 0x8f5   : > { %1611 = vmatmul.bf16.vlgmr.msra.gmra.mxu0 %v1538_v47 }
 0x972   : > { %v1612_v9 = vpop.f32.mrf.mxu0 }
 0x973   : > { %v1617_v61 = vadd.f32 %v1612_v9, %v1536_v60 }
 0x975   : > { %v1623_v2 = vadd.f32 %v2104_v29, %v1617_v61 }
 0x977   : > { %1625 = vst [vmem:[%s2405_s6] sm:$0xff] %v1623_v2 }
 0x97a   : > { %v1614_v49 = vpop.f32.mrf.mxu0 }
 0x97b   : > { %v1618_v4 = vadd.f32 %v1614_v49, %v1537_v32 }
 0x97d   : > { %v1624_v6 = vadd.f32 %v2104_v29, %v1618_v4 }
 0x97f   : > { %1626 = vst [vmem:[%s2405_s6 + $0x8] sm:$0xff] %v1624_v6 }
 0x980 PF: > { %s27_s0 = sadd.s32 1, %s2245_s0   ;;  %s2936_s13 = sld [smem:[#allocation14_spill]] }
 0x981   : > { %p24_p7 = scmp.ge.s32.totalorder %s27_s0, 10   ;;  %s2937_s15 = sld [smem:[#allocation15_spill]] }
 0x982   : > { %s2938_s28 = smov %s2233_s8  ;;  %s2939_s29 = smov %s2237_s9 }
 0x983   : > { %s2940_s30 = smov %s2241_s10  ;;  %s2941_s8 = smov %s2945_s12 }
 0x984   :  { %26 = sbr.rel (!%p24_p7) target bundleno = 12 (0xc), region = 108 }
 0x986   : > { %s2942_s9 = smov %s2936_s13 }
 0x987   : > { %s2943_s10 = smov %s2937_s15 }
 0x989   :  { %1657 = vsyncpa [#allocation8], 1 }
 0x98a   :  { %1659 = vsyncpa [#allocation8 + $0x1], 1 }
 0x98b   :  { %1660 = vsyncpa [#allocation10], 1 }

// kernel: conformer_layer_forward.12
= control target key start
LH: loop header
LB: loop body
LE: loop exit
PB: predicated region body
PF: predicated region fallthrough
CT: control target
= control target key end

     0   :  { %s477_s15 = smov 0   ;;  %s524_s0 = inlined_call_operand.vmem [shape: f32[64,128], index: 0, kind: input, shape index: {}]   ;;  %s525_s1 = inlined_call_operand.vmem [shape: f32[64,128], index: 1, kind: input, shape index: {}]   ;;  %s526_s2 = inlined_call_operand.vmem [shape: bf16[128,128], index: 2, kind: input, shape index: {}]   ;;  %s527_s3 = inlined_call_operand.vmem [shape: f32[1,128], index: 3, kind: input, shape index: {}]   ;;  %s528_s4 = inlined_call_operand.vmem [shape: f32[64,128], index: 4, kind: output, shape index: {}]  }
   0x1 LB: > { %s382_s16 = sadd.s32 4294967295, %s450_s15   ;;  %p386_p0 = scmp.ge.s32.totalorder %s450_s15, 1  ;;  %s450_s15 = sphi %s477_s15, %s14_s15  }
   0x2   : > { %p174_p1 = scmp.lt.s32.totalorder %s450_s15, 5 }
   0x4   : > { %p175_p2 = pnand %p386_p0, %p174_p1 }
   0x5   : > { %s387_s23 = sshll.u32 (!%p175_p2), %s382_s16, 1 }
   0x6   : > { %178 = sbr.rel (%p175_p2) target bundleno = 182 (0xb6), region = 36  ;;  %p206_p3 = scmp.lt.s32.totalorder (!%p175_p2), %s387_s23, 7 }
   0xb   : > { %v434_v0 = vld [vmem:[%s526_s2 + $0x38] sm:$0xff]  ;;  %v433_v1 = vld [vmem:[%s526_s2 + $0x30] sm:$0xff]  ;;  %v432_v2 = vld [vmem:[%s526_s2 + $0x28] sm:$0xff]  ;;  %s530_s23 = smov (!%p206_p3, %s387_s23), 7 }
   0xc   : > { %294 = vmatpush.bf16.msra.mxu0 %v434_v0  ;;  %v431_v3 = vld [vmem:[%s526_s2 + $0x20] sm:$0xff]  ;;  %v430_v4 = vld [vmem:[%s526_s2 + $0x18] sm:$0xff]  ;;  %v429_v5 = vld [vmem:[%s526_s2 + $0x10] sm:$0xff]  ;;  %s388_s30 = sshll.u32 %s530_s23, 3 }
   0xd   : > { %v428_v6 = vld [vmem:[%s526_s2 + $0x8] sm:$0xff]  ;;  %s209_s9 = scalar_lea.vmem %s524_s0, %s388_s30  ;;  %v427_v7 = vld [vmem:[%s526_s2] sm:$0xff]  ;;  %s215_s14 = scalar_lea.vmem %s525_s1, %s388_s30 }
   0xe   : > { %v223_v8 = vld [vmem:[%s209_s9] sm:$0xff]  ;;  %v224_v9 = vld [vmem:[%s209_s9 + $0x8] sm:$0xff]  ;;  %s221_s20 = scalar_lea.vmem %s528_s4, %s388_s30 }
   0xf   : > { %v225_v10 = vpack.c.bf16 %v224_v9, %v223_v8  ;;  %v443_v11 = vld [vmem:[%s527_s3] ss:$0 sm:$0xff]  ;;  %v309_v17 = vld [vmem:[%s215_s14 + $0x8] sm:$0xff] }
  0x10   : > { %295 = vmatpush.bf16.msra.mxu0 %v433_v1  ;;  %v308_v13 = vld [vmem:[%s215_s14] sm:$0xff] }
  0x14   : > { %296 = vmatpush.bf16.msra.mxu0 %v432_v2 }
  0x18   : > { %297 = vmatpush.bf16.msra.mxu0 %v431_v3 }
  0x1c   : > { %298 = vmatpush.bf16.msra.mxu0 %v430_v4 }
  0x20   : > { %299 = vmatpush.bf16.msra.mxu0 %v429_v5 }
  0x24   : > { %300 = vmatpush.bf16.msra.mxu0 %v428_v6 }
  0x28   : > { %301 = vmatpush.bf16.msra.mxu0 %v427_v7 }
  0x2b   : > { %302 = vmatmul.bf16.vlgmr.msra.gmra.mxu0 %v225_v10 }
  0xa8   : > { %v303_v12 = vpop.f32.mrf.mxu0 }
  0xa9   : > { %v304_v14 = vadd.f32 %v443_v11, %v303_v12 }
  0xab   : > { %v310_v15 = vadd.f32 %v308_v13, %v304_v14 }
  0xad   : > { %312 = vst [vmem:[%s221_s20] sm:$0xff] %v310_v15 }
  0xb0   : > { %v305_v16 = vpop.f32.mrf.mxu0 }
  0xb1   : > { %v306_v18 = vadd.f32 %v443_v11, %v305_v16 }
  0xb3   : > { %v311_v19 = vadd.f32 %v309_v17, %v306_v18 }
  0xb5   : > { %313 = vst [vmem:[%s221_s20 + $0x8] sm:$0xff] %v311_v19 }
  0xb6 PF: > { %s14_s15 = sadd.s32 1, %s450_s15  }
  0xb7   : > { %p11_p4 = scmp.ge.s32.totalorder %s14_s15, 6  }
  0xb9   :  { %13 = sbr.rel (!%p11_p4) target bundleno = 1 (0x1), region = 69 }

// kernel: conformer_layer_forward.11
= control target key start
LH: loop header
LB: loop body
LE: loop exit
PB: predicated region body
PF: predicated region fallthrough
CT: control target
= control target key end

     0   :  { %8 = vsyncpa [#allocation3], 0  ;;  %s871_s0 = inlined_call_operand.vmem [shape: f32[2,40,128], index: 0, kind: input, shape index: {}]   ;;  %s872_s1 = inlined_call_operand.hbm [shape: f32[7,128], index: 1, kind: input, shape index: {}]   ;;  %s873_s2 = inlined_call_operand.hbm [shape: f32[1,128], index: 2, kind: input, shape index: {}]   ;;  %s874_s3 = inlined_call_operand.vmem [shape: f32[2,32,128], index: 3, kind: output, shape index: {}]  }
   0x1   :  { %9 = vsyncpa [#allocation5], 0  ;;  %s661_s12 = smov 0  }
   0x2 LB: > { %s126_s15 = sshll.u32 %s872_s1, 4  ;;  %s497_s16 = sadd.s32 4294967295, %s637_s12   ;;  %s637_s12 = sphi %s661_s12, %s15_s12   ;;  %s127_s15 = int_to_ptr.hbm [resolvable:$true] %s126_s15 }
   0x3   : > { %p499_p0 = scmp.ge.s32.totalorder %s637_s12, 1  ;;  %p114_p1 = scmp.lt.s32.totalorder %s637_s12, 3 }
   0x4   : > { %p532_p2 = scmp.eq.s32.totalorder %s497_s16, 0  ;;  %s639_s18 = smov [#allocation2]  }
   0x5   : > { %p672_p3 = pnand %p499_p0, %p114_p1  ;;  %s128_s19 = sshll.u32 %s639_s18, 4  ;;  %s129_s19 = int_to_ptr.vmem [resolvable:$true] %s128_s19 }
   0x6   : > { %s138_s22 = sshll.u32 %s873_s2, 4  ;;  %s640_s23 = smov [#allocation4]   ;;  %s139_s22 = int_to_ptr.hbm [resolvable:$true] %s138_s22 }
   0x7   : > { %p525_p4 = pneg %p672_p3  ;;  %s140_s24 = sshll.u32 %s640_s23, 4  ;;  %s141_s24 = int_to_ptr.vmem [resolvable:$true] %s140_s24 }
   0x8   : > { %161 = sbr.rel (%p672_p3) target bundleno = 91 (0x5b), region = 32 }
   0x9   : > { %p526_p5 = pnand %p532_p2, %p525_p4 }
   0xb   : > { %528 = dma.hbm_to_vmem [thread:$0]  (!%p526_p5), %s127_s15, 128, %s129_s19, [#allocation3]  }
   0xc   : > { %531 = dma.hbm_to_vmem [thread:$0]  (!%p526_p5), %s139_s22, 16, %s141_s24, [#allocation5]  }
   0xd   : > { %628 = dma.done.wait (%p532_p2), [#allocation3], 128  }
   0xe   : > { %630 = vsyncadd (%p532_p2), [#allocation3], 4294967168 }
   0xf   : > { %632 = dma.done.wait (%p532_p2), [#allocation5], 16  }
  0x10   : > { %634 = vsyncadd (%p532_p2), [#allocation5], 4294967280  ;;  %p191_p6 = scmp.lt.s32.totalorder %s497_s16, 1  ;;  %v217_v0 = vlaneseq  ;;  %v206_v5 = vld [vmem:[#allocation2] sm:$0x7f] }
  0x11   : > { %v712_v8 = vperm.slane %v206_v5, 0  ;;  %v715_v10 = vperm.slane %v206_v5, 1  ;;  %v720_v14 = vperm.slane %v206_v5, 2  ;;  %v725_v19 = vperm.slane %v206_v5, 3  ;;  %v775_v59 = vld [vmem:[#allocation4] ss:$0 sm:$0xff] }
  0x12   : > { %s877_s16 = smov (!%p191_p6, %s497_s16), 1  ;;  %v690_v1 = vshrl.u32 %v217_v0, 7  ;;  %v730_v23 = vperm.slane %v206_v5, 4  ;;  %v742_v32 = vperm.slane %v206_v5, 5  ;;  %v748_v38 = vperm.slane %v206_v5, 6 }
  0x13   : > { %s516_s25 = smul.u32 40, %s877_s16  ;;  %s515_s29 = sshll.u32 %s877_s16, 5 }
  0x14   : > { %vm219_vm0 = vcmp.lt.s32.totalorder %v690_v1, 7  ;;  %vm238_vm1 = vcmp.lt.s32.totalorder %v690_v1, 6  ;;  %vm257_vm2 = vcmp.lt.s32.totalorder %v690_v1, 5  ;;  %vm276_vm3 = vcmp.lt.s32.totalorder %v690_v1, 4  ;;  %s858_s5 = scalar_lea.vmem %s874_s3, %s515_s29 }
  0x15   : > { %s696_s28 = scalar_lea.vmem %s871_s0, %s516_s25  ;;  %vm295_vm4 = vcmp.lt.s32.totalorder %v690_v1, 3  ;;  %vm314_vm5 = vcmp.lt.s32.totalorder %v690_v1, 2 }
  0x16   : > { %v201_v2 = vld [vmem:[%s696_s28] sm:$0xff]  ;;  %v701_v3 = vld [vmem:[%s696_s28 + $0x8] sm:$0xff]  ;;  %v733_v24 = vld [vmem:[%s696_s28 + $0x10] sm:$0xff] }
  0x17   : > { %v708_v4 = vld [vmem:[%s696_s28 + $0x20] sm:$0xff]  ;;  %v212_v6 = vrot.slane %v201_v2, 1  ;;  %v213_v7 = vrot.slane %v701_v3, 1  ;;  %v233_v11 = vrot.slane %v201_v2, 2  ;;  %v234_v13 = vrot.slane %v701_v3, 2  ;;  %v763_v49 = vld [vmem:[%s696_s28 + $0x18] sm:$0xff] }
  0x18   : > { %v216_v9 = vrot.slane %v708_v4, 1  ;;  %v252_v15 = vrot.slane %v201_v2, 3  ;;  %v208_v16 = vmul.f32 %v712_v8, %v201_v2  ;;  %v253_v18 = vrot.slane %v701_v3, 3 }
  0x19   : > { %v223_v12 = vsel %vm219_vm0, %v212_v6, %v213_v7  ;;  %v242_v20 = vsel %vm238_vm1, %v233_v11, %v234_v13  ;;  %v271_v21 = vrot.slane %v201_v2, 4  ;;  %v272_v22 = vrot.slane %v701_v3, 4 }
  0x1a   : > { %v225_v17 = vmul.f32 %v715_v10, %v223_v12  ;;  %v244_v26 = vmul.f32 %v720_v14, %v242_v20  ;;  %v261_v27 = vsel %vm257_vm2, %v252_v15, %v253_v18  ;;  %v290_v28 = vrot.slane %v201_v2, 5 }
  0x1b   : > { %v263_v29 = vmul.f32 %v725_v19, %v261_v27  ;;  %v280_v30 = vsel %vm276_vm3, %v271_v21, %v272_v22  ;;  %v291_v31 = vrot.slane %v701_v3, 5  ;;  %v309_v35 = vrot.slane %v201_v2, 6 }
  0x1c   : > { %v229_v25 = vadd.f32 %v225_v17, %v208_v16  ;;  %v282_v34 = vmul.f32 %v730_v23, %v280_v30  ;;  %v310_v36 = vrot.slane %v701_v3, 6  ;;  %v209_v39 = vmul.f32 %v712_v8, %v701_v3 }
  0x1d   : > { %v299_v37 = vsel %vm295_vm4, %v290_v28, %v291_v31  ;;  %v214_v40 = vrot.slane %v733_v24, 1  ;;  %v235_v44 = vrot.slane %v733_v24, 2  ;;  %v254_v47 = vrot.slane %v733_v24, 3 }
  0x1e   : > { %v248_v33 = vadd.f32 %v244_v26, %v229_v25  ;;  %v301_v42 = vmul.f32 %v742_v32, %v299_v37  ;;  %v318_v43 = vsel %vm314_vm5, %v309_v35, %v310_v36  ;;  %v273_v48 = vrot.slane %v733_v24, 4 }
  0x1f   : > { %v320_v45 = vmul.f32 %v748_v38, %v318_v43  ;;  %v222_v46 = vsel %vm219_vm0, %v213_v7, %v214_v40  ;;  %v241_v52 = vsel %vm238_vm1, %v234_v13, %v235_v44  ;;  %v292_v53 = vrot.slane %v733_v24, 5 }
  0x20   : > { %v267_v41 = vadd.f32 %v263_v29, %v248_v33  ;;  %v226_v51 = vmul.f32 %v715_v10, %v222_v46  ;;  %v245_v54 = vmul.f32 %v720_v14, %v241_v52  ;;  %v260_v55 = vsel %vm257_vm2, %v253_v18, %v254_v47 }
  0x21   : > { %v279_v56 = vsel %vm276_vm3, %v272_v22, %v273_v48  ;;  %v311_v57 = vrot.slane %v733_v24, 6  ;;  %v264_v61 = vmul.f32 %v725_v19, %v260_v55  ;;  %v298_v63 = vsel %vm295_vm4, %v291_v31, %v292_v53 }
  0x22   : > { %v286_v50 = vadd.f32 %v282_v34, %v267_v41  ;;  %v230_v60 = vadd.f32 %v226_v51, %v209_v39  ;;  %v283_v62 = vmul.f32 %v730_v23, %v279_v56  ;;  %v210_v2 = vmul.f32 %v712_v8, %v733_v24 }
  0x23   : > { %v317_v0 = vsel %vm314_vm5, %v310_v36, %v311_v57  ;;  %v215_v3 = vrot.slane %v763_v49, 1  ;;  %v302_v7 = vmul.f32 %v742_v32, %v298_v63  ;;  %v236_v13 = vrot.slane %v763_v49, 2 }
  0x24   : > { %v305_v58 = vadd.f32 %v301_v42, %v286_v50  ;;  %v249_v6 = vadd.f32 %v245_v54, %v230_v60  ;;  %v321_v11 = vmul.f32 %v748_v38, %v317_v0  ;;  %v255_v15 = vrot.slane %v763_v49, 3 }
  0x25   : > { %v221_v12 = vsel %vm219_vm0, %v214_v40, %v215_v3  ;;  %v274_v16 = vrot.slane %v763_v49, 4  ;;  %v293_v21 = vrot.slane %v763_v49, 5  ;;  %v240_v22 = vsel %vm238_vm1, %v235_v44, %v236_v13 }
  0x26   : > { %v324_v5 = vadd.f32 %v320_v45, %v305_v58  ;;  %v268_v18 = vadd.f32 %v264_v61, %v249_v6  ;;  %v227_v20 = vmul.f32 %v715_v10, %v221_v12  ;;  %v259_v24 = vsel %vm257_vm2, %v254_v47, %v255_v15 }
  0x27   : > { %v278_v25 = vsel %vm276_vm3, %v273_v48, %v274_v16  ;;  %v312_v26 = vrot.slane %v763_v49, 6  ;;  %v246_v30 = vmul.f32 %v720_v14, %v240_v22  ;;  %v265_v31 = vmul.f32 %v725_v19, %v259_v24 }
  0x28   : > { %v794_v17 = vadd.f32 %v775_v59, %v324_v5  ;;  %v287_v28 = vadd.f32 %v283_v62, %v268_v18  ;;  %v231_v29 = vadd.f32 %v227_v20, %v210_v2  ;;  %v284_v33 = vmul.f32 %v730_v23, %v278_v25 }
  0x29   : > { %v297_v34 = vsel %vm295_vm4, %v292_v53, %v293_v21  ;;  %v316_v35 = vsel %vm314_vm5, %v311_v57, %v312_v26  ;;  %v211_v41 = vmul.f32 %v712_v8, %v763_v49  ;;  %v220_v42 = vsel %vm219_vm0, %v215_v3, %v216_v9 }
  0x2a   : > { %v509_v27 = vmul.f32 -1.442695, %v794_v17  ;;  %v306_v36 = vadd.f32 %v302_v7, %v287_v28  ;;  %v250_v37 = vadd.f32 %v246_v30, %v231_v29  ;;  %v303_v39 = vmul.f32 %v742_v32, %v297_v34 }
  0x2b   : > { %v322_v40 = vmul.f32 %v748_v38, %v316_v35  ;;  %v237_v43 = vrot.slane %v708_v4, 2  ;;  %v228_v46 = vmul.f32 %v715_v10, %v220_v42  ;;  %v256_v47 = vrot.slane %v708_v4, 3 }
  0x2c   : > { %547 = vpow2.f32 %v509_v27  ;;  %v325_v44 = vadd.f32 %v321_v11, %v306_v36  ;;  %v269_v45 = vadd.f32 %v265_v31, %v250_v37  ;;  %v275_v50 = vrot.slane %v708_v4, 4 }
  0x2d   : > { %v239_v48 = vsel %vm238_vm1, %v236_v13, %v237_v43  ;;  %v294_v8 = vrot.slane %v708_v4, 5  ;;  %v313_v49 = vrot.slane %v708_v4, 6  ;;  %v232_v52 = vadd.f32 %v228_v46, %v211_v41 }
  0x2e   : > { %v830_v51 = vadd.f32 %v775_v59, %v325_v44  ;;  %v288_v9 = vadd.f32 %v284_v33, %v269_v45  ;;  %v247_v53 = vmul.f32 %v720_v14, %v239_v48  ;;  %v258_v10 = vsel %vm257_vm2, %v255_v15, %v256_v47 }
  0x2f   : > { %v277_v54 = vsel %vm276_vm3, %v274_v16, %v275_v50  ;;  %v296_v55 = vsel %vm295_vm4, %v293_v21, %v294_v8  ;;  %v266_v60 = vmul.f32 %v725_v19, %v258_v10  ;;  %v315_v14 = vsel %vm314_vm5, %v312_v26, %v313_v49 }
  0x30   : > { %v510_v57 = vmul.f32 -1.442695, %v830_v51  ;;  %v307_v4 = vadd.f32 %v303_v39, %v288_v9  ;;  %v251_v58 = vadd.f32 %v247_v53, %v232_v52  ;;  %v285_v62 = vmul.f32 %v730_v23, %v277_v54 }
  0x31   : > { %v304_v2 = vmul.f32 %v742_v32, %v296_v55  ;;  %v323_v6 = vmul.f32 %v748_v38, %v315_v14 }
  0x32   : > { %v548_v56 = vpop.eup %547  ;;  %549 = vpow2.f32 %v510_v57  ;;  %v326_v63 = vadd.f32 %v322_v40, %v307_v4  ;;  %v270_v0 = vadd.f32 %v266_v60, %v251_v58 }
  0x33   : > { %v348_v61 = vadd.f32 1.0, %v548_v56 }
  0x34   : > { %v846_v3 = vadd.f32 %v775_v59, %v326_v63  ;;  %v289_v5 = vadd.f32 %v285_v62, %v270_v0 }
  0x35   : > { %551 = vrcp.f32 %v348_v61  ;;  %vm357_vm6 = vweird.f32 %v348_v61  ;;  %v363_v32 = vand.u32 2147483648, %v348_v61  ;;  %v361_v18 = vand.u32 2147483647, %v348_v61 }
  0x36   : > { %v511_v19 = vmul.f32 -1.442695, %v846_v3  ;;  %v308_v7 = vadd.f32 %v304_v2, %v289_v5 }
  0x37   : > { %v364_v22 = vor.u32 1.1754944e-38, %v363_v32  ;;  %vm362_vm9 = vcmp.eq.f32.partialorder %v361_v18, 8.507059e+37 }
  0x38   : > { %v550_v11 = vpop.eup %549  ;;  %553 = vpow2.f32 %v511_v19  ;;  %v327_v23 = vadd.f32 %v323_v6, %v308_v7 }
  0x39   : > { %v349_v12 = vadd.f32 1.0, %v550_v11 }
  0x3a   : > { %v851_v15 = vadd.f32 %v775_v59, %v327_v23 }
  0x3b   : > { %v552_v1 = vpop.eup %551  ;;  %555 = vrcp.f32 %v349_v12  ;;  %vm372_vm10 = vweird.f32 %v349_v12  ;;  %v378_v29 = vand.u32 2147483648, %v349_v12  ;;  %v376_v34 = vand.u32 2147483647, %v349_v12 }
  0x3c   : > { %v353_v13 = vmul.f32 %v552_v1, %v348_v61  ;;  %vm358_vm7 = vweird.f32 %v552_v1  ;;  %v512_v38 = vmul.f32 -1.442695, %v851_v15 }
  0x3d   : > { %vm359_vm8 = vmor %vm357_vm6, %vm358_vm7  ;;  %v379_v39 = vor.u32 1.1754944e-38, %v378_v29  ;;  %vm377_vm13 = vcmp.eq.f32.partialorder %v376_v34, 8.507059e+37 }
  0x3e   : > { %v354_v16 = vsub.f32 1.0, %v353_v13  ;;  %v554_v20 = vpop.eup %553  ;;  %557 = vpow2.f32 %v512_v38 }
  0x3f   : > { %v350_v24 = vadd.f32 1.0, %v554_v20 }
  0x40   : > { %v355_v21 = vmul.f32 %v552_v1, %v354_v16 }
  0x41   : > { %v556_v26 = vpop.eup %555  ;;  %559 = vrcp.f32 %v350_v24  ;;  %vm387_vm14 = vweird.f32 %v350_v24  ;;  %v393_v42 = vand.u32 2147483648, %v350_v24 }
  0x42   : > { %v356_v25 = vadd.f32 %v552_v1, %v355_v21  ;;  %v368_v27 = vmul.f32 %v556_v26, %v349_v12  ;;  %vm373_vm11 = vweird.f32 %v556_v26 }
  0x43   : > { %vm374_vm12 = vmor %vm372_vm10, %vm373_vm11  ;;  %v394_v50 = vor.u32 1.1754944e-38, %v393_v42 }
  0x44   : > { %v360_v59 = vsel %vm359_vm8, %v552_v1, %v356_v25  ;;  %v558_v30 = vpop.eup %557  ;;  %v369_v33 = vsub.f32 1.0, %v368_v27 }
  0x45   : > { %v365_v28 = vsel %vm362_vm9, %v364_v22, %v360_v59  ;;  %v351_v35 = vadd.f32 1.0, %v558_v30 }
  0x46   : > { %v412_v31 = vmul.f32 %v365_v28, %v794_v17  ;;  %v370_v36 = vmul.f32 %v556_v26, %v369_v33  ;;  %v391_v17 = vand.u32 2147483647, %v350_v24 }
  0x47   : > { %v560_v37 = vpop.eup %559  ;;  %561 = vrcp.f32 %v351_v35  ;;  %vm402_vm2 = vweird.f32 %v351_v35  ;;  %v408_v9 = vand.u32 2147483648, %v351_v35  ;;  %v406_v10 = vand.u32 2147483647, %v351_v35 }
  0x48   : > { %416 = vst [vmem:[%s858_s5] sm:$0xff] %v412_v31  ;;  %v371_v40 = vadd.f32 %v556_v26, %v370_v36  ;;  %v383_v41 = vmul.f32 %v560_v37, %v350_v24  ;;  %vm388_vm15 = vweird.f32 %v560_v37  ;;  %vm392_vm1 = vcmp.eq.f32.partialorder %v391_v17, 8.507059e+37 }
  0x49   : > { %vm389_vm0 = vmor %vm387_vm14, %vm388_vm15  ;;  %v409_v56 = vor.u32 1.1754944e-38, %v408_v9  ;;  %vm407_vm5 = vcmp.eq.f32.partialorder %v406_v10, 8.507059e+37 }
  0x4a   : > { %v375_v43 = vsel %vm374_vm12, %v556_v26, %v371_v40  ;;  %v384_v44 = vsub.f32 1.0, %v383_v41 }
  0x4b   : > { %v380_v45 = vsel %vm377_vm13, %v379_v39, %v375_v43 }
  0x4c   : > { %v413_v46 = vmul.f32 %v380_v45, %v830_v51  ;;  %v385_v47 = vmul.f32 %v560_v37, %v384_v44 }
  0x4d   : > { %v562_v48 = vpop.eup %561 }
  0x4e   : > { %417 = vst [vmem:[%s858_s5 + $0x8] sm:$0xff] %v413_v46  ;;  %v386_v8 = vadd.f32 %v560_v37, %v385_v47  ;;  %v398_v49 = vmul.f32 %v562_v48, %v351_v35  ;;  %vm403_vm3 = vweird.f32 %v562_v48 }
  0x4f   : > { %vm404_vm4 = vmor %vm402_vm2, %vm403_vm3 }
  0x50   : > { %v390_v52 = vsel %vm389_vm0, %v560_v37, %v386_v8  ;;  %v399_v53 = vsub.f32 1.0, %v398_v49 }
  0x51   : > { %v395_v54 = vsel %vm392_vm1, %v394_v50, %v390_v52 }
  0x52   : > { %v414_v55 = vmul.f32 %v395_v54, %v846_v3  ;;  %v400_v51 = vmul.f32 %v562_v48, %v399_v53 }
  0x54   : > { %418 = vst [vmem:[%s858_s5 + $0x10] sm:$0xff] %v414_v55  ;;  %v401_v57 = vadd.f32 %v562_v48, %v400_v51 }
  0x56   : > { %v405_v4 = vsel %vm404_vm4, %v562_v48, %v401_v57 }
  0x57   : > { %v410_v58 = vsel %vm407_vm5, %v409_v56, %v405_v4 }
  0x58   : > { %v415_v60 = vmul.f32 %v410_v58, %v851_v15 }
  0x5a   : > { %419 = vst [vmem:[%s858_s5 + $0x18] sm:$0xff] %v415_v60 }
  0x5b PF: > { %s15_s12 = sadd.s32 1, %s637_s12  }
  0x5c   : > { %p12_p7 = scmp.ge.s32.totalorder %s15_s12, 4  }
  0x5e   :  { %14 = sbr.rel (!%p12_p7) target bundleno = 2 (0x2), region = 71 }
  0x63   :  { %441 = vsyncpa [#allocation3], 1 }
  0x64   :  { %443 = vsyncpa [#allocation3 + $0x1], 1 }
  0x65   :  { %444 = vsyncpa [#allocation5], 1 }

// kernel: conformer_layer_forward.13
= control target key start
LH: loop header
LB: loop body
LE: loop exit
PB: predicated region body
PF: predicated region fallthrough
CT: control target
= control target key end

     0   :  { %s2071_s0 = inlined_call_operand.vmem [shape: f32[64,128], index: 0, kind: input, shape index: {}]   ;;  %s2072_s1 = inlined_call_operand.hbm [shape: f32[1,128], index: 1, kind: input, shape index: {}]   ;;  %s2073_s2 = inlined_call_operand.hbm [shape: f32[1,128], index: 2, kind: input, shape index: {}]   ;;  %s2074_s3 = inlined_call_operand.vmem [shape: bf16[128,256], index: 3, kind: input, shape index: {}]   ;;  %s2075_s4 = inlined_call_operand.hbm [shape: f32[1,256], index: 4, kind: input, shape index: {}]   ;;  %s2076_s5 = inlined_call_operand.hbm [shape: bf16[256,128], index: 5, kind: input, shape index: {}]   ;;  %s2077_s6 = inlined_call_operand.hbm [shape: f32[1,128], index: 6, kind: input, shape index: {}]   ;;  %s2078_s7 = inlined_call_operand.hbm [shape: f32[1,128], index: 7, kind: input, shape index: {}]   ;;  %s2079_s8 = inlined_call_operand.hbm [shape: f32[1,128], index: 8, kind: input, shape index: {}]   ;;  %s2080_s9 = inlined_call_operand.hbm [shape: f32[64,128], index: 9, kind: output, shape index: {}]  }
   0x1   :  { %2082 = sst [smem:[#allocation22_spill]] %s2073_s2 }
   0x2   :  { %2083 = sst [smem:[#allocation23_spill]] %s2076_s5 }
   0x3   :  { %14 = vsyncpa [#allocation3], 0 }
   0x4   :  { %15 = vsyncpa [#allocation6], 0 }
   0x5   :  { %16 = vsyncpa [#allocation9], 0 }
   0x6   :  { %17 = vsyncpa [#allocation12], 0 }
   0x7   :  { %18 = vsyncpa [#allocation4], 0 }
   0x8   :  { %20 = vsyncpa [#allocation4 + $0x1], 0  ;;  %s1766_s30 = smov 0   ;;  %s1768_s10 = smov 0  }
   0x9   :  { %s1770_s11 = smov 0   ;;  %s1772_s12 = smov 0  }
   0xa LB: > { %2084 = sst [smem:[#allocation20_spill]] %s1698_s11  ;;  %s1787_s13 = sadd.s32 4294967295, %s1702_s12   ;;  %s1702_s12 = sphi %s1772_s12, %s2100_s12   ;;  %s1698_s11 = sphi %s1770_s11, %s2097_s11   ;;  %s1694_s10 = sphi %s1768_s10, %s2099_s10   ;;  %s1690_s30 = sphi %s1766_s30, %s2098_s30  }
   0xb   : > { %s1077_s14 = sadd.s32 4294967294, %s1702_s12   ;;  %s1791_s15 = sadd.s32 1, %s1702_s12  }
   0xc   : > { %s227_s16 = sadd.s32 1, %s1698_s11  ;;  %s224_s17 = ssub.s32 %s1702_s12, %s1791_s15 }
   0xd   : > { %p237_p0 = scmp.ne.s32.totalorder %s1698_s11, %s1694_s10  ;;  %p225_p1 = scmp.eq.s32.totalorder %s224_s17, 0 }
   0xe   : > { %p238_p2 = scmp.eq.s32.totalorder %s1787_s13, 3  ;;  %p243_p3 = scmp.ne.s32.totalorder %s1694_s10, %s1690_s30 }
   0xf   : > { %p244_p4 = scmp.eq.s32.totalorder %s1077_s14, 3  ;;  %p1078_p7 = scmp.ge.s32.totalorder %s1702_s12, 1 }
  0x10   : > { %s1802_s18 = scalar_select %p225_p1, %s1698_s11, %s227_s16  }
  0x11   : > { %p1804_p5 = por %p238_p2, %p237_p0  ;;  %p1808_p6 = por %p244_p4, %p243_p3 }
  0x12   : > { %2085 = sst [smem:[#allocation21_spill]] %s1802_s18  ;;  %p251_p8 = scmp.lt.s32.totalorder %s1702_s12, 5 }
  0x13   : > { %p1324_p9 = scmp.eq.s32.totalorder %s1787_s13, 0  ;;  %s2089_s2 = sld [smem:[#allocation22_spill]] }
  0x14   : > { %p1815_p10 = pnand %p1078_p7, %p251_p8  ;;  %s1704_s25 = smov [#allocation5]  }
  0x15   : > { %s277_s26 = sshll.u32 %s1704_s25, 4  ;;  %s2090_s5 = sld [smem:[#allocation23_spill]]  ;;  %s278_s26 = int_to_ptr.vmem [resolvable:$true] %s277_s26 }
  0x16   : > { %p1298_p11 = pneg %p1815_p10  ;;  %s1705_s16 = smov [#allocation8]  }
  0x17   : > { %s303_s17 = sshll.u32 %s1705_s16, 4  ;;  %s1706_s22 = smov 64   ;;  %s304_s17 = int_to_ptr.vmem [resolvable:$true] %s303_s17 }
  0x18   : > { %p1829_p12 = pnand %p1324_p9, %p1298_p11  ;;  %s1707_s23 = smov 4  }
  0x19   : > { %s275_s24 = sshll.u32 %s2089_s2, 4  ;;  %s328_s28 = sshll.u32 %s2078_s7, 4  ;;  %s276_s24 = int_to_ptr.hbm [resolvable:$true] %s275_s24  ;;  %s329_s28 = int_to_ptr.hbm [resolvable:$true] %s328_s28 }
  0x1a   : > { %1304 = dma.hbm_to_vmem [thread:$0]  (!%p1829_p12), %s276_s24, 16, %s278_s26, [#allocation6]  }
  0x1b   : > { %s301_s29 = sshll.u32 %s2090_s5, 4  ;;  %s1708_s2 = smov [#allocation11]   ;;  %s302_s29 = int_to_ptr.hbm [resolvable:$true] %s301_s29 }
  0x1c   : > { %1310 = dma.hbm_to_vmem [thread:$0]  (!%p1829_p12), %s302_s29, 2048, %s304_s17, [#allocation9], %s1706_s22, %s1706_s22, %s1707_s23  }
  0x1d   : > { %s330_s5 = sshll.u32 %s1708_s2, 4  ;;  %s263_s16 = sshll.u32 %s2072_s1, 4  ;;  %s331_s5 = int_to_ptr.vmem [resolvable:$true] %s330_s5  ;;  %s264_s16 = int_to_ptr.hbm [resolvable:$true] %s263_s16 }
  0x1e   : > { %1316 = dma.hbm_to_vmem [thread:$0]  (!%p1829_p12), %s329_s28, 16, %s331_s5, [#allocation12]  }
  0x1f   : > { %s1709_s24 = smov [#allocation2]   ;;  %s290_s22 = sshll.u32 %s2075_s4, 4  ;;  %s291_s22 = int_to_ptr.hbm [resolvable:$true] %s290_s22 }
  0x20   : > { %s265_s26 = sshll.u32 %s1709_s24, 4  ;;  %s316_s11 = sshll.u32 %s2077_s6, 4  ;;  %s266_s26 = int_to_ptr.vmem [resolvable:$true] %s265_s26  ;;  %s317_s11 = int_to_ptr.hbm [resolvable:$true] %s316_s11 }
  0x21   : > { %1301 = dma.hbm_to_vmem [thread:$0]  (!%p1829_p12), %s264_s16, 16, %s266_s26, [#allocation3]  }
  0x22   : > { %s1710_s18 = smov [#allocation7]   ;;  %s1711_s5 = smov [#allocation10]  }
  0x23   : > { %s292_s25 = sshll.u32 %s1710_s18, 4  ;;  %s318_s27 = sshll.u32 %s1711_s5, 4  ;;  %s293_s25 = int_to_ptr.vmem [resolvable:$true] %s292_s25  ;;  %s319_s27 = int_to_ptr.vmem [resolvable:$true] %s318_s27 }
  0x24   : > { %1307 = dma.hbm_to_vmem [thread:$0]  (!%p1829_p12), %s291_s22, 32, %s293_s25, [#allocation6]  }
  0x25   : > { %s340_s29 = sshll.u32 %s2079_s8, 4  ;;  %s1712_s16 = smov [#allocation13]   ;;  %s341_s29 = int_to_ptr.hbm [resolvable:$true] %s340_s29 }
  0x26   : > { %1313 = dma.hbm_to_vmem [thread:$0]  (!%p1829_p12), %s317_s11, 16, %s319_s27, [#allocation9]  }
  0x27   : > { %s342_s26 = sshll.u32 %s1712_s16, 4  ;;  %364 = sbr.rel (%p1815_p10) target bundleno = 921 (0x399), region = 56  ;;  %s343_s26 = int_to_ptr.vmem [resolvable:$true] %s342_s26 }
  0x28   : > { %1319 = dma.hbm_to_vmem [thread:$0]  (!%p1829_p12), %s341_s29, 16, %s343_s26, [#allocation12]  }
  0x2c   : > { %1669 = dma.done.wait (%p1324_p9), [#allocation3], 16  }
  0x2d   : > { %1671 = vsyncadd (%p1324_p9), [#allocation3], 4294967280 }
  0x2e   : > { %1673 = dma.done.wait (%p1324_p9), [#allocation6], 48  }
  0x2f   : > { %1675 = vsyncadd (%p1324_p9), [#allocation6], 4294967248 }
  0x30   : > { %1677 = dma.done.wait (%p1324_p9), [#allocation9], 2064  }
  0x31   : > { %1679 = vsyncadd (%p1324_p9), [#allocation9], 4294965232 }
  0x32   : > { %1681 = dma.done.wait (%p1324_p9), [#allocation12], 32  }
  0x33   : > { %1683 = vsyncadd (%p1324_p9), [#allocation12], 4294967264  ;;  %s1096_s21 = sshll.u32 %s1787_s13, 1  ;;  %v1713_v2 = vmov 128.0   ;;  %v1156_v17 = vld [vmem:[%s2074_s3 + $0x70] sm:$0xf] }
  0x34   : > { %p432_p13 = scmp.lt.s32.totalorder %s1096_s21, 7  ;;  %1388 = vrcp.f32 %v1713_v2  ;;  %v1250_v18 = vld [vmem:[%s2074_s3 + $0x74] sm:$0xf0]  ;;  %v1249_v19 = vld [vmem:[%s2074_s3 + $0x74] sm:$0xf]  ;;  %s428_s23 = sand.u32 1, %s1694_s10  }
  0x35   : > { %v1157_v20 = vor.u32 %v1250_v18, %v1156_v17  ;;  %v1158_v21 = vld [vmem:[%s2074_s3 + $0x78] sm:$0xf0]  ;;  %v1148_v23 = vld [vmem:[%s2074_s3 + $0x60] sm:$0xf]  ;;  %v1248_v24 = vld [vmem:[%s2074_s3 + $0x64] sm:$0xf0] }
  0x36   : > { %s2102_s21 = smov (!%p432_p13, %s1096_s21), 7  ;;  %v1161_v22 = vor.u32 %v1249_v19, %v1158_v21  ;;  %v1247_v25 = vld [vmem:[%s2074_s3 + $0x64] sm:$0xf]  ;;  %v1149_v26 = vor.u32 %v1248_v24, %v1148_v23  ;;  %v1150_v27 = vld [vmem:[%s2074_s3 + $0x68] sm:$0xf0]  ;;  %s1095_s11 = sshll.u32 %s428_s23, 4 }
  0x37   : > { %s1097_s14 = sshll.u32 %s2102_s21, 3  ;;  %602 = vmatpush.bf16.msra.mxu0 %v1157_v20  ;;  %v1153_v28 = vor.u32 %v1247_v25, %v1150_v27  ;;  %v1140_v29 = vld [vmem:[%s2074_s3 + $0x50] sm:$0xf]  ;;  %v1246_v30 = vld [vmem:[%s2074_s3 + $0x54] sm:$0xf0]  ;;  %s1267_s18 = sshll.u32 %s1787_s13, 4 }
  0x38   : > { %s435_s2 = scalar_lea.vmem %s2071_s0, %s1097_s14  ;;  %616 = vmatpush.bf16.msra.mxu1 %v1161_v22  ;;  %v1245_v31 = vld [vmem:[%s2074_s3 + $0x54] sm:$0xf]  ;;  %v1141_v32 = vor.u32 %v1246_v30, %v1140_v29  ;;  %v1142_v33 = vld [vmem:[%s2074_s3 + $0x58] sm:$0xf0]  ;;  %v1132_v35 = vld [vmem:[%s2074_s3 + $0x40] sm:$0xf]  ;;  %s942_s27 = scalar_lea.hbm %s2080_s9, %s1267_s18 }
  0x39   : > { %v1884_v0 = vld [vmem:[%s435_s2] sm:$0xff]  ;;  %v1887_v1 = vld [vmem:[%s435_s2 + $0x8] sm:$0xff]  ;;  %v1145_v34 = vor.u32 %v1245_v31, %v1142_v33  ;;  %v1124_v41 = vld [vmem:[%s2074_s3 + $0x30] sm:$0xf]  ;;  %s430_s28 = scalar_lea.vmem [#allocation14], %s1095_s11  ;;  %s945_s29 = sshll.u32 %s942_s27, 4  ;;  %s946_s29 = int_to_ptr.hbm [resolvable:$true] %s945_s29 }
  0x3a   : > { %440 = vadd.xlane.f32.xlu0 %v1884_v0  ;;  %v1389_v3 = vpop.eup %1388  ;;  %v1244_v36 = vld [vmem:[%s2074_s3 + $0x44] sm:$0xf0]  ;;  %v1243_v37 = vld [vmem:[%s2074_s3 + $0x44] sm:$0xf]  ;;  %v1134_v39 = vld [vmem:[%s2074_s3 + $0x48] sm:$0xf0] }
  0x3b   : > { %v445_v4 = vmul.f32 128.0, %v1389_v3  ;;  %vm449_vm0 = vweird.f32 %v1389_v3  ;;  %603 = vmatpush.bf16.msra.mxu0 %v1149_v26  ;;  %v1133_v38 = vor.u32 %v1244_v36, %v1132_v35  ;;  %v1137_v40 = vor.u32 %v1243_v37, %v1134_v39  ;;  %v1242_v42 = vld [vmem:[%s2074_s3 + $0x34] sm:$0xf0]  ;;  %v1241_v43 = vld [vmem:[%s2074_s3 + $0x34] sm:$0xf]  ;;  %v1258_v35 = vld [vmem:[#allocation8 + $0x38] sm:$0xff] }
  0x3c   : > { %617 = vmatpush.bf16.msra.mxu1 %v1153_v28  ;;  %v1125_v44 = vor.u32 %v1242_v42, %v1124_v41  ;;  %v1126_v45 = vld [vmem:[%s2074_s3 + $0x38] sm:$0xf0]  ;;  %v1116_v47 = vld [vmem:[%s2074_s3 + $0x20] sm:$0xf]  ;;  %v1240_v48 = vld [vmem:[%s2074_s3 + $0x24] sm:$0xf0]  ;;  %844 = vmatpush.bf16.msra.mxu2 %v1258_v35 }
  0x3d   : > { %v446_v5 = vsub.f32 1.0, %v445_v4  ;;  %v1129_v46 = vor.u32 %v1241_v43, %v1126_v45  ;;  %v1239_v49 = vld [vmem:[%s2074_s3 + $0x24] sm:$0xf]  ;;  %v1117_v50 = vor.u32 %v1240_v48, %v1116_v47  ;;  %v1118_v51 = vld [vmem:[%s2074_s3 + $0x28] sm:$0xf0]  ;;  %v1265_v37 = vld [vmem:[#allocation8 + $0x70] sm:$0xff] }
  0x3e   : > { %v1121_v52 = vor.u32 %v1239_v49, %v1118_v51  ;;  %v1108_v53 = vld [vmem:[%s2074_s3 + $0x10] sm:$0xf]  ;;  %v1238_v54 = vld [vmem:[%s2074_s3 + $0x14] sm:$0xf0]  ;;  %v1237_v55 = vld [vmem:[%s2074_s3 + $0x14] sm:$0xf] }
  0x3f   : > { %v447_v6 = vmul.f32 %v1389_v3, %v446_v5  ;;  %604 = vmatpush.bf16.msra.mxu0 %v1141_v32  ;;  %v1109_v56 = vor.u32 %v1238_v54, %v1108_v53  ;;  %v1110_v57 = vld [vmem:[%s2074_s3 + $0x18] sm:$0xf0]  ;;  %v1100_v58 = vld [vmem:[%s2074_s3] sm:$0xf]  ;;  %v1236_v59 = vld [vmem:[%s2074_s3 + $0x4] sm:$0xf0] }
  0x40   : > { %618 = vmatpush.bf16.msra.mxu1 %v1145_v34  ;;  %v1113_v60 = vor.u32 %v1237_v55, %v1110_v57  ;;  %v1235_v61 = vld [vmem:[%s2074_s3 + $0x4] sm:$0xf]  ;;  %v1102_v62 = vld [vmem:[%s2074_s3 + $0x8] sm:$0xf0]  ;;  %v1101_v2 = vor.u32 %v1236_v59, %v1100_v58  ;;  %v1383_v25 = vld [vmem:[#allocation2] ss:$0 sm:$0xff] }
  0x41   : > { %v448_v7 = vadd.f32 %v1389_v3, %v447_v6  ;;  %v1105_v4 = vor.u32 %v1235_v61, %v1102_v62  ;;  %v1384_v30 = vld [vmem:[#allocation5] ss:$0 sm:$0xff]  ;;  %v1264_v39 = vld [vmem:[#allocation8 + $0x68] sm:$0xff]  ;;  %v1263_v41 = vld [vmem:[#allocation8 + $0x60] sm:$0xff]  ;;  %s943_s24 = sshll.u32 %s430_s28, 4  ;;  %s931_s13 = scalar_lea.sflag [#allocation4], %s428_s23  ;;  %s944_s24 = int_to_ptr.vmem [resolvable:$true] %s943_s24 }
  0x42   : > { %442 = vadd.xlane.f32.xlu0 %v1887_v1  ;;  %v1266_v36 = vld [vmem:[#allocation8 + $0x78] sm:$0xff]  ;;  %v1261_v51 = vld [vmem:[#allocation8 + $0x50] sm:$0xff]  ;;  %v1252_v54 = vld [vmem:[#allocation8 + $0x8] sm:$0xff]  ;;  %s1638_s16 = sshra.s32 %s946_s29, 4  ;;  %s1644_s17 = scalar_lea.hbm %s2080_s9, 64  ;;  %s1639_s16 = int_to_ptr.hbm [resolvable:$true] %s1638_s16 }
  0x43   : > { %v1890_v8 = vsel %vm449_vm0, %v1389_v3, %v448_v7  ;;  %605 = vmatpush.bf16.msra.mxu0 %v1133_v38  ;;  %858 = vmatpush.bf16.msra.mxu3 %v1266_v36  ;;  %v1256_v38 = vld [vmem:[#allocation8 + $0x28] sm:$0xff]  ;;  %v1262_v45 = vld [vmem:[#allocation8 + $0x58] sm:$0xff]  ;;  %v1259_v61 = vld [vmem:[#allocation8 + $0x40] sm:$0xff]  ;;  %s1640_s26 = scalar_lea.hbm %s1639_s16, 16  ;;  %p1645_p3 = scmp.lt.s32.totalorder %s1639_s16, %s2080_s9 }
  0x44   : > { %619 = vmatpush.bf16.msra.mxu1 %v1137_v40  ;;  %v1255_v40 = vld [vmem:[#allocation8 + $0x20] sm:$0xff]  ;;  %v1260_v55 = vld [vmem:[#allocation8 + $0x48] sm:$0xff]  ;;  %p1641_p0 = scmp.ne.s32.totalorder %s1639_s16, %s1640_s26  ;;  %p1646_p4 = scmp.lt.s32.totalorder %s1644_s17, %s1640_s26 }
  0x46   : > { %p1642_p1 = pnand %p1641_p0, %p1804_p5  ;;  %p1647_p7 = por %p1646_p4, %p1645_p3 }
  0x47   : > { %606 = vmatpush.bf16.msra.mxu0 %v1125_v44  ;;  %859 = vmatpush.bf16.msra.mxu3 %v1265_v37  ;;  %v1254_v44 = vld [vmem:[#allocation8 + $0x18] sm:$0xff] }
  0x48   : > { %620 = vmatpush.bf16.msra.mxu1 %v1129_v46  ;;  %p1643_p2 = pneg %p1642_p1 }
  0x4a   : > { %p1648_p8 = pnand %p1647_p7, %p1643_p2 }
  0x4b   : > { %607 = vmatpush.bf16.msra.mxu0 %v1117_v50  ;;  %860 = vmatpush.bf16.msra.mxu3 %v1264_v39  ;;  %v1253_v50 = vld [vmem:[#allocation8 + $0x10] sm:$0xff] }
  0x4c   : > { %621 = vmatpush.bf16.msra.mxu1 %v1121_v52 }
  0x4f   : > { %608 = vmatpush.bf16.msra.mxu0 %v1109_v56  ;;  %861 = vmatpush.bf16.msra.mxu3 %v1263_v41 }
  0x50   : > { %622 = vmatpush.bf16.msra.mxu1 %v1113_v60  ;;  %v1251_v60 = vld [vmem:[#allocation8] sm:$0xff] }
  0x53   : > { %609 = vmatpush.bf16.msra.mxu0 %v1101_v2  ;;  %862 = vmatpush.bf16.msra.mxu3 %v1262_v45 }
  0x54   : > { %623 = vmatpush.bf16.msra.mxu1 %v1105_v4 }
  0x57   : > { %863 = vmatpush.bf16.msra.mxu3 %v1261_v51 }
  0x5b   : > { %864 = vmatpush.bf16.msra.mxu3 %v1260_v55 }
  0x5f   : > { %865 = vmatpush.bf16.msra.mxu3 %v1259_v61 }
  0xad   : > { %v441_v9 = vpop.xlane.xlu0 %440 }
  0xae   : > { %v451_v10 = vmul.f32 %v1890_v8, %v441_v9 }
  0xb0   : > { %v1894_v11 = vsub.f32 %v1884_v0, %v451_v10 }
  0xb2   : > { %v455_v12 = vmul.f32 %v1894_v11, %v1894_v11 }
  0xb4   : > { %457 = vadd.xlane.f32.xlu1 %v455_v12 }
  0xb5   : > { %v443_v13 = vpop.xlane.xlu0 %442 }
  0xb6   : > { %v452_v14 = vmul.f32 %v1890_v8, %v443_v13 }
  0xb8   : > { %v1900_v15 = vsub.f32 %v1887_v1, %v452_v14 }
  0xba   : > { %v456_v16 = vmul.f32 %v1900_v15, %v1900_v15 }
  0xbc   : > { %459 = vadd.xlane.f32.xlu1 %v456_v16 }
 0x127   : > { %v458_v63 = vpop.xlane.xlu1 %457 }
 0x128   : > { %v461_v3 = vmul.f32 %v458_v63, %v1890_v8 }
 0x12a   : > { %v463_v5 = vadd.f32 1e-05, %v461_v3 }
 0x12c   : > { %1390 = vrsqrt.f32 %v463_v5  ;;  %vm471_vm2 = vweird.f32 %v463_v5 }
 0x12f   : > { %v460_v6 = vpop.xlane.xlu1 %459 }
 0x130   : > { %v462_v7 = vmul.f32 %v460_v6, %v1890_v8 }
 0x132   : > { %v1391_v9 = vpop.eup %1390  ;;  %v464_v10 = vadd.f32 1e-05, %v462_v7 }
 0x133   : > { %v466_v12 = vmul.f32 %v1391_v9, %v463_v5  ;;  %vm472_vm1 = vweird.f32 %v1391_v9 }
 0x134   : > { %1392 = vrsqrt.f32 %v464_v10  ;;  %vm473_vm3 = vmor %vm471_vm2, %vm472_vm1  ;;  %vm481_vm5 = vweird.f32 %v464_v10 }
 0x135   : > { %v467_v13 = vmul.f32 %v1391_v9, %v466_v12 }
 0x137   : > { %v468_v14 = vmul.f32 0.5, %v467_v13 }
 0x139   : > { %v469_v16 = vsub.f32 1.5, %v468_v14 }
 0x13a   : > { %v1393_v17 = vpop.eup %1392 }
 0x13b   : > { %v470_v18 = vmul.f32 %v1391_v9, %v469_v16  ;;  %v476_v19 = vmul.f32 %v1393_v17, %v464_v10  ;;  %vm482_vm4 = vweird.f32 %v1393_v17 }
 0x13c   : > { %vm483_vm6 = vmor %vm481_vm5, %vm482_vm4 }
 0x13d   : > { %v477_v20 = vmul.f32 %v1393_v17, %v476_v19  ;;  %v474_v22 = vsel %vm473_vm3, %v1391_v9, %v470_v18 }
 0x13e   : > { %v485_v24 = vmul.f32 %v474_v22, %v1894_v11  ;;  %v1257_v11 = vld [vmem:[#allocation8 + $0x30] sm:$0xff] }
 0x13f   : > { %v478_v21 = vmul.f32 0.5, %v477_v20  ;;  %845 = vmatpush.bf16.msra.mxu2 %v1257_v11 }
 0x140   : > { %v491_v29 = vmul.f32 %v1383_v25, %v485_v24 }
 0x141   : > { %v479_v23 = vsub.f32 1.5, %v478_v21 }
 0x142   : > { %v497_v32 = vadd.f32 %v1384_v30, %v491_v29 }
 0x143   : > { %v480_v26 = vmul.f32 %v1393_v17, %v479_v23  ;;  %846 = vmatpush.bf16.msra.mxu2 %v1256_v38 }
 0x145   : > { %v484_v27 = vsel %vm483_vm6, %v1393_v17, %v480_v26 }
 0x146   : > { %v486_v28 = vmul.f32 %v484_v27, %v1900_v15  ;;  %v516_v15 = vld [vmem:[#allocation7] sm:$0x3] }
 0x147   : > { %847 = vmatpush.bf16.msra.mxu2 %v1255_v40  ;;  %v518_v42 = vperm.slane %v516_v15, 0  ;;  %v519_v43 = vperm.slane %v516_v15, 1 }
 0x148   : > { %v492_v31 = vmul.f32 %v1383_v25, %v486_v28 }
 0x14a   : > { %v498_v33 = vadd.f32 %v1384_v30, %v492_v31 }
 0x14b   : > { %848 = vmatpush.bf16.msra.mxu2 %v1254_v44 }
 0x14c   : > { %v499_v34 = vpack.c.bf16 %v498_v33, %v497_v32 }
 0x14e   : > { %610 = vmatmul.bf16.vlgmr.msra.gmra.mxu0 %v499_v34  ;;  %624 = vmatmul.bf16.vlgmr.msra.gmra.mxu1 %v499_v34 }
 0x14f   : > { %849 = vmatpush.bf16.msra.mxu2 %v1253_v50 }
 0x153   : > { %850 = vmatpush.bf16.msra.mxu2 %v1252_v54 }
 0x157   : > { %851 = vmatpush.bf16.msra.mxu2 %v1251_v60 }
 0x1cb   : > { %v611_v46 = vpop.f32.mrf.mxu0  ;;  %v625_v47 = vpop.f32.mrf.mxu1 }
 0x1cc   : > { %v2004_v48 = vadd.f32 %v611_v46, %v518_v42  ;;  %v2006_v49 = vadd.f32 %v625_v47, %v519_v43 }
 0x1ce   : > { %v1162_v52 = vmul.f32 -1.442695, %v2004_v48  ;;  %v1163_v53 = vmul.f32 -1.442695, %v2006_v49 }
 0x1d0   : > { %1394 = vpow2.f32 %v1162_v52 }
 0x1d1   : > { %1396 = vpow2.f32 %v1163_v53 }
 0x1d3   : > { %v613_v56 = vpop.f32.mrf.mxu0  ;;  %v627_v57 = vpop.f32.mrf.mxu1 }
 0x1d4   : > { %v2010_v58 = vadd.f32 %v613_v56, %v518_v42  ;;  %v2012_v59 = vadd.f32 %v627_v57, %v519_v43 }
 0x1d6   : > { %v1395_v62 = vpop.eup %1394  ;;  %v1164_v63 = vmul.f32 -1.442695, %v2010_v58  ;;  %v1165_v4 = vmul.f32 -1.442695, %v2012_v59 }
 0x1d7   : > { %v1397_v2 = vpop.eup %1396  ;;  %v642_v3 = vadd.f32 1.0, %v1395_v62 }
 0x1d8   : > { %v643_v5 = vadd.f32 1.0, %v1397_v2  ;;  %1398 = vpow2.f32 %v1164_v63  ;;  %v1385_v63 = vld [vmem:[#allocation10] ss:$0 sm:$0xff] }
 0x1d9   : > { %1400 = vrcp.f32 %v642_v3  ;;  %vm651_vm8 = vweird.f32 %v642_v3  ;;  %v655_v24 = vand.u32 2147483647, %v642_v3  ;;  %v657_v25 = vand.u32 2147483648, %v642_v3 }
 0x1da   : > { %1402 = vrcp.f32 %v643_v5  ;;  %vm666_vm9 = vweird.f32 %v643_v5  ;;  %v670_v27 = vand.u32 2147483647, %v643_v5  ;;  %v672_v32 = vand.u32 2147483648, %v643_v5 }
 0x1db   : > { %1404 = vpow2.f32 %v1165_v4  ;;  %vm656_vm13 = vcmp.eq.f32.partialorder %v655_v24, 8.507059e+37  ;;  %v658_v11 = vor.u32 1.1754944e-38, %v657_v25 }
 0x1dc   : > { %v673_v45 = vor.u32 1.1754944e-38, %v672_v32  ;;  %vm671_vm3 = vcmp.eq.f32.partialorder %v670_v27, 8.507059e+37 }
 0x1de   : > { %v1399_v6 = vpop.eup %1398 }
 0x1df   : > { %v1401_v7 = vpop.eup %1400  ;;  %v644_v9 = vadd.f32 1.0, %v1399_v6 }
 0x1e0   : > { %v1403_v10 = vpop.eup %1402  ;;  %v647_v12 = vmul.f32 %v1401_v7, %v642_v3  ;;  %vm652_vm7 = vweird.f32 %v1401_v7 }
 0x1e1   : > { %v1405_v13 = vpop.eup %1404  ;;  %v662_v14 = vmul.f32 %v1403_v10, %v643_v5  ;;  %1406 = vrcp.f32 %v644_v9  ;;  %v687_v29 = vand.u32 2147483648, %v644_v9  ;;  %vm2016_vm10 = vmor %vm651_vm8, %vm652_vm7  ;;  %vm667_vm11 = vweird.f32 %v1403_v10 }
 0x1e2   : > { %v648_v16 = vsub.f32 1.0, %v647_v12  ;;  %v645_v17 = vadd.f32 1.0, %v1405_v13  ;;  %v685_v36 = vand.u32 2147483647, %v644_v9  ;;  %vm681_vm14 = vweird.f32 %v644_v9  ;;  %vm2023_vm15 = vmor %vm666_vm9, %vm667_vm11 }
 0x1e3   : > { %v663_v18 = vsub.f32 1.0, %v662_v14  ;;  %v688_v15 = vor.u32 1.1754944e-38, %v687_v29 }
 0x1e4   : > { %v649_v19 = vmul.f32 %v1401_v7, %v648_v16  ;;  %1408 = vrcp.f32 %v645_v17  ;;  %v700_v40 = vand.u32 2147483647, %v645_v17  ;;  %v702_v41 = vand.u32 2147483648, %v645_v17 }
 0x1e5   : > { %v664_v21 = vmul.f32 %v1403_v10, %v663_v18  ;;  %vm686_vm2 = vcmp.eq.f32.partialorder %v685_v36, 8.507059e+37  ;;  %vm696_vm4 = vweird.f32 %v645_v17  ;;  %v1387_v36 = vld [vmem:[#allocation13] ss:$0 sm:$0xff] }
 0x1e6   : > { %v650_v22 = vadd.f32 %v1401_v7, %v649_v19  ;;  %v703_v54 = vor.u32 1.1754944e-38, %v702_v41  ;;  %vm701_vm6 = vcmp.eq.f32.partialorder %v700_v40, 8.507059e+37 }
 0x1e7   : > { %v1407_v20 = vpop.eup %1406  ;;  %v665_v31 = vadd.f32 %v1403_v10, %v664_v21 }
 0x1e8   : > { %v677_v23 = vmul.f32 %v1407_v20, %v644_v9  ;;  %v654_v34 = vsel %vm2016_vm10, %v1401_v7, %v650_v22  ;;  %vm682_vm12 = vweird.f32 %v1407_v20 }
 0x1e9   : > { %v659_v42 = vsel %vm656_vm13, %v658_v11, %v654_v34  ;;  %v669_v43 = vsel %vm2023_vm15, %v1403_v10, %v665_v31  ;;  %vm683_vm0 = vmor %vm681_vm14, %vm682_vm12 }
 0x1ea   : > { %v1409_v26 = vpop.eup %1408  ;;  %v678_v28 = vsub.f32 1.0, %v677_v23  ;;  %v706_v51 = vmul.f32 %v659_v42, %v2004_v48  ;;  %v674_v52 = vsel %vm671_vm3, %v673_v45, %v669_v43 }
 0x1eb   : > { %v692_v33 = vmul.f32 %v1409_v26, %v645_v17  ;;  %vm697_vm1 = vweird.f32 %v1409_v26  ;;  %v707_v60 = vmul.f32 %v674_v52, %v2006_v49 }
 0x1ec   : > { %v679_v35 = vmul.f32 %v1407_v20, %v678_v28  ;;  %vm698_vm5 = vmor %vm696_vm4, %vm697_vm1 }
 0x1ed   : > { %v693_v37 = vsub.f32 1.0, %v692_v33  ;;  %v1386_v33 = vld [vmem:[#allocation11] ss:$0 sm:$0xff] }
 0x1ee   : > { %v680_v39 = vadd.f32 %v1407_v20, %v679_v35 }
 0x1ef   : > { %v694_v44 = vmul.f32 %v1409_v26, %v693_v37 }
 0x1f0   : > { %v684_v46 = vsel %vm683_vm0, %v1407_v20, %v680_v39 }
 0x1f1   : > { %v689_v47 = vsel %vm686_vm2, %v688_v15, %v684_v46  ;;  %v695_v50 = vadd.f32 %v1409_v26, %v694_v44 }
 0x1f2   : > { %v708_v53 = vmul.f32 %v689_v47, %v2010_v58 }
 0x1f3   : > { %v699_v55 = vsel %vm698_vm5, %v1409_v26, %v695_v50 }
 0x1f4   : > { %v704_v56 = vsel %vm701_vm6, %v703_v54, %v699_v55  ;;  %v710_v57 = vpack.c.bf16 %v708_v53, %v706_v51 }
 0x1f5   : > { %v709_v61 = vmul.f32 %v704_v56, %v2012_v59 }
 0x1f6   : > { %852 = vmatmul.bf16.vlgmr.msra.gmra.mxu2 %v710_v57 }
 0x1f7   : > { %v711_v62 = vpack.c.bf16 %v709_v61, %v707_v60 }
 0x1f9   : > { %866 = vmatmul.bf16.vlgmr.msra.gmra.mxu3 %v711_v62 }
 0x279   : > { %v853_v2 = vpop.f32.mrf.mxu2 }
 0x27a   : > { %v854_v3 = vadd.f32 %v1385_v63, %v853_v2 }
 0x27c   : > { %v867_v48 = vpop.f32.mrf.mxu3 }
 0x27d   : > { %v868_v4 = vadd.f32 %v867_v48, %v854_v3 }
 0x27f   : > { %v872_v5 = vmul.f32 0.5, %v868_v4 }
 0x281   : > { %v855_v58 = vpop.f32.mrf.mxu2  ;;  %v874_v6 = vadd.f32 %v872_v5, %v1884_v0 }
 0x282   : > { %v856_v7 = vadd.f32 %v1385_v63, %v855_v58 }
 0x283   : > { %876 = vadd.xlane.f32.xlu2 %v874_v6 }
 0x284   : > { %v869_v9 = vpop.f32.mrf.mxu3 }
 0x285   : > { %v870_v10 = vadd.f32 %v869_v9, %v856_v7 }
 0x287   : > { %v873_v12 = vmul.f32 0.5, %v870_v10 }
 0x289   : > { %v875_v49 = vadd.f32 %v873_v12, %v1887_v1 }
 0x28b   : > { %878 = vadd.xlane.f32.xlu2 %v875_v49 }
 0x2f6   : > { %v877_v59 = vpop.xlane.xlu2 %876 }
 0x2f7   : > { %v880_v13 = vmul.f32 %v877_v59, %v1890_v8 }
 0x2f9   : > { %v882_v14 = vsub.f32 %v874_v6, %v880_v13 }
 0x2fb   : > { %v884_v16 = vmul.f32 %v882_v14, %v882_v14 }
 0x2fd   : > { %886 = vadd.xlane.f32.xlu0 %v884_v16 }
 0x2fe   : > { %v879_v17 = vpop.xlane.xlu2 %878 }
 0x2ff   : > { %v881_v18 = vmul.f32 %v879_v17, %v1890_v8 }
 0x301   : > { %v883_v19 = vsub.f32 %v875_v49, %v881_v18 }
 0x303   : > { %v885_v20 = vmul.f32 %v883_v19, %v883_v19 }
 0x305   : > { %888 = vadd.xlane.f32.xlu1 %v885_v20 }
 0x370   : > { %v887_v0 = vpop.xlane.xlu0 %886 }
 0x371   : > { %v890_v21 = vmul.f32 %v887_v0, %v1890_v8 }
 0x373   : > { %v892_v22 = vadd.f32 1e-05, %v890_v21 }
 0x375   : > { %1410 = vrsqrt.f32 %v892_v22  ;;  %vm900_vm8 = vweird.f32 %v892_v22 }
 0x378   : > { %v889_v1 = vpop.xlane.xlu1 %888 }
 0x379   : > { %v891_v23 = vmul.f32 %v889_v1, %v1890_v8 }
 0x37b   : > { %v1411_v24 = vpop.eup %1410  ;;  %v893_v25 = vadd.f32 1e-05, %v891_v23 }
 0x37c   : > { %v895_v26 = vmul.f32 %v1411_v24, %v892_v22  ;;  %vm901_vm7 = vweird.f32 %v1411_v24 }
 0x37d   : > { %1412 = vrsqrt.f32 %v893_v25  ;;  %vm902_vm9 = vmor %vm900_vm8, %vm901_vm7  ;;  %vm910_vm11 = vweird.f32 %v893_v25 }
 0x37e   : > { %v896_v27 = vmul.f32 %v1411_v24, %v895_v26 }
 0x380   : > { %v897_v28 = vmul.f32 0.5, %v896_v27 }
 0x382   : > { %v898_v29 = vsub.f32 1.5, %v897_v28 }
 0x383   : > { %v1413_v30 = vpop.eup %1412 }
 0x384   : > { %v899_v31 = vmul.f32 %v1411_v24, %v898_v29  ;;  %v905_v32 = vmul.f32 %v1413_v30, %v893_v25  ;;  %vm911_vm10 = vweird.f32 %v1413_v30 }
 0x385   : > { %vm912_vm12 = vmor %vm910_vm11, %vm911_vm10 }
 0x386   : > { %v903_v34 = vsel %vm902_vm9, %v1411_v24, %v899_v31  ;;  %v906_v35 = vmul.f32 %v1413_v30, %v905_v32 }
 0x387   : > { %v914_v8 = vmul.f32 %v903_v34, %v882_v14 }
 0x388   : > { %v907_v11 = vmul.f32 0.5, %v906_v35 }
 0x389   : > { %v920_v37 = vmul.f32 %v1386_v33, %v914_v8 }
 0x38a   : > { %v908_v38 = vsub.f32 1.5, %v907_v11 }
 0x38b   : > { %v926_v39 = vadd.f32 %v1387_v36, %v920_v37 }
 0x38c   : > { %v909_v15 = vmul.f32 %v1413_v30, %v908_v38 }
 0x38d   : > { %928 = vst [vmem:[%s430_s28] sm:$0xff] %v926_v39 }
 0x38e   : > { %v913_v40 = vsel %vm912_vm12, %v1413_v30, %v909_v15 }
 0x38f   : > { %v915_v41 = vmul.f32 %v913_v40, %v883_v19 }
 0x391   : > { %v921_v42 = vmul.f32 %v1386_v33, %v915_v41 }
 0x393   : > { %v927_v43 = vadd.f32 %v1387_v36, %v921_v42 }
 0x395   : > { %929 = vst [vmem:[%s430_s28 + $0x8] sm:$0xff] %v927_v43 }
 0x396   : > { %1651 = shalt.err (!%p1648_p8)
}
 0x397   : > { %s1714_s23 = smov 128   ;;  %s1715_s11 = smov 8  }
 0x398   : > { %1296 = dma.vmem_to_hbm [thread:$0]  (%p1804_p5), %s944_s24, 256, %s946_s29, %s931_s13, %s1714_s23, %s1714_s23, %s1715_s11  }
 0x399 PF: > { %p1338_p9 = scmp.ge.s32.totalorder %s1702_s12, 2  ;;  %s960_s18 = sand.u32 1, %s1690_s30  }
 0x39a   : > { %s961_s25 = scalar_lea.sflag [#allocation4], %s960_s18 }
 0x39b   : > { %p1321_p10 = pnand %p1338_p9, %p1808_p6 }
 0x39d   : > { %p1322_p11 = pneg %p1321_p10 }
 0x39f   : > { %1685 = dma.done.wait (%p1322_p11), %s961_s25, 256  }
 0x3a0   : > { %1687 = vsyncadd (%p1322_p11), %s961_s25, 4294967040  ;;  %s2096_s5 = sld [smem:[#allocation20_spill]]  ;;  %p23_p12 = scmp.ge.s32.totalorder %s1791_s15, 6  }
 0x3a1   : > { %s2097_s11 = sld [smem:[#allocation21_spill]]  ;;  %s2098_s30 = smov %s1694_s10 }
 0x3a2   : > { %s2100_s12 = smov %s1791_s15  ;;  %25 = sbr.rel (!%p23_p12) target bundleno = 10 (0xa), region = 120 }
 0x3a6   : > { %s2099_s10 = smov %s2096_s5 }
 0x3a7   :  { %967 = vsyncpa [#allocation3], 1 }
 0x3a8   :  { %969 = vsyncpa [#allocation3 + $0x1], 1 }
 0x3a9   :  { %970 = vsyncpa [#allocation6], 1 }
 0x3aa   :  { %971 = vsyncpa [#allocation9], 1 }
 0x3ab   :  { %972 = vsyncpa [#allocation12], 1 }
 0x3ac   :  { %973 = vsyncpa [#allocation4], 1 }
 0x3ad   :  { %975 = vsyncpa [#allocation4 + $0x1], 1 }

</bundles_post_ra>
